<compile_context>
chip_gen: v7x
topology: tpu7x:2x2x1
jax: 0.10.0
libtpu: 0.0.40
codegen_flags: <defaults>
</compile_context>

<pallas_src>
import functools

import numpy as np
import jax
import jax.numpy as jnp
from jax import lax
from jax.experimental import pallas as pl
from jax.experimental.pallas import tpu as pltpu

VERY_NEGATIVE_NUMBER = -1e30
LN_EPS = 1e-5           # matches torch.nn.LayerNorm default eps
SLAB_WIDTH = 128        # lane-dense output slab width

_TN = (((0,), (0,)), ((), ()))   # contract dim0 with dim0 (lhs transposed)
_NT = (((1,), (1,)), ((), ()))   # contract dim1 with dim1 (rhs transposed)


# ----------------------------------------------------------------------------
# Shared math helpers
# ----------------------------------------------------------------------------
def _layer_norm_rows(y, gamma, beta):
    """LayerNorm over the last dim (reference / standard layout)."""
    mu = jnp.mean(y, axis=-1, keepdims=True)
    var = jnp.mean((y - mu) ** 2, axis=-1, keepdims=True)
    return (y - mu) * lax.rsqrt(var + LN_EPS) * gamma + beta


def _layer_norm_cols(yT, gamma_col, beta_col):
    """LayerNorm over the feature axis of transposed (D, N) activations."""
    mu = jnp.mean(yT, axis=0, keepdims=True)
    var = jnp.mean((yT - mu) ** 2, axis=0, keepdims=True)
    return (yT - mu) * lax.rsqrt(var + LN_EPS) * gamma_col + beta_col


def _softmax_lanes_approx(s):
    """Lane-axis softmax with the EUP approximate reciprocal (kernel only)."""
    m = jnp.max(s, axis=-1, keepdims=True)
    e = jnp.exp(s - m)
    return e * pl.reciprocal(jnp.sum(e, axis=-1, keepdims=True), approx=True)


# ----------------------------------------------------------------------------
# Fused forward kernel: depth x (MHA + FFN) + pooling + classifier
# ----------------------------------------------------------------------------
def _fused_forward_kernel(x_ref, bias_ref, wslab_ref, colp_ref, uq_ref, head_ref,
                          out_ref, *, depth, n_head, d_k, d_v, d_inner, seq_len):
    D, N = x_ref.shape                       # transposed activations: (D, B*T)
    B = N // seq_len
    qkv_rows = n_head * (2 * d_k + d_v)
    scale = 1.0 / float(np.sqrt(d_k))

    xT = x_ref[...]                          # (D, N): 2 dense vregs at D=16

    for l in range(depth):                   # static unroll over layers
        w_l = wslab_ref[l]                   # (qkv_rows + 2*D + d_inner, max(D, d_inner))
        c_l = colp_ref[l]                    # (6*D + d_inner, 1) column params
        r = 0
        wqkvT = w_l[r:r + qkv_rows, 0:D];              r += qkv_rows
        woT = w_l[r:r + D, 0:n_head * d_v];            r += D
        w1T = w_l[r:r + d_inner, 0:D];                 r += d_inner
        w2T = w_l[r:r + D, 0:d_inner]
        boT = c_l[0:D]
        ln1g, ln1b = c_l[D:2 * D], c_l[2 * D:3 * D]
        b1T = c_l[3 * D:3 * D + d_inner]
        b2T = c_l[3 * D + d_inner:4 * D + d_inner]
        ln2g = c_l[4 * D + d_inner:5 * D + d_inner]
        ln2b = c_l[5 * D + d_inner:6 * D + d_inner]

        # ---------------- multi-head self-attention (all MXU) ----------------
        qkvT = jnp.dot(wqkvT, xT, preferred_element_type=jnp.float32)  # (qkv_rows, N)
        ctx_parts = []
        for h in range(n_head):              # static unroll over heads
            qT = qkvT[h * d_k:(h + 1) * d_k, :]                               # (d_k, N)
            kT = qkvT[n_head * d_k + h * d_k:n_head * d_k + (h + 1) * d_k, :]
            vT = qkvT[2 * n_head * d_k + h * d_v:
                      2 * n_head * d_k + (h + 1) * d_v, :]
            # dense (N, N) scores; block-diagonal + padding mask folded in
            s = lax.dot_general(qT, kT, _TN,
                                preferred_element_type=jnp.float32) * scale
            s = s + bias_ref[0:N, :]
            p = _softmax_lanes_approx(s)                                      # (N, N)
            # ctx^T = v^T @ P^T : (d_v, N)
            ctx_parts.append(lax.dot_general(vT, p, _NT,
                                             preferred_element_type=jnp.float32))
        ctxT = jnp.concatenate(ctx_parts, axis=0)        # (n_head*d_v, N) sublane concat
        yT = jnp.dot(woT, ctxT, preferred_element_type=jnp.float32) + boT + xT
        xT = _layer_norm_cols(yT, ln1g, ln1b)

        # ---------------- position-wise feed-forward ----------------
        hT = jnp.maximum(
            jnp.dot(w1T, xT, preferred_element_type=jnp.float32) + b1T, 0.0)
        fT = jnp.dot(w2T, hT, preferred_element_type=jnp.float32) + b2T
        xT = _layer_norm_cols(fT + xT, ln2g, ln2b)

    # ---------------- universal-query pooling + classifier ----------------
    # K_all[b, n] = sum_h uq[b, h] * x_flat[n, h]; the pooling mask keeps only
    # the (valid) tokens of batch row b, so the lane softmax below is exactly
    # the reference per-row softmax over time (masked entries exp to 0).
    K_all = jnp.dot(uq_ref[...], xT, preferred_element_type=jnp.float32)   # (B, N)
    sp = K_all + bias_ref[N:N + B, :]
    m = jnp.max(sp, axis=-1, keepdims=True)
    e = jnp.exp(sp - m)
    alpha = e / jnp.sum(e, axis=-1, keepdims=True)        # exact (returned to caller)
    pooled = lax.dot_general(alpha, xT, _NT,
                             preferred_element_type=jnp.float32)           # (B, D)

    # Lane-dense (B, 128) output slab: [logits | alpha | zeros], built with
    # placement matmuls -> a single unmasked 128-lane store.
    wout_slab = head_ref[0:D, :]
    bout_row = head_ref[D:D + 1, :]
    alpha_place = head_ref[D + 8:D + 8 + N, :]
    out_ref[...] = (jnp.dot(pooled, wout_slab, preferred_element_type=jnp.float32)
                    + bout_row
                    + jnp.dot(alpha, alpha_place, preferred_element_type=jnp.float32))


def fused_forward(xT, bias_slab, packed, *, depth, n_head, d_k, d_v, d_inner,
                  seq_len, nclasses):
    D, N = xT.shape
    B = N // seq_len
    assert B * seq_len == N and B == D, \
        "reference universal_query broadcast requires batch == hidden"
    assert nclasses + seq_len <= SLAB_WIDTH
    args = (xT, bias_slab, packed['wslab'], packed['colp'], packed['uq'],
            packed['head'])
    kern = functools.partial(_fused_forward_kernel, depth=depth, n_head=n_head,
                             d_k=d_k, d_v=d_v, d_inner=d_inner, seq_len=seq_len)
    slab = pl.pallas_call(
        kern,
        out_shape=jax.ShapeDtypeStruct((B, SLAB_WIDTH), jnp.float32),
        in_specs=[pl.BlockSpec(memory_space=pltpu.MemorySpace.VMEM)] * len(args),
        out_specs=pl.BlockSpec(memory_space=pltpu.MemorySpace.VMEM),
    )(*args)
    logits = slab[:, :nclasses]
    keys = slab[:, nclasses:nclasses + seq_len]
    return logits, keys


# ----------------------------------------------------------------------------
# Parameters (deterministic synthetic init, PyTorch-like per-head layout)
# ----------------------------------------------------------------------------
def _sinusoid_table(n_pos, d):
    pos = np.arange(n_pos, dtype=np.float64)[:, None]
    i = np.arange(d, dtype=np.float64)[None, :]
    angle = pos / np.power(10000.0, 2.0 * (i // 2) / d)
    tbl = np.zeros((n_pos, d), dtype=np.float64)
    tbl[:, 0::2] = np.sin(angle[:, 0::2])
    tbl[:, 1::2] = np.cos(angle[:, 1::2])
    tbl[0, :] = 0.0                                    # padding_idx = 0
    return jnp.asarray(tbl, jnp.float32)


def init_params(key, vocab_size, D, n_head, d_k, d_v, d_inner, nclasses,
                depth, n_max_seq=200):
    state = {'k': key}

    def nrm(shape, scale=0.1):
        state['k'], sub = jax.random.split(state['k'])
        return scale * jax.random.normal(sub, shape, jnp.float32)

    params = {
        'emb': nrm((vocab_size, D)).at[0].set(0.0),    # padding_idx = 0
        'pos': _sinusoid_table(n_max_seq + 1, D),
        'layers': [],
        'uq': nrm((D, D), scale=1.0),                  # torch.randn
        'wout': nrm((D, nclasses)),
        'bout': nrm((1, nclasses)),
    }
    for _ in range(depth):
        params['layers'].append({
            'wq': nrm((n_head, D, d_k)),
            'wk': nrm((n_head, D, d_k)),
            'wv': nrm((n_head, D, d_v)),
            'wo': nrm((n_head * d_v, D)),
            'bo': nrm((1, D)),
            'ln1_g': jnp.ones((1, D), jnp.float32),
            'ln1_b': jnp.zeros((1, D), jnp.float32),
            'w1': nrm((D, d_inner)),
            'b1': nrm((1, d_inner)),
            'w2': nrm((d_inner, D)),
            'b2': nrm((1, D)),
            'ln2_g': jnp.ones((1, D), jnp.float32),
            'ln2_b': jnp.zeros((1, D), jnp.float32),
        })
    return params


def pack_params(params, nclasses, T):
    """Pack all weights into a handful of lane-friendly slabs:
       wslab : (depth, qkv_rows + 2*D + d_inner, max(D, d_inner)) pre-transposed weight mats
       colp  : (depth, 6*D + d_inner, 1)                          bias / LN vectors as columns
       head  : (D + 8 + B*T, 128)                                 wout | bout | alpha placement
       uq    : (D, D)
    """
    layers = params['layers']
    depth = len(layers)
    n_head, D, d_k = layers[0]['wq'].shape
    d_v = layers[0]['wv'].shape[2]
    d_inner = layers[0]['w1'].shape[1]
    B = D                                  # required by the reference broadcast
    N = B * T
    qkv_rows = n_head * (2 * d_k + d_v)
    w_rows = qkv_rows + 2 * D + d_inner
    w_lanes = max(D, d_inner)

    wslab = np.zeros((depth, w_rows, w_lanes), np.float32)
    colp = np.zeros((depth, 6 * D + d_inner, 1), np.float32)
    for l, lp in enumerate(layers):
        wqkv = np.concatenate(
            [np.asarray(lp['wq'][h]) for h in range(n_head)]
            + [np.asarray(lp['wk'][h]) for h in range(n_head)]
            + [np.asarray(lp['wv'][h]) for h in range(n_head)], axis=1)  # (D, qkv_rows)
        r = 0
        wslab[l, r:r + qkv_rows, :D] = wqkv.T;                      r += qkv_rows
        wslab[l, r:r + D, :n_head * d_v] = np.asarray(lp['wo']).T;  r += D
        wslab[l, r:r + d_inner, :D] = np.asarray(lp['w1']).T;       r += d_inner
        wslab[l, r:r + D, :d_inner] = np.asarray(lp['w2']).T
        c = 0
        for name, rows in (('bo', D), ('ln1_g', D), ('ln1_b', D), ('b1', d_inner),
                           ('b2', D), ('ln2_g', D), ('ln2_b', D)):
            colp[l, c:c + rows, 0] = np.asarray(lp[name]).reshape(-1)
            c += rows

    head = np.zeros((D + 8 + N, SLAB_WIDTH), np.float32)
    head[0:D, :nclasses] = np.asarray(params['wout'])
    head[D, :nclasses] = np.asarray(params['bout']).reshape(-1)
    n = np.arange(N)
    head[D + 8 + n, nclasses + (n % T)] = 1.0

    return {'wslab': jnp.asarray(wslab), 'colp': jnp.asarray(colp),
            'head': jnp.asarray(head), 'uq': params['uq']}


def build_bias_slab(lengths, B, T):
    """(B*T + B, B*T) additive mask slab.
       rows [0, B*T)     : block-diagonal self-attention mask (0 valid / -1e30)
       rows [B*T, B*T+B) : per-batch pooling mask over the flattened tokens."""
    N = B * T
    n = jnp.arange(N, dtype=jnp.int32)
    batch_of = n // T
    key_valid = (n % T) < lengths[batch_of]                       # (N,)
    same_batch = batch_of[:, None] == batch_of[None, :]           # (N, N)
    attn_bias = jnp.where(same_batch & key_valid[None, :], 0.0,
                          VERY_NEGATIVE_NUMBER).astype(jnp.float32)
    b = jnp.arange(B, dtype=jnp.int32)
    pool_bias = jnp.where((batch_of[None, :] == b[:, None]) & key_valid[None, :],
                          0.0, VERY_NEGATIVE_NUMBER).astype(jnp.float32)
    return jnp.concatenate([attn_bias, pool_bias], axis=0)


# ----------------------------------------------------------------------------
# Model glue (embedding lookup in plain JAX) + pure-JAX reference
# ----------------------------------------------------------------------------
def _embed(params, tokens, lengths):
    T = tokens.shape[1]
    t_idx = jnp.arange(T, dtype=jnp.int32)[None, :]
    valid = t_idx < lengths[:, None]
    pos_idx = jnp.where(valid, t_idx + 1, 0)           # 1-based positions, 0 for PAD
    # TODO(synk): embedding / positional-table gathers stay in plain JAX (no
    # clean small-shape Pallas gather); everything else runs in the fused kernel.
    x = params['emb'][tokens] + params['pos'][pos_idx]  # (B, T, D)
    mask = valid.astype(jnp.float32)
    return x, mask


def model_forward(params, packed, tokens, lengths, n_head, d_k, d_v, d_inner,
                  nclasses):
    x, _ = _embed(params, tokens, lengths)               # (B, T, D)
    B, T, D = x.shape
    # Layout plumbing in the wrapper (free XLA): flatten + transpose to the
    # lane-dense (D, B*T) layout the kernel computes in; build the masks once.
    xT = x.reshape(B * T, D).T
    bias_slab = build_bias_slab(lengths, B, T)
    return fused_forward(xT, bias_slab, packed, depth=len(params['layers']),
                         n_head=n_head, d_k=d_k, d_v=d_v, d_inner=d_inner,
                         seq_len=T, nclasses=nclasses)


def reference_forward(params, tokens, lengths, n_head, d_k, d_v):
    """Pure-JAX reference using the original per-head weight layout."""
    x, mask = _embed(params, tokens, lengths)
    B, T, D = x.shape
    key_bias = (1.0 - mask) * VERY_NEGATIVE_NUMBER
    scale = 1.0 / np.sqrt(d_k)
    for lp in params['layers']:
        xf = x.reshape(B * T, D)
        heads = []
        for h in range(n_head):
            q = (xf @ lp['wq'][h]).reshape(B, T, d_k)
            k = (xf @ lp['wk'][h]).reshape(B, T, d_k)
            v = (xf @ lp['wv'][h]).reshape(B, T, d_v)
            s = jnp.einsum('btk,bsk->bts', q, k) * scale + key_bias[:, None, :]
            p = jax.nn.softmax(s, axis=-1)
            heads.append(jnp.einsum('bts,bsv->btv', p, v))
        ctx = jnp.concatenate(heads, axis=-1).reshape(B * T, n_head * d_v)
        y = (ctx @ lp['wo'] + lp['bo']).reshape(B, T, D) + x
        x = _layer_norm_rows(y, lp['ln1_g'], lp['ln1_b'])
        xf = x.reshape(B * T, D)
        hfc = jnp.maximum(xf @ lp['w1'] + lp['b1'], 0.0)
        y = (hfc @ lp['w2'] + lp['b2']).reshape(B, T, D) + x
        x = _layer_norm_rows(y, lp['ln2_g'], lp['ln2_b'])
    keys_raw = jnp.sum(params['uq'][:, None, :] * x, axis=-1)   # (B, T)
    alpha = jax.nn.softmax(keys_raw + key_bias, axis=-1)
    pooled = jnp.sum(alpha[:, :, None] * x, axis=1)
    logits = pooled @ params['wout'] + params['bout']
    return logits, alpha


# ----------------------------------------------------------------------------
if __name__ == "__main__":
    # Small, self-consistent shapes.  NOTE: the reference code's
    # universal_query broadcast requires batch_size == hidden_size.
    vocab_size = 50
    hidden = 16          # d_model == d_word_vec
    n_head, d_k, d_v = 2, 8, 8
    d_inner = 32
    nclasses = 5
    depth = 2
    B, T = hidden, 8     # B == hidden_size (see note above); B*T = 128 lanes

    key = jax.random.PRNGKey(0)
    kp, kt, kl = jax.random.split(key, 3)

    params = init_params(kp, vocab_size, hidden, n_head, d_k, d_v,
                         d_inner, nclasses, depth)
    packed = pack_params(params, nclasses=nclasses, T=T)

    lengths = jax.random.randint(kl, (B,), 3, T + 1).astype(jnp.int32)
    lengths = lengths.at[0].set(T)                      # max(lengths) == T
    tokens = jax.random.randint(kt, (B, T), 1, vocab_size).astype(jnp.int32)
    tokens = jnp.where(jnp.arange(T, dtype=jnp.int32)[None, :] < lengths[:, None],
                       tokens, 0)                       # pad with PAD=0

    logits, keys = model_forward(params, packed, tokens, lengths,
                                 n_head, d_k, d_v, d_inner, nclasses)
    jax.block_until_ready((logits, keys))
    assert logits.shape == (B, nclasses) and keys.shape == (B, T)

    # correctness check vs pure-JAX reference (approx reciprocal is used only
    # inside the attention softmaxes; pooling alpha is exact)
    ref_logits, ref_keys = reference_forward(params, tokens, lengths,
                                             n_head, d_k, d_v)
    np.testing.assert_allclose(np.asarray(logits), np.asarray(ref_logits),
                               rtol=2e-2, atol=2e-2)
    np.testing.assert_allclose(np.asarray(keys), np.asarray(ref_keys),
                               rtol=2e-2, atol=2e-2)
    print("KERNEL_OK")
</pallas_src>

<mosaic_0001>
module attributes {stable_mosaic.version = 11 : i64} {
  func.func @_fused_forward_kernel(%arg0: memref<16x128xf32, #tpu.memory_space<vmem>>, %arg1: memref<144x128xf32, #tpu.memory_space<vmem>>, %arg2: memref<2x112x32xf32, #tpu.memory_space<vmem>>, %arg3: memref<2x128x1xf32, #tpu.memory_space<vmem>>, %arg4: memref<16x16xf32, #tpu.memory_space<vmem>>, %arg5: memref<152x128xf32, #tpu.memory_space<vmem>>, %arg6: memref<16x128xf32, #tpu.memory_space<vmem>>) attributes {dimension_semantics = [], scalar_prefetch = 0 : i64, scratch_operands = 0 : i64, tpu.core_type = #tpu.core_type<tc>} {
    %c0 = arith.constant 0 : index
    %c0_0 = arith.constant 0 : index
    %0 = vector.load %arg0[%c0, %c0_0] : memref<16x128xf32, #tpu.memory_space<vmem>>, vector<16x128xf32>
    %c0_1 = arith.constant 0 : index
    %c0_2 = arith.constant 0 : index
    %c0_3 = arith.constant 0 : index
    %1 = vector.load %arg2[%c0_1, %c0_2, %c0_3] : memref<2x112x32xf32, #tpu.memory_space<vmem>>, vector<1x112x32xf32>
    %2 = vector.shape_cast %1 : vector<1x112x32xf32> to vector<112x32xf32>
    %c0_4 = arith.constant 0 : index
    %c0_5 = arith.constant 0 : index
    %c0_6 = arith.constant 0 : index
    %3 = vector.load %arg3[%c0_4, %c0_5, %c0_6] : memref<2x128x1xf32, #tpu.memory_space<vmem>>, vector<1x128x1xf32>
    %4 = vector.shape_cast %3 : vector<1x128x1xf32> to vector<128x1xf32>
    %5 = vector.extract_strided_slice %2 {offsets = [0, 0], sizes = [48, 16], strides = [1, 1]} : vector<112x32xf32> to vector<48x16xf32>
    %6 = vector.extract_strided_slice %2 {offsets = [48, 0], sizes = [16, 16], strides = [1, 1]} : vector<112x32xf32> to vector<16x16xf32>
    %7 = vector.extract_strided_slice %2 {offsets = [64, 0], sizes = [32, 16], strides = [1, 1]} : vector<112x32xf32> to vector<32x16xf32>
    %8 = vector.extract_strided_slice %2 {offsets = [96, 0], sizes = [16, 32], strides = [1, 1]} : vector<112x32xf32> to vector<16x32xf32>
    %9 = vector.extract_strided_slice %4 {offsets = [0, 0], sizes = [16, 1], strides = [1, 1]} : vector<128x1xf32> to vector<16x1xf32>
    %10 = vector.extract_strided_slice %4 {offsets = [16, 0], sizes = [16, 1], strides = [1, 1]} : vector<128x1xf32> to vector<16x1xf32>
    %11 = vector.extract_strided_slice %4 {offsets = [32, 0], sizes = [16, 1], strides = [1, 1]} : vector<128x1xf32> to vector<16x1xf32>
    %12 = vector.extract_strided_slice %4 {offsets = [48, 0], sizes = [32, 1], strides = [1, 1]} : vector<128x1xf32> to vector<32x1xf32>
    %13 = vector.extract_strided_slice %4 {offsets = [80, 0], sizes = [16, 1], strides = [1, 1]} : vector<128x1xf32> to vector<16x1xf32>
    %14 = vector.extract_strided_slice %4 {offsets = [96, 0], sizes = [16, 1], strides = [1, 1]} : vector<128x1xf32> to vector<16x1xf32>
    %15 = vector.extract_strided_slice %4 {offsets = [112, 0], sizes = [16, 1], strides = [1, 1]} : vector<128x1xf32> to vector<16x1xf32>
    %cst = arith.constant dense<0.000000e+00> : vector<48x128xf32>
    %16 = tpu.matmul %5, %0, %cst {dimension_numbers = #tpu.dot_dimension_numbers<[1], [0], [0], [1], [0, 0, 1, 1], [], []>} : vector<48x16xf32>, vector<16x128xf32>, vector<48x128xf32> -> vector<48x128xf32>
    %17 = vector.extract_strided_slice %16 {offsets = [0, 0], sizes = [8, 128], strides = [1, 1]} : vector<48x128xf32> to vector<8x128xf32>
    %18 = vector.extract_strided_slice %16 {offsets = [16, 0], sizes = [8, 128], strides = [1, 1]} : vector<48x128xf32> to vector<8x128xf32>
    %19 = vector.extract_strided_slice %16 {offsets = [32, 0], sizes = [8, 128], strides = [1, 1]} : vector<48x128xf32> to vector<8x128xf32>
    %cst_7 = arith.constant dense<0.000000e+00> : vector<128x128xf32>
    %20 = tpu.matmul %17, %18, %cst_7 {dimension_numbers = #tpu.dot_dimension_numbers<[0], [0], [1], [1], [0, 1, 1, 1], [], []>} : vector<8x128xf32>, vector<8x128xf32>, vector<128x128xf32> -> vector<128x128xf32>
    %cst_8 = arith.constant 0.353553385 : f32
    %21 = vector.broadcast %cst_8 : f32 to vector<128x128xf32>
    %22 = arith.mulf %20, %21 : vector<128x128xf32>
    %c0_9 = arith.constant 0 : index
    %c0_10 = arith.constant 0 : index
    %23 = vector.load %arg1[%c0_9, %c0_10] : memref<144x128xf32, #tpu.memory_space<vmem>>, vector<128x128xf32>
    %24 = arith.addf %22, %23 : vector<128x128xf32>
    %cst_11 = arith.constant dense<0xFF800000> : vector<128xf32>
    %25 = vector.multi_reduction <maximumf>, %24, %cst_11 [1] : vector<128x128xf32> to vector<128xf32>
    %26 = vector.shape_cast %25 : vector<128xf32> to vector<128x1xf32>
    %27 = vector.broadcast %26 : vector<128x1xf32> to vector<128x128xf32>
    %28 = arith.subf %24, %27 : vector<128x128xf32>
    %29 = math.exp %28 : vector<128x128xf32>
    %cst_12 = arith.constant dense<0.000000e+00> : vector<128xf32>
    %30 = vector.multi_reduction <add>, %29, %cst_12 [1] : vector<128x128xf32> to vector<128xf32>
    %31 = vector.shape_cast %30 : vector<128xf32> to vector<128x1xf32>
    %32 = tpu.reciprocal %31 {approx = true} : vector<128x1xf32> -> vector<128x1xf32>
    %33 = vector.broadcast %32 : vector<128x1xf32> to vector<128x128xf32>
    %34 = arith.mulf %29, %33 : vector<128x128xf32>
    %cst_13 = arith.constant dense<0.000000e+00> : vector<8x128xf32>
    %35 = tpu.matmul %19, %34, %cst_13 {dimension_numbers = #tpu.dot_dimension_numbers<[1], [1], [0], [0], [0, 0, 1, 0], [], []>} : vector<8x128xf32>, vector<128x128xf32>, vector<8x128xf32> -> vector<8x128xf32>
    %36 = vector.extract_strided_slice %16 {offsets = [8, 0], sizes = [8, 128], strides = [1, 1]} : vector<48x128xf32> to vector<8x128xf32>
    %37 = vector.extract_strided_slice %16 {offsets = [24, 0], sizes = [8, 128], strides = [1, 1]} : vector<48x128xf32> to vector<8x128xf32>
    %38 = vector.extract_strided_slice %16 {offsets = [40, 0], sizes = [8, 128], strides = [1, 1]} : vector<48x128xf32> to vector<8x128xf32>
    %cst_14 = arith.constant dense<0.000000e+00> : vector<128x128xf32>
    %39 = tpu.matmul %36, %37, %cst_14 {dimension_numbers = #tpu.dot_dimension_numbers<[0], [0], [1], [1], [0, 1, 1, 1], [], []>} : vector<8x128xf32>, vector<8x128xf32>, vector<128x128xf32> -> vector<128x128xf32>
    %cst_15 = arith.constant 0.353553385 : f32
    %40 = vector.broadcast %cst_15 : f32 to vector<128x128xf32>
    %41 = arith.mulf %39, %40 : vector<128x128xf32>
    %c0_16 = arith.constant 0 : index
    %c0_17 = arith.constant 0 : index
    %42 = vector.load %arg1[%c0_16, %c0_17] : memref<144x128xf32, #tpu.memory_space<vmem>>, vector<128x128xf32>
    %43 = arith.addf %41, %42 : vector<128x128xf32>
    %cst_18 = arith.constant dense<0xFF800000> : vector<128xf32>
    %44 = vector.multi_reduction <maximumf>, %43, %cst_18 [1] : vector<128x128xf32> to vector<128xf32>
    %45 = vector.shape_cast %44 : vector<128xf32> to vector<128x1xf32>
    %46 = vector.broadcast %45 : vector<128x1xf32> to vector<128x128xf32>
    %47 = arith.subf %43, %46 : vector<128x128xf32>
    %48 = math.exp %47 : vector<128x128xf32>
    %cst_19 = arith.constant dense<0.000000e+00> : vector<128xf32>
    %49 = vector.multi_reduction <add>, %48, %cst_19 [1] : vector<128x128xf32> to vector<128xf32>
    %50 = vector.shape_cast %49 : vector<128xf32> to vector<128x1xf32>
    %51 = tpu.reciprocal %50 {approx = true} : vector<128x1xf32> -> vector<128x1xf32>
    %52 = vector.broadcast %51 : vector<128x1xf32> to vector<128x128xf32>
    %53 = arith.mulf %48, %52 : vector<128x128xf32>
    %cst_20 = arith.constant dense<0.000000e+00> : vector<8x128xf32>
    %54 = tpu.matmul %38, %53, %cst_20 {dimension_numbers = #tpu.dot_dimension_numbers<[1], [1], [0], [0], [0, 0, 1, 0], [], []>} : vector<8x128xf32>, vector<128x128xf32>, vector<8x128xf32> -> vector<8x128xf32>
    %55 = tpu.concatenate %35, %54 in 0 : vector<8x128xf32>, vector<8x128xf32> -> vector<16x128xf32>
    %cst_21 = arith.constant dense<0.000000e+00> : vector<16x128xf32>
    %56 = tpu.matmul %6, %55, %cst_21 {dimension_numbers = #tpu.dot_dimension_numbers<[1], [0], [0], [1], [0, 0, 1, 1], [], []>} : vector<16x16xf32>, vector<16x128xf32>, vector<16x128xf32> -> vector<16x128xf32>
    %57 = vector.broadcast %9 : vector<16x1xf32> to vector<16x128xf32>
    %58 = arith.addf %56, %57 : vector<16x128xf32>
    %59 = arith.addf %58, %0 : vector<16x128xf32>
    %cst_22 = arith.constant dense<0.000000e+00> : vector<128xf32>
    %60 = vector.multi_reduction <add>, %59, %cst_22 [0] : vector<16x128xf32> to vector<128xf32>
    %61 = vector.shape_cast %60 : vector<128xf32> to vector<1x128xf32>
    %cst_23 = arith.constant 1.600000e+01 : f32
    %62 = vector.broadcast %cst_23 : f32 to vector<1x128xf32>
    %63 = arith.divf %61, %62 : vector<1x128xf32>
    %64 = vector.broadcast %63 : vector<1x128xf32> to vector<16x128xf32>
    %65 = arith.subf %59, %64 : vector<16x128xf32>
    %66 = arith.mulf %65, %65 : vector<16x128xf32>
    %cst_24 = arith.constant dense<0.000000e+00> : vector<128xf32>
    %67 = vector.multi_reduction <add>, %66, %cst_24 [0] : vector<16x128xf32> to vector<128xf32>
    %68 = vector.shape_cast %67 : vector<128xf32> to vector<1x128xf32>
    %cst_25 = arith.constant 1.600000e+01 : f32
    %69 = vector.broadcast %cst_25 : f32 to vector<1x128xf32>
    %70 = arith.divf %68, %69 : vector<1x128xf32>
    %71 = vector.broadcast %63 : vector<1x128xf32> to vector<16x128xf32>
    %72 = arith.subf %59, %71 : vector<16x128xf32>
    %cst_26 = arith.constant 9.99999974E-6 : f32
    %73 = vector.broadcast %cst_26 : f32 to vector<1x128xf32>
    %74 = arith.addf %70, %73 : vector<1x128xf32>
    %75 = math.rsqrt %74 : vector<1x128xf32>
    %76 = vector.broadcast %75 : vector<1x128xf32> to vector<16x128xf32>
    %77 = arith.mulf %72, %76 : vector<16x128xf32>
    %78 = vector.broadcast %10 : vector<16x1xf32> to vector<16x128xf32>
    %79 = arith.mulf %77, %78 : vector<16x128xf32>
    %80 = vector.broadcast %11 : vector<16x1xf32> to vector<16x128xf32>
    %81 = arith.addf %79, %80 : vector<16x128xf32>
    %cst_27 = arith.constant dense<0.000000e+00> : vector<32x128xf32>
    %82 = tpu.matmul %7, %81, %cst_27 {dimension_numbers = #tpu.dot_dimension_numbers<[1], [0], [0], [1], [0, 0, 1, 1], [], []>} : vector<32x16xf32>, vector<16x128xf32>, vector<32x128xf32> -> vector<32x128xf32>
    %83 = vector.broadcast %12 : vector<32x1xf32> to vector<32x128xf32>
    %84 = arith.addf %82, %83 : vector<32x128xf32>
    %cst_28 = arith.constant 0.000000e+00 : f32
    %85 = vector.broadcast %cst_28 : f32 to vector<32x128xf32>
    %86 = arith.maximumf %84, %85 : vector<32x128xf32>
    %cst_29 = arith.constant dense<0.000000e+00> : vector<16x128xf32>
    %87 = tpu.matmul %8, %86, %cst_29 {dimension_numbers = #tpu.dot_dimension_numbers<[1], [0], [0], [1], [0, 0, 1, 1], [], []>} : vector<16x32xf32>, vector<32x128xf32>, vector<16x128xf32> -> vector<16x128xf32>
    %88 = vector.broadcast %13 : vector<16x1xf32> to vector<16x128xf32>
    %89 = arith.addf %87, %88 : vector<16x128xf32>
    %90 = arith.addf %89, %81 : vector<16x128xf32>
    %cst_30 = arith.constant dense<0.000000e+00> : vector<128xf32>
    %91 = vector.multi_reduction <add>, %90, %cst_30 [0] : vector<16x128xf32> to vector<128xf32>
    %92 = vector.shape_cast %91 : vector<128xf32> to vector<1x128xf32>
    %cst_31 = arith.constant 1.600000e+01 : f32
    %93 = vector.broadcast %cst_31 : f32 to vector<1x128xf32>
    %94 = arith.divf %92, %93 : vector<1x128xf32>
    %95 = vector.broadcast %94 : vector<1x128xf32> to vector<16x128xf32>
    %96 = arith.subf %90, %95 : vector<16x128xf32>
    %97 = arith.mulf %96, %96 : vector<16x128xf32>
    %cst_32 = arith.constant dense<0.000000e+00> : vector<128xf32>
    %98 = vector.multi_reduction <add>, %97, %cst_32 [0] : vector<16x128xf32> to vector<128xf32>
    %99 = vector.shape_cast %98 : vector<128xf32> to vector<1x128xf32>
    %cst_33 = arith.constant 1.600000e+01 : f32
    %100 = vector.broadcast %cst_33 : f32 to vector<1x128xf32>
    %101 = arith.divf %99, %100 : vector<1x128xf32>
    %102 = vector.broadcast %94 : vector<1x128xf32> to vector<16x128xf32>
    %103 = arith.subf %90, %102 : vector<16x128xf32>
    %cst_34 = arith.constant 9.99999974E-6 : f32
    %104 = vector.broadcast %cst_34 : f32 to vector<1x128xf32>
    %105 = arith.addf %101, %104 : vector<1x128xf32>
    %106 = math.rsqrt %105 : vector<1x128xf32>
    %107 = vector.broadcast %106 : vector<1x128xf32> to vector<16x128xf32>
    %108 = arith.mulf %103, %107 : vector<16x128xf32>
    %109 = vector.broadcast %14 : vector<16x1xf32> to vector<16x128xf32>
    %110 = arith.mulf %108, %109 : vector<16x128xf32>
    %111 = vector.broadcast %15 : vector<16x1xf32> to vector<16x128xf32>
    %112 = arith.addf %110, %111 : vector<16x128xf32>
    %c1 = arith.constant 1 : index
    %c0_35 = arith.constant 0 : index
    %c0_36 = arith.constant 0 : index
    %113 = vector.load %arg2[%c1, %c0_35, %c0_36] : memref<2x112x32xf32, #tpu.memory_space<vmem>>, vector<1x112x32xf32>
    %114 = vector.shape_cast %113 : vector<1x112x32xf32> to vector<112x32xf32>
    %c1_37 = arith.constant 1 : index
    %c0_38 = arith.constant 0 : index
    %c0_39 = arith.constant 0 : index
    %115 = vector.load %arg3[%c1_37, %c0_38, %c0_39] : memref<2x128x1xf32, #tpu.memory_space<vmem>>, vector<1x128x1xf32>
    %116 = vector.shape_cast %115 : vector<1x128x1xf32> to vector<128x1xf32>
    %117 = vector.extract_strided_slice %114 {offsets = [0, 0], sizes = [48, 16], strides = [1, 1]} : vector<112x32xf32> to vector<48x16xf32>
    %118 = vector.extract_strided_slice %114 {offsets = [48, 0], sizes = [16, 16], strides = [1, 1]} : vector<112x32xf32> to vector<16x16xf32>
    %119 = vector.extract_strided_slice %114 {offsets = [64, 0], sizes = [32, 16], strides = [1, 1]} : vector<112x32xf32> to vector<32x16xf32>
    %120 = vector.extract_strided_slice %114 {offsets = [96, 0], sizes = [16, 32], strides = [1, 1]} : vector<112x32xf32> to vector<16x32xf32>
    %121 = vector.extract_strided_slice %116 {offsets = [0, 0], sizes = [16, 1], strides = [1, 1]} : vector<128x1xf32> to vector<16x1xf32>
    %122 = vector.extract_strided_slice %116 {offsets = [16, 0], sizes = [16, 1], strides = [1, 1]} : vector<128x1xf32> to vector<16x1xf32>
    %123 = vector.extract_strided_slice %116 {offsets = [32, 0], sizes = [16, 1], strides = [1, 1]} : vector<128x1xf32> to vector<16x1xf32>
    %124 = vector.extract_strided_slice %116 {offsets = [48, 0], sizes = [32, 1], strides = [1, 1]} : vector<128x1xf32> to vector<32x1xf32>
    %125 = vector.extract_strided_slice %116 {offsets = [80, 0], sizes = [16, 1], strides = [1, 1]} : vector<128x1xf32> to vector<16x1xf32>
    %126 = vector.extract_strided_slice %116 {offsets = [96, 0], sizes = [16, 1], strides = [1, 1]} : vector<128x1xf32> to vector<16x1xf32>
    %127 = vector.extract_strided_slice %116 {offsets = [112, 0], sizes = [16, 1], strides = [1, 1]} : vector<128x1xf32> to vector<16x1xf32>
    %cst_40 = arith.constant dense<0.000000e+00> : vector<48x128xf32>
    %128 = tpu.matmul %117, %112, %cst_40 {dimension_numbers = #tpu.dot_dimension_numbers<[1], [0], [0], [1], [0, 0, 1, 1], [], []>} : vector<48x16xf32>, vector<16x128xf32>, vector<48x128xf32> -> vector<48x128xf32>
    %129 = vector.extract_strided_slice %128 {offsets = [0, 0], sizes = [8, 128], strides = [1, 1]} : vector<48x128xf32> to vector<8x128xf32>
    %130 = vector.extract_strided_slice %128 {offsets = [16, 0], sizes = [8, 128], strides = [1, 1]} : vector<48x128xf32> to vector<8x128xf32>
    %131 = vector.extract_strided_slice %128 {offsets = [32, 0], sizes = [8, 128], strides = [1, 1]} : vector<48x128xf32> to vector<8x128xf32>
    %cst_41 = arith.constant dense<0.000000e+00> : vector<128x128xf32>
    %132 = tpu.matmul %129, %130, %cst_41 {dimension_numbers = #tpu.dot_dimension_numbers<[0], [0], [1], [1], [0, 1, 1, 1], [], []>} : vector<8x128xf32>, vector<8x128xf32>, vector<128x128xf32> -> vector<128x128xf32>
    %cst_42 = arith.constant 0.353553385 : f32
    %133 = vector.broadcast %cst_42 : f32 to vector<128x128xf32>
    %134 = arith.mulf %132, %133 : vector<128x128xf32>
    %c0_43 = arith.constant 0 : index
    %c0_44 = arith.constant 0 : index
    %135 = vector.load %arg1[%c0_43, %c0_44] : memref<144x128xf32, #tpu.memory_space<vmem>>, vector<128x128xf32>
    %136 = arith.addf %134, %135 : vector<128x128xf32>
    %cst_45 = arith.constant dense<0xFF800000> : vector<128xf32>
    %137 = vector.multi_reduction <maximumf>, %136, %cst_45 [1] : vector<128x128xf32> to vector<128xf32>
    %138 = vector.shape_cast %137 : vector<128xf32> to vector<128x1xf32>
    %139 = vector.broadcast %138 : vector<128x1xf32> to vector<128x128xf32>
    %140 = arith.subf %136, %139 : vector<128x128xf32>
    %141 = math.exp %140 : vector<128x128xf32>
    %cst_46 = arith.constant dense<0.000000e+00> : vector<128xf32>
    %142 = vector.multi_reduction <add>, %141, %cst_46 [1] : vector<128x128xf32> to vector<128xf32>
    %143 = vector.shape_cast %142 : vector<128xf32> to vector<128x1xf32>
    %144 = tpu.reciprocal %143 {approx = true} : vector<128x1xf32> -> vector<128x1xf32>
    %145 = vector.broadcast %144 : vector<128x1xf32> to vector<128x128xf32>
    %146 = arith.mulf %141, %145 : vector<128x128xf32>
    %cst_47 = arith.constant dense<0.000000e+00> : vector<8x128xf32>
    %147 = tpu.matmul %131, %146, %cst_47 {dimension_numbers = #tpu.dot_dimension_numbers<[1], [1], [0], [0], [0, 0, 1, 0], [], []>} : vector<8x128xf32>, vector<128x128xf32>, vector<8x128xf32> -> vector<8x128xf32>
    %148 = vector.extract_strided_slice %128 {offsets = [8, 0], sizes = [8, 128], strides = [1, 1]} : vector<48x128xf32> to vector<8x128xf32>
    %149 = vector.extract_strided_slice %128 {offsets = [24, 0], sizes = [8, 128], strides = [1, 1]} : vector<48x128xf32> to vector<8x128xf32>
    %150 = vector.extract_strided_slice %128 {offsets = [40, 0], sizes = [8, 128], strides = [1, 1]} : vector<48x128xf32> to vector<8x128xf32>
    %cst_48 = arith.constant dense<0.000000e+00> : vector<128x128xf32>
    %151 = tpu.matmul %148, %149, %cst_48 {dimension_numbers = #tpu.dot_dimension_numbers<[0], [0], [1], [1], [0, 1, 1, 1], [], []>} : vector<8x128xf32>, vector<8x128xf32>, vector<128x128xf32> -> vector<128x128xf32>
    %cst_49 = arith.constant 0.353553385 : f32
    %152 = vector.broadcast %cst_49 : f32 to vector<128x128xf32>
    %153 = arith.mulf %151, %152 : vector<128x128xf32>
    %c0_50 = arith.constant 0 : index
    %c0_51 = arith.constant 0 : index
    %154 = vector.load %arg1[%c0_50, %c0_51] : memref<144x128xf32, #tpu.memory_space<vmem>>, vector<128x128xf32>
    %155 = arith.addf %153, %154 : vector<128x128xf32>
    %cst_52 = arith.constant dense<0xFF800000> : vector<128xf32>
    %156 = vector.multi_reduction <maximumf>, %155, %cst_52 [1] : vector<128x128xf32> to vector<128xf32>
    %157 = vector.shape_cast %156 : vector<128xf32> to vector<128x1xf32>
    %158 = vector.broadcast %157 : vector<128x1xf32> to vector<128x128xf32>
    %159 = arith.subf %155, %158 : vector<128x128xf32>
    %160 = math.exp %159 : vector<128x128xf32>
    %cst_53 = arith.constant dense<0.000000e+00> : vector<128xf32>
    %161 = vector.multi_reduction <add>, %160, %cst_53 [1] : vector<128x128xf32> to vector<128xf32>
    %162 = vector.shape_cast %161 : vector<128xf32> to vector<128x1xf32>
    %163 = tpu.reciprocal %162 {approx = true} : vector<128x1xf32> -> vector<128x1xf32>
    %164 = vector.broadcast %163 : vector<128x1xf32> to vector<128x128xf32>
    %165 = arith.mulf %160, %164 : vector<128x128xf32>
    %cst_54 = arith.constant dense<0.000000e+00> : vector<8x128xf32>
    %166 = tpu.matmul %150, %165, %cst_54 {dimension_numbers = #tpu.dot_dimension_numbers<[1], [1], [0], [0], [0, 0, 1, 0], [], []>} : vector<8x128xf32>, vector<128x128xf32>, vector<8x128xf32> -> vector<8x128xf32>
    %167 = tpu.concatenate %147, %166 in 0 : vector<8x128xf32>, vector<8x128xf32> -> vector<16x128xf32>
    %cst_55 = arith.constant dense<0.000000e+00> : vector<16x128xf32>
    %168 = tpu.matmul %118, %167, %cst_55 {dimension_numbers = #tpu.dot_dimension_numbers<[1], [0], [0], [1], [0, 0, 1, 1], [], []>} : vector<16x16xf32>, vector<16x128xf32>, vector<16x128xf32> -> vector<16x128xf32>
    %169 = vector.broadcast %121 : vector<16x1xf32> to vector<16x128xf32>
    %170 = arith.addf %168, %169 : vector<16x128xf32>
    %171 = arith.addf %170, %112 : vector<16x128xf32>
    %cst_56 = arith.constant dense<0.000000e+00> : vector<128xf32>
    %172 = vector.multi_reduction <add>, %171, %cst_56 [0] : vector<16x128xf32> to vector<128xf32>
    %173 = vector.shape_cast %172 : vector<128xf32> to vector<1x128xf32>
    %cst_57 = arith.constant 1.600000e+01 : f32
    %174 = vector.broadcast %cst_57 : f32 to vector<1x128xf32>
    %175 = arith.divf %173, %174 : vector<1x128xf32>
    %176 = vector.broadcast %175 : vector<1x128xf32> to vector<16x128xf32>
    %177 = arith.subf %171, %176 : vector<16x128xf32>
    %178 = arith.mulf %177, %177 : vector<16x128xf32>
    %cst_58 = arith.constant dense<0.000000e+00> : vector<128xf32>
    %179 = vector.multi_reduction <add>, %178, %cst_58 [0] : vector<16x128xf32> to vector<128xf32>
    %180 = vector.shape_cast %179 : vector<128xf32> to vector<1x128xf32>
    %cst_59 = arith.constant 1.600000e+01 : f32
    %181 = vector.broadcast %cst_59 : f32 to vector<1x128xf32>
    %182 = arith.divf %180, %181 : vector<1x128xf32>
    %183 = vector.broadcast %175 : vector<1x128xf32> to vector<16x128xf32>
    %184 = arith.subf %171, %183 : vector<16x128xf32>
    %cst_60 = arith.constant 9.99999974E-6 : f32
    %185 = vector.broadcast %cst_60 : f32 to vector<1x128xf32>
    %186 = arith.addf %182, %185 : vector<1x128xf32>
    %187 = math.rsqrt %186 : vector<1x128xf32>
    %188 = vector.broadcast %187 : vector<1x128xf32> to vector<16x128xf32>
    %189 = arith.mulf %184, %188 : vector<16x128xf32>
    %190 = vector.broadcast %122 : vector<16x1xf32> to vector<16x128xf32>
    %191 = arith.mulf %189, %190 : vector<16x128xf32>
    %192 = vector.broadcast %123 : vector<16x1xf32> to vector<16x128xf32>
    %193 = arith.addf %191, %192 : vector<16x128xf32>
    %cst_61 = arith.constant dense<0.000000e+00> : vector<32x128xf32>
    %194 = tpu.matmul %119, %193, %cst_61 {dimension_numbers = #tpu.dot_dimension_numbers<[1], [0], [0], [1], [0, 0, 1, 1], [], []>} : vector<32x16xf32>, vector<16x128xf32>, vector<32x128xf32> -> vector<32x128xf32>
    %195 = vector.broadcast %124 : vector<32x1xf32> to vector<32x128xf32>
    %196 = arith.addf %194, %195 : vector<32x128xf32>
    %cst_62 = arith.constant 0.000000e+00 : f32
    %197 = vector.broadcast %cst_62 : f32 to vector<32x128xf32>
    %198 = arith.maximumf %196, %197 : vector<32x128xf32>
    %cst_63 = arith.constant dense<0.000000e+00> : vector<16x128xf32>
    %199 = tpu.matmul %120, %198, %cst_63 {dimension_numbers = #tpu.dot_dimension_numbers<[1], [0], [0], [1], [0, 0, 1, 1], [], []>} : vector<16x32xf32>, vector<32x128xf32>, vector<16x128xf32> -> vector<16x128xf32>
    %200 = vector.broadcast %125 : vector<16x1xf32> to vector<16x128xf32>
    %201 = arith.addf %199, %200 : vector<16x128xf32>
    %202 = arith.addf %201, %193 : vector<16x128xf32>
    %cst_64 = arith.constant dense<0.000000e+00> : vector<128xf32>
    %203 = vector.multi_reduction <add>, %202, %cst_64 [0] : vector<16x128xf32> to vector<128xf32>
    %204 = vector.shape_cast %203 : vector<128xf32> to vector<1x128xf32>
    %cst_65 = arith.constant 1.600000e+01 : f32
    %205 = vector.broadcast %cst_65 : f32 to vector<1x128xf32>
    %206 = arith.divf %204, %205 : vector<1x128xf32>
    %207 = vector.broadcast %206 : vector<1x128xf32> to vector<16x128xf32>
    %208 = arith.subf %202, %207 : vector<16x128xf32>
    %209 = arith.mulf %208, %208 : vector<16x128xf32>
    %cst_66 = arith.constant dense<0.000000e+00> : vector<128xf32>
    %210 = vector.multi_reduction <add>, %209, %cst_66 [0] : vector<16x128xf32> to vector<128xf32>
    %211 = vector.shape_cast %210 : vector<128xf32> to vector<1x128xf32>
    %cst_67 = arith.constant 1.600000e+01 : f32
    %212 = vector.broadcast %cst_67 : f32 to vector<1x128xf32>
    %213 = arith.divf %211, %212 : vector<1x128xf32>
    %214 = vector.broadcast %206 : vector<1x128xf32> to vector<16x128xf32>
    %215 = arith.subf %202, %214 : vector<16x128xf32>
    %cst_68 = arith.constant 9.99999974E-6 : f32
    %216 = vector.broadcast %cst_68 : f32 to vector<1x128xf32>
    %217 = arith.addf %213, %216 : vector<1x128xf32>
    %218 = math.rsqrt %217 : vector<1x128xf32>
    %219 = vector.broadcast %218 : vector<1x128xf32> to vector<16x128xf32>
    %220 = arith.mulf %215, %219 : vector<16x128xf32>
    %221 = vector.broadcast %126 : vector<16x1xf32> to vector<16x128xf32>
    %222 = arith.mulf %220, %221 : vector<16x128xf32>
    %223 = vector.broadcast %127 : vector<16x1xf32> to vector<16x128xf32>
    %224 = arith.addf %222, %223 : vector<16x128xf32>
    %c0_69 = arith.constant 0 : index
    %c0_70 = arith.constant 0 : index
    %225 = vector.load %arg4[%c0_69, %c0_70] : memref<16x16xf32, #tpu.memory_space<vmem>>, vector<16x16xf32>
    %cst_71 = arith.constant dense<0.000000e+00> : vector<16x128xf32>
    %226 = tpu.matmul %225, %224, %cst_71 {dimension_numbers = #tpu.dot_dimension_numbers<[1], [0], [0], [1], [0, 0, 1, 1], [], []>} : vector<16x16xf32>, vector<16x128xf32>, vector<16x128xf32> -> vector<16x128xf32>
    %c128 = arith.constant 128 : index
    %c0_72 = arith.constant 0 : index
    %227 = vector.load %arg1[%c128, %c0_72] : memref<144x128xf32, #tpu.memory_space<vmem>>, vector<16x128xf32>
    %228 = arith.addf %226, %227 : vector<16x128xf32>
    %cst_73 = arith.constant dense<0xFF800000> : vector<16xf32>
    %229 = vector.multi_reduction <maximumf>, %228, %cst_73 [1] : vector<16x128xf32> to vector<16xf32>
    %230 = vector.shape_cast %229 : vector<16xf32> to vector<16x1xf32>
    %231 = vector.broadcast %230 : vector<16x1xf32> to vector<16x128xf32>
    %232 = arith.subf %228, %231 : vector<16x128xf32>
    %233 = math.exp %232 : vector<16x128xf32>
    %cst_74 = arith.constant dense<0.000000e+00> : vector<16xf32>
    %234 = vector.multi_reduction <add>, %233, %cst_74 [1] : vector<16x128xf32> to vector<16xf32>
    %235 = vector.shape_cast %234 : vector<16xf32> to vector<16x1xf32>
    %236 = vector.broadcast %235 : vector<16x1xf32> to vector<16x128xf32>
    %237 = arith.divf %233, %236 : vector<16x128xf32>
    %cst_75 = arith.constant dense<0.000000e+00> : vector<16x16xf32>
    %238 = tpu.matmul %237, %224, %cst_75 {dimension_numbers = #tpu.dot_dimension_numbers<[1], [1], [0], [0], [0, 0, 1, 0], [], []>} : vector<16x128xf32>, vector<16x128xf32>, vector<16x16xf32> -> vector<16x16xf32>
    %c0_76 = arith.constant 0 : index
    %c0_77 = arith.constant 0 : index
    %239 = vector.load %arg5[%c0_76, %c0_77] : memref<152x128xf32, #tpu.memory_space<vmem>>, vector<16x128xf32>
    %c16 = arith.constant 16 : index
    %c0_78 = arith.constant 0 : index
    %240 = vector.load %arg5[%c16, %c0_78] : memref<152x128xf32, #tpu.memory_space<vmem>>, vector<1x128xf32>
    %c24 = arith.constant 24 : index
    %c0_79 = arith.constant 0 : index
    %241 = vector.load %arg5[%c24, %c0_79] : memref<152x128xf32, #tpu.memory_space<vmem>>, vector<128x128xf32>
    %cst_80 = arith.constant dense<0.000000e+00> : vector<16x128xf32>
    %242 = tpu.matmul %238, %239, %cst_80 {dimension_numbers = #tpu.dot_dimension_numbers<[1], [0], [0], [1], [0, 0, 1, 1], [], []>} : vector<16x16xf32>, vector<16x128xf32>, vector<16x128xf32> -> vector<16x128xf32>
    %243 = vector.broadcast %240 : vector<1x128xf32> to vector<16x128xf32>
    %244 = arith.addf %242, %243 : vector<16x128xf32>
    %cst_81 = arith.constant dense<0.000000e+00> : vector<16x128xf32>
    %245 = tpu.matmul %237, %241, %cst_81 {dimension_numbers = #tpu.dot_dimension_numbers<[1], [0], [0], [1], [0, 0, 1, 1], [], []>} : vector<16x128xf32>, vector<128x128xf32>, vector<16x128xf32> -> vector<16x128xf32>
    %246 = arith.addf %244, %245 : vector<16x128xf32>
    %c0_82 = arith.constant 0 : index
    %c0_83 = arith.constant 0 : index
    %247 = vector.load %arg6[%c0_82, %c0_83] : memref<16x128xf32, #tpu.memory_space<vmem>>, vector<16x128xf32>
    tpu.vector_store %arg6[%c0_82, %c0_83], %246 {strides = array<i32>} : memref<16x128xf32, #tpu.memory_space<vmem>>, vector<16x128xf32>,
    return
  }
}

</mosaic_0001>

<bundles_post_ra>
// kernel: tpu_custom_call.1
= control target key start
LH: loop header
LB: loop body
LE: loop exit
PB: predicated region body
PF: predicated region fallthrough
CT: control target
= control target key end

     0   :  { %vm56_vm0 = vcmask 130048   ;;  %s5765_s0 = inlined_call_operand.vmem [shape: f32[16,128], index: 0, kind: input, shape index: {}]   ;;  %s5766_s1 = inlined_call_operand.vmem [shape: f32[144,128], index: 1, kind: input, shape index: {}]   ;;  %s5767_s2 = inlined_call_operand.vmem [shape: f32[2,112,32], index: 2, kind: input, shape index: {}]   ;;  %s5768_s3 = inlined_call_operand.vmem [shape: f32[2,128,1], index: 3, kind: input, shape index: {}]   ;;  %s5769_s4 = inlined_call_operand.vmem [shape: f32[16,16], index: 4, kind: input, shape index: {}]   ;;  %s5770_s5 = inlined_call_operand.vmem [shape: f32[152,128], index: 5, kind: input, shape index: {}]   ;;  %s5771_s6 = inlined_call_operand.hbm [shape: f32[16,128], index: 6, kind: output, shape index: {}]  }
   0x1   :  { %v24_v0 = vld [vmem:[%s5765_s0] sm:$0xff]  ;;  %v25_v1 = vld [vmem:[%s5765_s0 + $0x8] sm:$0xff] }
   0x2   :  { %v26_v2 = vld [vmem:[%s5767_s2] sm:$0xff]  ;;  %v4124_v3 = vpack.c.bf16 %v25_v1, %v24_v0 }
   0x3   :  { %3746 = vmatprep.mubr.msk.f32.mxu1 %vm56_vm0, %v26_v2 }
   0x4   :  { %11 = vsyncpa [#allocation3], 0  ;;  %4125 = vmatprep.subr.bf16.mxu1 %v4124_v3  ;;  %v27_v4 = vld [vmem:[%s5767_s2 + $0x8] sm:$0xff]  ;;  %v28_v5 = vld [vmem:[%s5767_s2 + $0x10] sm:$0xff]  ;;  %vm202_vm1 = vcmask 64512   ;;  %vm4632_vm2 = vmmov 0  }
   0x5   :  { %4127 = vmatpush3.bf16.msra.mxu1 %v4124_v3  ;;  %v29_v6 = vld [vmem:[%s5767_s2 + $0x18] sm:$0xff]  ;;  %v30_v7 = vld [vmem:[%s5767_s2 + $0x20] sm:$0xff]  ;;  %v31_v8 = vld [vmem:[%s5767_s2 + $0x28] sm:$0xff]  ;;  %vm1402_vm3 = vcmask 261120   ;;  %s4635_s28 = smov [#allocation2]  }
   0x6   :  { %v4748_v56 = vld [vmem:[%s5766_s1 + $0x48] sm:$0xff]  ;;  %s3390_s29 = sshll.u32 %s4635_s28, 4  ;;  %s3391_s29 = int_to_ptr.vmem [resolvable:$true] %s3390_s29 }
   0x7   :  { %s4607_s30 = scalar_lea.vmem %s3391_s29, 256  ;;  %p4612_p1 = scmp.lt.s32.totalorder %s3391_s29, %s3391_s29 }
   0x8   :  { %3747 = vmatmul.mubr.msk.f32.vlgmr.msra.gmra.mrb[0].mxu1 %vm56_vm0, %v27_v4  ;;  %p4608_p0 = scmp.ne.s32.totalorder %s3391_s29, %s4607_s30  ;;  %p4613_p2 = scmp.lt.s32.totalorder %s4607_s30, %s4607_s30 }
   0x9   :  { %3749 = vmatprep.mubr.msk.f32.mxu1 %vm56_vm0, %v28_v5  ;;  %v413_v5 = vld [vmem:[%s5766_s1 + $0x8] sm:$0xff] }
   0xa   :  { %p4614_p3 = por %p4613_p2, %p4612_p1 }
   0xc   :  { %3750 = vmatmul.mubr.msk.f32.gmra.mrb[2].mxu1 %vm56_vm0, %v29_v6  ;;  %p4615_p4 = pnand %p4614_p3, %p4608_p0 }
   0xd   :  { %3752 = vmatprep.mubr.msk.f32.mxu1 %vm56_vm0, %v30_v7 }
  0x10   :  { %3753 = vmatmul.mubr.msk.f32.gmra.mrb[4].mxu1 %vm56_vm0, %v31_v8 }
  0xdb   :  { %v3748_v9 = vpop.f32.mrb[0].mxu1 }
  0xdc   :  { %v141_v10 = vpop.f32.mrb[1].mxu1 }
  0xdd   :  { %170 = vxpose.xlu0.b32.start.end [1/1] (short) %v141_v10, 128 }
  0xdf   :  { %v3751_v11 = vpop.f32.mrb[2].mxu1 }
  0xe0   :  { %v151_v12 = vpop.f32.mrb[3].mxu1  ;;  %3816 = vmatprep.subr.mxu0 %v3751_v11 }
  0xe1   :  { %3755 = vmatprep.subr.mxu1 %v151_v12  ;;  %3817 = vmatpush3.msra.mxu0 %v3751_v11 }
  0xe2   :  { %3756 = vmatpush3.msra.mxu1 %v151_v12  ;;  %v412_v12 = vld [vmem:[%s5766_s1] sm:$0xff] }
  0xe3   :  { %v4708_v18 = vpop.f32.mrb[4].mxu1 }
  0xe4   :  { %v4710_v19 = vpop.f32.mrb[5].mxu1 }
 0x11a   :  { %658 = vxpose.xlu0.b32.start.end [1/1] (short) %v3748_v9, 128 }
 0x15d   :  { %v186_v13 = vpop.trf.xlu0 }
 0x15e   :  { %3757 = vmatprep.mubr.msk.f32.mxu1 %vm202_vm1, %v186_v13 }
 0x161   :  { %v187_v14 = vpop.trf.xlu0 }
 0x162   :  { %3758 = vmatmul.mubr.msk.f32.vlgmr.msra.gmra.mrb[6].mxu1 %vm202_vm1, %v187_v14 }
 0x165   :  { %v188_v15 = vpop.trf.xlu0 }
 0x166   :  { %3760 = vmatprep.mubr.msk.f32.mxu1 %vm202_vm1, %v188_v15 }
 0x169   :  { %v189_v16 = vpop.trf.xlu0 }
 0x16a   :  { %3761 = vmatmul.mubr.msk.f32.gmra.mrb[8].mxu1 %vm202_vm1, %v189_v16 }
 0x16d   :  { %v190_v17 = vpop.trf.xlu0 }
 0x16e   :  { %3763 = vmatprep.mubr.msk.f32.mxu1 %vm202_vm1, %v190_v17  ;;  %v415_v17 = vld [vmem:[%s5766_s1 + $0x18] sm:$0xff] }
 0x171   :  { %v191_v20 = vpop.trf.xlu0 }
 0x172   :  { %3764 = vmatmul.mubr.msk.f32.gmra.mrb[10].mxu1 %vm202_vm1, %v191_v20 }
 0x175   :  { %v192_v21 = vpop.trf.xlu0 }
 0x176   :  { %3766 = vmatprep.mubr.msk.f32.mxu1 %vm202_vm1, %v192_v21 }
 0x179   :  { %v193_v22 = vpop.trf.xlu0 }
 0x17a   :  { %3767 = vmatmul.mubr.msk.f32.gmra.mrb[12].mxu1 %vm202_vm1, %v193_v22 }
 0x17d   :  { %v194_v23 = vpop.trf.xlu0 }
 0x17e   :  { %3769 = vmatprep.mubr.msk.f32.mxu1 %vm202_vm1, %v194_v23 }
 0x181   :  { %v195_v24 = vpop.trf.xlu0 }
 0x182   :  { %3770 = vmatmul.mubr.msk.f32.gmra.mrb[14].mxu1 %vm202_vm1, %v195_v24 }
 0x185   :  { %v196_v25 = vpop.trf.xlu0 }
 0x186   :  { %3772 = vmatprep.mubr.msk.f32.mxu1 %vm202_vm1, %v196_v25 }
 0x189   :  { %v197_v26 = vpop.trf.xlu0 }
 0x18a   :  { %3773 = vmatmul.mubr.msk.f32.gmra.mrb[16].mxu1 %vm202_vm1, %v197_v26 }
 0x18d   :  { %v198_v27 = vpop.trf.xlu0 }
 0x18e   :  { %3775 = vmatprep.mubr.msk.f32.mxu1 %vm202_vm1, %v198_v27 }
 0x191   :  { %v199_v28 = vpop.trf.xlu0 }
 0x192   :  { %3776 = vmatmul.mubr.msk.f32.gmra.mrb[18].mxu1 %vm202_vm1, %v199_v28  ;;  %v414_v28 = vld [vmem:[%s5766_s1 + $0x10] sm:$0xff] }
 0x195   :  { %v200_v29 = vpop.trf.xlu0 }
 0x196   :  { %3778 = vmatprep.mubr.msk.f32.mxu1 %vm202_vm1, %v200_v29 }
 0x199   :  { %v201_v30 = vpop.trf.xlu0 }
 0x19a   :  { %3779 = vmatmul.mubr.msk.f32.gmra.mrb[20].mxu1 %vm202_vm1, %v201_v30 }
 0x19d   :  { %v674_v31 = vpop.trf.xlu0 }
 0x19e   :  { %3818 = vmatprep.mubr.msk.f32.mxu0 %vm202_vm1, %v674_v31 }
 0x1a1   :  { %v675_v32 = vpop.trf.xlu0 }
 0x1a2   :  { %3819 = vmatmul.mubr.msk.f32.vlgmr.msra.gmra.mrb[0].mxu0 %vm202_vm1, %v675_v32 }
 0x1a5   :  { %v676_v33 = vpop.trf.xlu0 }
 0x1a6   :  { %3821 = vmatprep.mubr.msk.f32.mxu0 %vm202_vm1, %v676_v33  ;;  %v417_v33 = vld [vmem:[%s5766_s1 + $0x28] sm:$0xff] }
 0x1a9   :  { %v677_v34 = vpop.trf.xlu0 }
 0x1aa   :  { %3822 = vmatmul.mubr.msk.f32.gmra.mrb[2].mxu0 %vm202_vm1, %v677_v34 }
 0x1ad   :  { %v678_v35 = vpop.trf.xlu0 }
 0x1ae   :  { %3824 = vmatprep.mubr.msk.f32.mxu0 %vm202_vm1, %v678_v35 }
 0x1b1   :  { %v679_v36 = vpop.trf.xlu0 }
 0x1b2   :  { %3825 = vmatmul.mubr.msk.f32.gmra.mrb[4].mxu0 %vm202_vm1, %v679_v36 }
 0x1b5   :  { %v680_v37 = vpop.trf.xlu0 }
 0x1b6   :  { %3827 = vmatprep.mubr.msk.f32.mxu0 %vm202_vm1, %v680_v37 }
 0x1b9   :  { %v681_v38 = vpop.trf.xlu0 }
 0x1ba   :  { %3828 = vmatmul.mubr.msk.f32.gmra.mrb[6].mxu0 %vm202_vm1, %v681_v38 }
 0x1bd   :  { %v682_v39 = vpop.trf.xlu0 }
 0x1be   :  { %3830 = vmatprep.mubr.msk.f32.mxu0 %vm202_vm1, %v682_v39 }
 0x1c1   :  { %v683_v40 = vpop.trf.xlu0 }
 0x1c2   :  { %3831 = vmatmul.mubr.msk.f32.gmra.mrb[8].mxu0 %vm202_vm1, %v683_v40 }
 0x1c5   :  { %v684_v41 = vpop.trf.xlu0 }
 0x1c6   :  { %3833 = vmatprep.mubr.msk.f32.mxu0 %vm202_vm1, %v684_v41 }
 0x1c9   :  { %v685_v42 = vpop.trf.xlu0 }
 0x1ca   :  { %3834 = vmatmul.mubr.msk.f32.gmra.mrb[10].mxu0 %vm202_vm1, %v685_v42  ;;  %v416_v42 = vld [vmem:[%s5766_s1 + $0x20] sm:$0xff] }
 0x1cd   :  { %v686_v43 = vpop.trf.xlu0 }
 0x1ce   :  { %3836 = vmatprep.mubr.msk.f32.mxu0 %vm202_vm1, %v686_v43 }
 0x1d1   :  { %v687_v44 = vpop.trf.xlu0 }
 0x1d2   :  { %3837 = vmatmul.mubr.msk.f32.gmra.mrb[12].mxu0 %vm202_vm1, %v687_v44 }
 0x1d5   :  { %v688_v45 = vpop.trf.xlu0 }
 0x1d6   :  { %3839 = vmatprep.mubr.msk.f32.mxu0 %vm202_vm1, %v688_v45 }
 0x1d9   :  { %v689_v46 = vpop.trf.xlu0 }
 0x1da   :  { %3840 = vmatmul.mubr.msk.f32.gmra.mrb[14].mxu0 %vm202_vm1, %v689_v46 }
 0x235   :  { %v3759_v47 = vpop.f32.mrb[6].mxu1 }
 0x236   :  { %v317_v48 = vpop.f32.mrb[7].mxu1  ;;  %v397_v6 = vmul.f32 0.35355338, %v3759_v47  ;;  %v419_v47 = vld [vmem:[%s5766_s1 + $0x38] sm:$0xff] }
 0x237   :  { %v396_v13 = vmul.f32 0.35355338, %v317_v48 }
 0x238   :  { %v4774_v9 = vadd.f32 %v413_v5, %v397_v6 }
 0x239   :  { %v4783_v16 = vadd.f32 %v412_v12, %v396_v13 }
 0x23d   :  { %v3762_v49 = vpop.f32.mrb[8].mxu1 }
 0x23e   :  { %v327_v50 = vpop.f32.mrb[9].mxu1  ;;  %v399_v23 = vmul.f32 0.35355338, %v3762_v49 }
 0x23f   :  { %v398_v29 = vmul.f32 0.35355338, %v327_v50 }
 0x240   :  { %v4792_v25 = vadd.f32 %v415_v17, %v399_v23  ;;  %v422_v23 = vld [vmem:[%s5766_s1 + $0x50] sm:$0xff] }
 0x241   :  { %v4801_v32 = vadd.f32 %v414_v28, %v398_v29 }
 0x245   :  { %v3765_v51 = vpop.f32.mrb[10].mxu1 }
 0x246   :  { %v4739_v52 = vpop.f32.mrb[11].mxu1  ;;  %v401_v37 = vmul.f32 0.35355338, %v3765_v51 }
 0x247   :  { %v400_v43 = vmul.f32 0.35355338, %v4739_v52 }
 0x248   :  { %v4810_v39 = vadd.f32 %v417_v33, %v401_v37 }
 0x249   :  { %v4820_v46 = vadd.f32 %v416_v42, %v400_v43 }
 0x24d   :  { %v4741_v53 = vpop.f32.mrb[12].mxu1 }
 0x24e   :  { %v4743_v54 = vpop.f32.mrb[13].mxu1  ;;  %v403_v51 = vmul.f32 0.35355338, %v4741_v53 }
 0x255   :  { %v3771_v55 = vpop.f32.mrb[14].mxu1 }
 0x256   :  { %v405_v57 = vmul.f32 0.35355338, %v3771_v55  ;;  %v4750_v58 = vpop.f32.mrb[15].mxu1  ;;  %v4830_v55 = vadd.f32 %v419_v47, %v403_v51 }
 0x258   :  { %v4753_v59 = vadd.f32 %v4748_v56, %v405_v57 }
 0x25a   :  { %462 = vmax.xlane.f32.xlu0 %v4753_v59 }
 0x25d   :  { %v4756_v60 = vpop.f32.mrb[16].mxu1 }
 0x25e   :  { %v4758_v61 = vpop.f32.mrb[17].mxu1 }
 0x265   :  { %v4760_v62 = vpop.f32.mrb[18].mxu1 }
 0x266   :  { %v4762_v63 = vpop.f32.mrb[19].mxu1 }
 0x26d   :  { %v4764_v0 = vpop.f32.mrb[20].mxu1 }
 0x26e   :  { %v4766_v1 = vpop.f32.mrb[21].mxu1 }
 0x275   :  { %v3820_v2 = vpop.f32.mrb[0].mxu0 }
 0x276   :  { %v884_v3 = vmul.f32 0.35355338, %v3820_v2  ;;  %v804_v4 = vpop.f32.mrb[1].mxu0 }
 0x277   :  { %v883_v8 = vmul.f32 0.35355338, %v804_v4  ;;  %v402_v4 = vmul.f32 0.35355338, %v4743_v54  ;;  %v404_v54 = vmul.f32 0.35355338, %v4750_v58 }
 0x278   :  { %v4771_v7 = vadd.f32 %v884_v3, %v413_v5  ;;  %v418_v3 = vld [vmem:[%s5766_s1 + $0x30] sm:$0xff] }
 0x279   :  { %v4780_v14 = vadd.f32 %v883_v8, %v412_v12  ;;  %v4840_v6 = vadd.f32 %v418_v3, %v402_v4 }
 0x27a   :  { %917 = vmax.xlane.f32.xlu1 %v4771_v7 }
 0x27d   :  { %v3823_v10 = vpop.f32.mrb[2].mxu0 }
 0x27e   :  { %446 = vmax.xlane.f32.xlu1 %v4774_v9  ;;  %v814_v11 = vpop.f32.mrb[3].mxu0  ;;  %v886_v15 = vmul.f32 0.35355338, %v3823_v10 }
 0x27f   :  { %v885_v24 = vmul.f32 0.35355338, %v814_v11  ;;  %v420_v11 = vld [vmem:[%s5766_s1 + $0x40] sm:$0xff] }
 0x280   :  { %v4789_v21 = vadd.f32 %v886_v15, %v415_v17  ;;  %v4854_v15 = vadd.f32 %v420_v11, %v404_v54 }
 0x281   :  { %v4798_v30 = vadd.f32 %v885_v24, %v414_v28  ;;  %v406_v24 = vmul.f32 0.35355338, %v4758_v61 }
 0x282   :  { %915 = vmax.xlane.f32.xlu1 %v4780_v14 }
 0x283   :  { %v4874_v28 = vadd.f32 %v422_v23, %v406_v24 }
 0x285   :  { %v3826_v20 = vpop.f32.mrb[4].mxu0 }
 0x286   :  { %444 = vmax.xlane.f32.xlu1 %v4783_v16  ;;  %v824_v22 = vpop.f32.mrb[5].mxu0  ;;  %v888_v31 = vmul.f32 0.35355338, %v3826_v20  ;;  %v407_v20 = vmul.f32 0.35355338, %v4756_v60  ;;  %v425_v60 = vld [vmem:[%s5766_s1 + $0x68] sm:$0xff] }
 0x287   :  { %v887_v38 = vmul.f32 0.35355338, %v824_v22 }
 0x288   :  { %v4807_v35 = vadd.f32 %v888_v31, %v417_v33  ;;  %v409_v31 = vmul.f32 0.35355338, %v4760_v62  ;;  %v427_v62 = vld [vmem:[%s5766_s1 + $0x78] sm:$0xff] }
 0x289   :  { %v4817_v44 = vadd.f32 %v887_v38, %v416_v42  ;;  %v411_v42 = vmul.f32 0.35355338, %v4764_v0 }
 0x28a   :  { %921 = vmax.xlane.f32.xlu1 %v4789_v21  ;;  %v4884_v33 = vadd.f32 %v425_v60, %v409_v31 }
 0x28b   :  { %v4904_v43 = vadd.f32 %v427_v62, %v411_v42 }
 0x28d   :  { %v3829_v26 = vpop.f32.mrb[6].mxu0 }
 0x28e   :  { %450 = vmax.xlane.f32.xlu1 %v4792_v25  ;;  %v834_v27 = vpop.f32.mrb[7].mxu0  ;;  %v890_v45 = vmul.f32 0.35355338, %v3829_v26 }
 0x28f   :  { %v889_v52 = vmul.f32 0.35355338, %v834_v27 }
 0x290   :  { %v4826_v49 = vadd.f32 %v890_v45, %v419_v47  ;;  %v426_v45 = vld [vmem:[%s5766_s1 + $0x70] sm:$0xff]  ;;  %v410_v47 = vmul.f32 0.35355338, %v4766_v1 }
 0x291   :  { %v4837_v5 = vadd.f32 %v889_v52, %v418_v3 }
 0x292   :  { %919 = vmax.xlane.f32.xlu1 %v4798_v30 }
 0x295   :  { %v3832_v34 = vpop.f32.mrb[8].mxu0 }
 0x296   :  { %448 = vmax.xlane.f32.xlu1 %v4801_v32  ;;  %v844_v36 = vpop.f32.mrb[9].mxu0  ;;  %v892_v53 = vmul.f32 0.35355338, %v3832_v34  ;;  %v424_v34 = vld [vmem:[%s5766_s1 + $0x60] sm:$0xff] }
 0x297   :  { %v891_v10 = vmul.f32 0.35355338, %v844_v36  ;;  %v408_v36 = vmul.f32 0.35355338, %v4762_v63 }
 0x298   :  { %v4844_v8 = vadd.f32 %v892_v53, %v4748_v56  ;;  %v423_v56 = vld [vmem:[%s5766_s1 + $0x58] sm:$0xff] }
 0x299   :  { %v4851_v12 = vadd.f32 %v891_v10, %v420_v11  ;;  %v4864_v22 = vadd.f32 %v423_v56, %v407_v20 }
 0x29a   :  { %925 = vmax.xlane.f32.xlu1 %v4807_v35 }
 0x29d   :  { %v3835_v40 = vpop.f32.mrb[10].mxu0 }
 0x29e   :  { %454 = vmax.xlane.f32.xlu1 %v4810_v39  ;;  %v854_v41 = vpop.f32.mrb[11].mxu0  ;;  %v894_v13 = vmul.f32 0.35355338, %v3835_v40  ;;  %v4894_v40 = vadd.f32 %v424_v34, %v408_v36 }
 0x29f   :  { %v893_v58 = vmul.f32 0.35355338, %v854_v41 }
 0x2a0   :  { %v4860_v17 = vadd.f32 %v894_v13, %v423_v56 }
 0x2a1   :  { %v4871_v26 = vadd.f32 %v893_v58, %v422_v23 }
 0x2a2   :  { %923 = vmax.xlane.f32.xlu1 %v4817_v44 }
 0x2a5   :  { %v3838_v48 = vpop.f32.mrb[12].mxu0 }
 0x2a6   :  { %452 = vmax.xlane.f32.xlu1 %v4820_v46  ;;  %v864_v50 = vpop.f32.mrb[13].mxu0  ;;  %v896_v27 = vmul.f32 0.35355338, %v3838_v48 }
 0x2a7   :  { %v895_v61 = vmul.f32 0.35355338, %v864_v50  ;;  %v4914_v50 = vadd.f32 %v426_v45, %v410_v47 }
 0x2a8   :  { %v4880_v29 = vadd.f32 %v896_v27, %v425_v60 }
 0x2a9   :  { %v4891_v37 = vadd.f32 %v895_v61, %v424_v34 }
 0x2aa   :  { %929 = vmax.xlane.f32.xlu1 %v4826_v49 }
 0x2ad   :  { %v3841_v57 = vpop.f32.mrb[14].mxu0 }
 0x2ae   :  { %458 = vmax.xlane.f32.xlu1 %v4830_v55  ;;  %v874_v2 = vpop.f32.mrb[15].mxu0  ;;  %v898_v38 = vmul.f32 0.35355338, %v3841_v57 }
 0x2af   :  { %v897_v63 = vmul.f32 0.35355338, %v874_v2 }
 0x2b0   :  { %v4900_v41 = vadd.f32 %v898_v38, %v427_v62 }
 0x2b1   :  { %v4911_v48 = vadd.f32 %v897_v63, %v426_v45 }
 0x2b2   :  { %927 = vmax.xlane.f32.xlu1 %v4837_v5 }
 0x2b6   :  { %456 = vmax.xlane.f32.xlu1 %v4840_v6 }
 0x2ba   :  { %933 = vmax.xlane.f32.xlu1 %v4844_v8 }
 0x2be   :  { %931 = vmax.xlane.f32.xlu1 %v4851_v12 }
 0x2c2   :  { %460 = vmax.xlane.f32.xlu1 %v4854_v15 }
 0x2c6   :  { %937 = vmax.xlane.f32.xlu1 %v4860_v17 }
 0x2ca   :  { %466 = vmax.xlane.f32.xlu1 %v4864_v22 }
 0x2ce   :  { %935 = vmax.xlane.f32.xlu1 %v4871_v26 }
 0x2d2   :  { %464 = vmax.xlane.f32.xlu1 %v4874_v28 }
 0x2d6   :  { %941 = vmax.xlane.f32.xlu1 %v4880_v29 }
 0x2da   :  { %470 = vmax.xlane.f32.xlu1 %v4884_v33 }
 0x2de   :  { %939 = vmax.xlane.f32.xlu1 %v4891_v37 }
 0x2e2   :  { %468 = vmax.xlane.f32.xlu1 %v4894_v40 }
 0x2e6   :  { %945 = vmax.xlane.f32.xlu1 %v4900_v41 }
 0x2ea   :  { %474 = vmax.xlane.f32.xlu1 %v4904_v43 }
 0x2ee   :  { %943 = vmax.xlane.f32.xlu1 %v4911_v48 }
 0x2f2   :  { %472 = vmax.xlane.f32.xlu1 %v4914_v50 }
 0x307   :  { %v918_v0 = vpop.xlane.xlu1 %917 }
 0x308   :  { %v948_v51 = vsub.f32 %v4771_v7, %v918_v0 }
 0x30a   :  { %v965_v52 = vmul.f32 1.442695, %v948_v51 }
 0x30b   :  { %v447_v57 = vpop.xlane.xlu1 %446 }
 0x30c   :  { %4317 = vpow2.f32 %v965_v52  ;;  %v477_v2 = vsub.f32 %v4774_v9, %v447_v57 }
 0x30e   :  { %v494_v3 = vmul.f32 1.442695, %v477_v2 }
 0x30f   :  { %v916_v4 = vpop.xlane.xlu1 %915 }
 0x310   :  { %4319 = vpow2.f32 %v494_v3  ;;  %v947_v1 = vsub.f32 %v4780_v14, %v916_v4 }
 0x312   :  { %v963_v53 = vmul.f32 1.442695, %v947_v1 }
 0x313   :  { %v445_v10 = vpop.xlane.xlu1 %444 }
 0x314   :  { %4321 = vpow2.f32 %v963_v53  ;;  %v476_v11 = vsub.f32 %v4783_v16, %v445_v10  ;;  %v4631_v53 = vmov 0.0|0.0  }
 0x315   :  { %4152 = vmatprep.subr.bf16.mxu0 %v4631_v53  ;;  %4128 = vmatprep.subr.bf16.mxu1 %v4631_v53 }
 0x316   :  { %v4921_v54 = vpop.eup %4317  ;;  %v492_v13 = vmul.f32 1.442695, %v476_v11 }
 0x317   :  { %v922_v56 = vpop.xlane.xlu1 %921  ;;  %997 = vadd.xlane.f32.xlu1 %v4921_v54 }
 0x318   :  { %4323 = vpow2.f32 %v492_v13  ;;  %v950_v7 = vsub.f32 %v4789_v21, %v922_v56 }
 0x31a   :  { %v4925_v9 = vpop.eup %4319  ;;  %v969_v20 = vmul.f32 1.442695, %v950_v7 }
 0x31b   :  { %v451_v58 = vpop.xlane.xlu1 %450  ;;  %526 = vadd.xlane.f32.xlu1 %v4925_v9 }
 0x31c   :  { %4325 = vpow2.f32 %v969_v20  ;;  %v479_v14 = vsub.f32 %v4792_v25, %v451_v58 }
 0x31e   :  { %v4929_v23 = vpop.eup %4321  ;;  %v498_v16 = vmul.f32 1.442695, %v479_v14  ;;  %v463_v14 = vpop.xlane.xlu0 %462 }
 0x31f   :  { %v920_v24 = vpop.xlane.xlu1 %919  ;;  %995 = vadd.xlane.f32.xlu1 %v4929_v23 }
 0x320   :  { %4327 = vpow2.f32 %v498_v16  ;;  %v949_v27 = vsub.f32 %v4798_v30, %v920_v24 }
 0x322   :  { %v4933_v60 = vpop.eup %4323  ;;  %v967_v21 = vmul.f32 1.442695, %v949_v27  ;;  %v485_v27 = vsub.f32 %v4753_v59, %v463_v14 }
 0x323   :  { %v449_v31 = vpop.xlane.xlu1 %448  ;;  %524 = vadd.xlane.f32.xlu1 %v4933_v60 }
 0x324   :  { %4329 = vpow2.f32 %v967_v21  ;;  %v478_v61 = vsub.f32 %v4801_v32, %v449_v31 }
 0x326   :  { %v4937_v34 = vpop.eup %4325  ;;  %v496_v25 = vmul.f32 1.442695, %v478_v61 }
 0x327   :  { %v926_v36 = vpop.xlane.xlu1 %925  ;;  %1001 = vadd.xlane.f32.xlu1 %v4937_v34 }
 0x328   :  { %4331 = vpow2.f32 %v496_v25  ;;  %v952_v38 = vsub.f32 %v4807_v35, %v926_v36  ;;  %v510_v25 = vmul.f32 1.442695, %v485_v27 }
 0x32a   :  { %v4941_v62 = vpop.eup %4327  ;;  %v973_v30 = vmul.f32 1.442695, %v952_v38 }
 0x32b   :  { %v455_v42 = vpop.xlane.xlu1 %454  ;;  %530 = vadd.xlane.f32.xlu1 %v4941_v62 }
 0x32c   :  { %4333 = vpow2.f32 %v973_v30  ;;  %v481_v63 = vsub.f32 %v4810_v39, %v455_v42 }
 0x32e   :  { %v4945_v45 = vpop.eup %4329  ;;  %v502_v32 = vmul.f32 1.442695, %v481_v63 }
 0x32f   :  { %v924_v47 = vpop.xlane.xlu1 %923  ;;  %999 = vadd.xlane.f32.xlu1 %v4945_v45 }
 0x330   :  { %4335 = vpow2.f32 %v502_v32  ;;  %v951_v0 = vsub.f32 %v4817_v44, %v924_v47 }
 0x332   :  { %v4949_v51 = vpop.eup %4331  ;;  %v971_v35 = vmul.f32 1.442695, %v951_v0 }
 0x333   :  { %v453_v52 = vpop.xlane.xlu1 %452  ;;  %528 = vadd.xlane.f32.xlu1 %v4949_v51 }
 0x334   :  { %4337 = vpow2.f32 %v971_v35  ;;  %v480_v57 = vsub.f32 %v4820_v46, %v453_v52 }
 0x336   :  { %v4953_v2 = vpop.eup %4333  ;;  %v500_v39 = vmul.f32 1.442695, %v480_v57 }
 0x337   :  { %v930_v3 = vpop.xlane.xlu1 %929  ;;  %1005 = vadd.xlane.f32.xlu1 %v4953_v2 }
 0x338   :  { %4339 = vpow2.f32 %v500_v39  ;;  %v954_v4 = vsub.f32 %v4826_v49, %v930_v3 }
 0x33a   :  { %v4957_v1 = vpop.eup %4335  ;;  %v977_v44 = vmul.f32 1.442695, %v954_v4 }
 0x33b   :  { %v459_v10 = vpop.xlane.xlu1 %458  ;;  %534 = vadd.xlane.f32.xlu1 %v4957_v1 }
 0x33c   :  { %4341 = vpow2.f32 %v977_v44  ;;  %v483_v46 = vsub.f32 %v4830_v55, %v459_v10 }
 0x33e   :  { %v4963_v11 = vpop.eup %4337  ;;  %v506_v13 = vmul.f32 1.442695, %v483_v46 }
 0x33f   :  { %v928_v56 = vpop.xlane.xlu1 %927  ;;  %1003 = vadd.xlane.f32.xlu1 %v4963_v11 }
 0x340   :  { %4343 = vpow2.f32 %v506_v13  ;;  %v953_v49 = vsub.f32 %v4837_v5, %v928_v56 }
 0x342   :  { %v4967_v7 = vpop.eup %4339  ;;  %v975_v20 = vmul.f32 1.442695, %v953_v49 }
 0x343   :  { %v457_v58 = vpop.xlane.xlu1 %456  ;;  %532 = vadd.xlane.f32.xlu1 %v4967_v7 }
 0x344   :  { %4345 = vpow2.f32 %v975_v20  ;;  %v482_v16 = vsub.f32 %v4840_v6, %v457_v58 }
 0x346   :  { %v4971_v55 = vpop.eup %4341  ;;  %v504_v24 = vmul.f32 1.442695, %v482_v16 }
 0x347   :  { %v934_v21 = vpop.xlane.xlu1 %933  ;;  %1009 = vadd.xlane.f32.xlu1 %v4971_v55 }
 0x348   :  { %4347 = vpow2.f32 %v504_v24  ;;  %v956_v5 = vsub.f32 %v4844_v8, %v934_v21 }
 0x34a   :  { %v4976_v31 = vpop.eup %4343  ;;  %v981_v61 = vmul.f32 1.442695, %v956_v5 }
 0x34b   :  { %v932_v36 = vpop.xlane.xlu1 %931  ;;  %538 = vadd.xlane.f32.xlu1 %v4976_v31 }
 0x34c   :  { %4349 = vpow2.f32 %v981_v61  ;;  %v955_v6 = vsub.f32 %v4851_v12, %v932_v36 }
 0x34d   :  { %4351 = vpow2.f32 %v510_v25 }
 0x34e   :  { %v4980_v38 = vpop.eup %4345  ;;  %v979_v30 = vmul.f32 1.442695, %v955_v6 }
 0x34f   :  { %1007 = vadd.xlane.f32.xlu0 %v4980_v38  ;;  %v461_v59 = vpop.xlane.xlu1 %460 }
 0x350   :  { %4353 = vpow2.f32 %v979_v30  ;;  %v484_v8 = vsub.f32 %v4854_v15, %v461_v59 }
 0x352   :  { %v4984_v42 = vpop.eup %4347  ;;  %v508_v63 = vmul.f32 1.442695, %v484_v8 }
 0x353   :  { %536 = vadd.xlane.f32.xlu0 %v4984_v42  ;;  %v938_v32 = vpop.xlane.xlu1 %937 }
 0x354   :  { %4355 = vpow2.f32 %v508_v63  ;;  %v958_v47 = vsub.f32 %v4860_v17, %v938_v32 }
 0x356   :  { %v4988_v12 = vpop.eup %4349  ;;  %v985_v0 = vmul.f32 1.442695, %v958_v47 }
 0x357   :  { %v467_v35 = vpop.xlane.xlu1 %466  ;;  %1013 = vadd.xlane.f32.xlu1 %v4988_v12  ;;  %v4992_v57 = vpop.eup %4351 }
 0x358   :  { %4357 = vpow2.f32 %v985_v0  ;;  %v487_v52 = vsub.f32 %v4864_v22, %v467_v35 }
 0x35a   :  { %v4994_v15 = vpop.eup %4353  ;;  %v514_v39 = vmul.f32 1.442695, %v487_v52 }
 0x35b   :  { %1011 = vadd.xlane.f32.xlu0 %v4994_v15  ;;  %v936_v3 = vpop.xlane.xlu1 %935  ;;  %542 = vadd.xlane.f32.xlu1 %v4992_v57 }
 0x35c   :  { %4359 = vpow2.f32 %v514_v39  ;;  %v957_v17 = vsub.f32 %v4871_v26, %v936_v3 }
 0x35e   :  { %v4999_v4 = vpop.eup %4355  ;;  %v983_v44 = vmul.f32 1.442695, %v957_v17 }
 0x35f   :  { %540 = vadd.xlane.f32.xlu0 %v4999_v4  ;;  %v465_v10 = vpop.xlane.xlu1 %464 }
 0x360   :  { %4361 = vpow2.f32 %v983_v44  ;;  %v486_v22 = vsub.f32 %v4874_v28, %v465_v10 }
 0x362   :  { %v5003_v46 = vpop.eup %4357  ;;  %v512_v13 = vmul.f32 1.442695, %v486_v22 }
 0x363   :  { %v942_v56 = vpop.xlane.xlu1 %941  ;;  %1017 = vadd.xlane.f32.xlu1 %v5003_v46 }
 0x364   :  { %4363 = vpow2.f32 %v512_v13  ;;  %v960_v49 = vsub.f32 %v4880_v29, %v942_v56  ;;  %v4633_v13 = vmov 0.0  }
 0x365   :  { %3813 = vmatprep.mubr.msk.f32.mxu1 %vm4632_vm2, %v4633_v13  ;;  %3874 = vmatprep.mubr.msk.f32.mxu0 %vm4632_vm2, %v4633_v13 }
 0x366   :  { %v5007_v20 = vpop.eup %4359  ;;  %v989_v26 = vmul.f32 1.442695, %v960_v49 }
 0x367   :  { %v471_v58 = vpop.xlane.xlu1 %470  ;;  %546 = vadd.xlane.f32.xlu1 %v5007_v20 }
 0x368   :  { %4365 = vpow2.f32 %v989_v26  ;;  %v489_v14 = vsub.f32 %v4884_v33, %v471_v58 }
 0x36a   :  { %v5011_v16 = vpop.eup %4361  ;;  %v518_v28 = vmul.f32 1.442695, %v489_v14 }
 0x36b   :  { %1015 = vadd.xlane.f32.xlu0 %v5011_v16  ;;  %v940_v24 = vpop.xlane.xlu1 %939 }
 0x36c   :  { %4367 = vpow2.f32 %v518_v28  ;;  %v959_v27 = vsub.f32 %v4891_v37, %v940_v24 }
 0x36e   :  { %v5015_v21 = vpop.eup %4363  ;;  %v987_v29 = vmul.f32 1.442695, %v959_v27 }
 0x36f   :  { %544 = vadd.xlane.f32.xlu0 %v5015_v21  ;;  %v469_v5 = vpop.xlane.xlu1 %468 }
 0x370   :  { %4369 = vpow2.f32 %v987_v29  ;;  %v488_v61 = vsub.f32 %v4894_v40, %v469_v5 }
 0x372   :  { %v5019_v25 = vpop.eup %4365  ;;  %v516_v33 = vmul.f32 1.442695, %v488_v61 }
 0x373   :  { %v946_v36 = vpop.xlane.xlu1 %945  ;;  %1021 = vadd.xlane.f32.xlu1 %v5019_v25 }
 0x374   :  { %4371 = vpow2.f32 %v516_v33  ;;  %v962_v37 = vsub.f32 %v4900_v41, %v946_v36 }
 0x376   :  { %v5022_v6 = vpop.eup %4367  ;;  %v993_v32 = vmul.f32 1.442695, %v962_v37 }
 0x377   :  { %v475_v30 = vpop.xlane.xlu1 %474  ;;  %550 = vadd.xlane.f32.xlu1 %v5022_v6 }
 0x378   :  { %v491_v59 = vsub.f32 %v4904_v43, %v475_v30 }
 0x37a   :  { %v5027_v8 = vpop.eup %4369  ;;  %v522_v63 = vmul.f32 1.442695, %v491_v59 }
 0x37b   :  { %1019 = vadd.xlane.f32.xlu0 %v5027_v8  ;;  %v944_v40 = vpop.xlane.xlu1 %943 }
 0x37c   :  { %4373 = vpow2.f32 %v522_v63  ;;  %v961_v35 = vsub.f32 %v4911_v48, %v944_v40 }
 0x37d   :  { %4375 = vpow2.f32 %v993_v32 }
 0x37e   :  { %v5030_v47 = vpop.eup %4371  ;;  %v991_v43 = vmul.f32 1.442695, %v961_v35 }
 0x37f   :  { %548 = vadd.xlane.f32.xlu0 %v5030_v47  ;;  %v473_v0 = vpop.xlane.xlu1 %472 }
 0x380   :  { %v490_v41 = vsub.f32 %v4914_v50, %v473_v0 }
 0x382   :  { %v520_v52 = vmul.f32 1.442695, %v490_v41 }
 0x384   :  { %4377 = vpow2.f32 %v520_v52 }
 0x385   :  { %4379 = vpow2.f32 %v991_v43 }
 0x386   :  { %v5035_v39 = vpop.eup %4373 }
 0x387   :  { %554 = vadd.xlane.f32.xlu1 %v5035_v39  ;;  %v5038_v3 = vpop.eup %4375 }
 0x38b   :  { %1025 = vadd.xlane.f32.xlu1 %v5038_v3 }
 0x38e   :  { %v5041_v17 = vpop.eup %4377 }
 0x38f   :  { %552 = vadd.xlane.f32.xlu0 %v5041_v17  ;;  %v5044_v44 = vpop.eup %4379 }
 0x393   :  { %1023 = vadd.xlane.f32.xlu0 %v5044_v44 }
 0x3a4   :  { %v998_v48 = vpop.xlane.xlu1 %997 }
 0x3a5   :  { %4381 = vrcp.f32 %v998_v48 }
 0x3a8   :  { %v527_v50 = vpop.xlane.xlu1 %526 }
 0x3ac   :  { %v996_v10 = vpop.xlane.xlu1 %995 }
 0x3ad   :  { %4383 = vrcp.f32 %v996_v10 }
 0x3ae   :  { %4385 = vrcp.f32 %v527_v50 }
 0x3af   :  { %v4382_v49 = vpop.eup %4381 }
 0x3b0   :  { %v525_v22 = vpop.xlane.xlu1 %524  ;;  %v1044_v28 = vmul.f32 %v4382_v49, %v4921_v54 }
 0x3b1   :  { %4387 = vrcp.f32 %v525_v22 }
 0x3b4   :  { %v1002_v56 = vpop.xlane.xlu1 %1001 }
 0x3b5   :  { %4389 = vrcp.f32 %v1002_v56 }
 0x3b7   :  { %v4384_v26 = vpop.eup %4383 }
 0x3b8   :  { %v531_v58 = vpop.xlane.xlu1 %530  ;;  %v1043_v14 = vmul.f32 %v4384_v26, %v4929_v23  ;;  %v4386_v24 = vpop.eup %4385 }
 0x3b9   :  { %v573_v33 = vmul.f32 %v4386_v24, %v4925_v9 }
 0x3ba   :  { %v4153_v27 = vpack.c.bf16 %v1044_v28, %v1043_v14 }
 0x3bb   :  { %v4388_v29 = vpop.eup %4387 }
 0x3bc   :  { %4154 = vmatpush3.bf16.xpose.msra.mxu0 %v4153_v27  ;;  %v1000_v5 = vpop.xlane.xlu1 %999  ;;  %v572_v61 = vmul.f32 %v4388_v29, %v4933_v60 }
 0x3bd   :  { %4391 = vrcp.f32 %v1000_v5  ;;  %4155 = vmatprep.subr.bf16.mxu0 %v4631_v53 }
 0x3be   :  { %v4129_v36 = vpack.c.bf16 %v573_v33, %v572_v61  ;;  %4393 = vrcp.f32 %v531_v58 }
 0x3bf   :  { %v4390_v23 = vpop.eup %4389 }
 0x3c0   :  { %4130 = vmatpush3.bf16.xpose.msra.mxu1 %v4129_v36  ;;  %v529_v30 = vpop.xlane.xlu1 %528  ;;  %v1046_v60 = vmul.f32 %v4390_v23, %v4937_v34 }
 0x3c1   :  { %4395 = vrcp.f32 %v529_v30  ;;  %4131 = vmatprep.subr.bf16.mxu1 %v4631_v53 }
 0x3c4   :  { %v1006_v54 = vpop.xlane.xlu1 %1005 }
 0x3c5   :  { %4397 = vrcp.f32 %v1006_v54 }
 0x3c7   :  { %v4392_v37 = vpop.eup %4391 }
 0x3c8   :  { %v535_v59 = vpop.xlane.xlu1 %534  ;;  %v1045_v63 = vmul.f32 %v4392_v37, %v4945_v45  ;;  %v4394_v40 = vpop.eup %4393 }
 0x3c9   :  { %v575_v41 = vmul.f32 %v4394_v40, %v4941_v62 }
 0x3ca   :  { %v4156_v9 = vpack.c.bf16 %v1046_v60, %v1045_v63 }
 0x3cb   :  { %v4396_v32 = vpop.eup %4395 }
 0x3cc   :  { %4157 = vmatpush3.bf16.xpose.msra.mxu0 %v4156_v9  ;;  %v1004_v0 = vpop.xlane.xlu1 %1003  ;;  %v574_v35 = vmul.f32 %v4396_v32, %v4949_v51 }
 0x3cd   :  { %4399 = vrcp.f32 %v1004_v0  ;;  %4158 = vmatprep.subr.bf16.mxu0 %v4631_v53 }
 0x3ce   :  { %v4132_v52 = vpack.c.bf16 %v575_v41, %v574_v35  ;;  %4401 = vrcp.f32 %v535_v59 }
 0x3cf   :  { %v4398_v34 = vpop.eup %4397 }
 0x3d0   :  { %4133 = vmatpush3.bf16.xpose.msra.mxu1 %v4132_v52  ;;  %v533_v43 = vpop.xlane.xlu1 %532  ;;  %v1048_v10 = vmul.f32 %v4398_v34, %v4953_v2 }
 0x3d1   :  { %4403 = vrcp.f32 %v533_v43  ;;  %4134 = vmatprep.subr.bf16.mxu1 %v4631_v53 }
 0x3d4   :  { %v1010_v45 = vpop.xlane.xlu1 %1009 }
 0x3d5   :  { %4405 = vrcp.f32 %v1010_v45 }
 0x3d7   :  { %v4400_v48 = vpop.eup %4399 }
 0x3d8   :  { %v1047_v50 = vmul.f32 %v4400_v48, %v4963_v11  ;;  %v4402_v51 = vpop.eup %4401  ;;  %v539_v56 = vpop.xlane.xlu1 %538 }
 0x3d9   :  { %v577_v58 = vmul.f32 %v4402_v51, %v4957_v1 }
 0x3da   :  { %v4159_v22 = vpack.c.bf16 %v1048_v10, %v1047_v50 }
 0x3db   :  { %v4404_v62 = vpop.eup %4403 }
 0x3dc   :  { %v1008_v49 = vpop.xlane.xlu0 %1007  ;;  %4160 = vmatpush3.bf16.xpose.msra.mxu0 %v4159_v22  ;;  %v576_v26 = vmul.f32 %v4404_v62, %v4967_v7 }
 0x3dd   :  { %4407 = vrcp.f32 %v1008_v49  ;;  %4161 = vmatprep.subr.bf16.mxu0 %v4631_v53 }
 0x3de   :  { %v4135_v14 = vpack.c.bf16 %v577_v58, %v576_v26  ;;  %4409 = vrcp.f32 %v539_v56 }
 0x3df   :  { %v4406_v11 = vpop.eup %4405 }
 0x3e0   :  { %v537_v28 = vpop.xlane.xlu0 %536  ;;  %4136 = vmatpush3.bf16.xpose.msra.mxu1 %v4135_v14  ;;  %v1050_v1 = vmul.f32 %v4406_v11, %v4971_v55 }
 0x3e1   :  { %4411 = vrcp.f32 %v537_v28  ;;  %4137 = vmatprep.subr.bf16.mxu1 %v4631_v53 }
 0x3e4   :  { %v1014_v2 = vpop.xlane.xlu1 %1013 }
 0x3e5   :  { %4413 = vrcp.f32 %v1014_v2 }
 0x3e7   :  { %v4408_v24 = vpop.eup %4407 }
 0x3e8   :  { %v1012_v27 = vpop.xlane.xlu0 %1011  ;;  %v543_v29 = vpop.xlane.xlu1 %542  ;;  %v1049_v7 = vmul.f32 %v4408_v24, %v4980_v38 }
 0x3e9   :  { %v4410_v5 = vpop.eup %4409  ;;  %4415 = vrcp.f32 %v1012_v27 }
 0x3ea   :  { %v4162_v61 = vpack.c.bf16 %v1050_v1, %v1049_v7  ;;  %4417 = vrcp.f32 %v543_v29  ;;  %v579_v54 = vmul.f32 %v4410_v5, %v4976_v31 }
 0x3eb   :  { %v4412_v33 = vpop.eup %4411 }
 0x3ec   :  { %v541_v36 = vpop.xlane.xlu0 %540  ;;  %4163 = vmatpush3.bf16.xpose.msra.mxu0 %v4162_v61  ;;  %v578_v30 = vmul.f32 %v4412_v33, %v4984_v42 }
 0x3ed   :  { %4419 = vrcp.f32 %v541_v36  ;;  %4164 = vmatprep.subr.bf16.mxu0 %v4631_v53  ;;  %v4634_v36 = vmov 0  }
 0x3ee   :  { %v4138_v23 = vpack.c.bf16 %v579_v54, %v578_v30  ;;  %4316 = vset.pattern.permute.xlu1 %v4634_v36  ;;  %4315 = vset.pattern.permute.xlu0 %v4634_v36  ;;  %v51_v30 = vld [vmem:[%s5768_s3 + $0x58] sm:$0xff]  ;;  %v44_v54 = vld [vmem:[%s5768_s3 + $0x20] sm:$0xff] }
 0x3ef   :  { %v4414_v37 = vpop.eup %4413 }
 0x3f0   :  { %4139 = vmatpush3.bf16.xpose.msra.mxu1 %v4138_v23  ;;  %v1018_v55 = vpop.xlane.xlu1 %1017  ;;  %v1052_v63 = vmul.f32 %v4414_v37, %v4988_v12  ;;  %v53_v23 = vld [vmem:[%s5768_s3 + $0x68] sm:$0xff] }
 0x3f1   :  { %4140 = vmatprep.subr.bf16.mxu1 %v4631_v53  ;;  %4421 = vrcp.f32 %v1018_v55  ;;  %v45_v37 = vld [vmem:[%s5768_s3 + $0x28] sm:$0xff]  ;;  %v55_v55 = vld [vmem:[%s5768_s3 + $0x78] sm:$0xff] }
 0x3f3   :  { %v4416_v38 = vpop.eup %4415 }
 0x3f4   :  { %v1051_v59 = vmul.f32 %v4416_v38, %v4994_v15  ;;  %v4418_v60 = vpop.eup %4417  ;;  %v547_v42 = vpop.xlane.xlu1 %546  ;;  %v46_v38 = vld [vmem:[%s5768_s3 + $0x30] sm:$0xff] }
 0x3f5   :  { %v581_v0 = vmul.f32 %v4418_v60, %v4992_v57  ;;  %v50_v60 = vld [vmem:[%s5768_s3 + $0x50] sm:$0xff] }
 0x3f6   :  { %v4165_v40 = vpack.c.bf16 %v1052_v63, %v1051_v59  ;;  %v47_v59 = vld [vmem:[%s5768_s3 + $0x38] sm:$0xff]  ;;  %v48_v63 = vld [vmem:[%s5768_s3 + $0x40] sm:$0xff] }
 0x3f7   :  { %v4420_v9 = vpop.eup %4419 }
 0x3f8   :  { %v1016_v31 = vpop.xlane.xlu0 %1015  ;;  %4166 = vmatpush3.bf16.xpose.msra.mxu0 %v4165_v40  ;;  %v580_v32 = vmul.f32 %v4420_v9, %v4999_v4  ;;  %v52_v40 = vld [vmem:[%s5768_s3 + $0x60] sm:$0xff]  ;;  %v54_v9 = vld [vmem:[%s5768_s3 + $0x70] sm:$0xff] }
 0x3f9   :  { %4423 = vrcp.f32 %v1016_v31  ;;  %4167 = vmatprep.subr.bf16.mxu0 %v4631_v53 }
 0x3fa   :  { %v4141_v35 = vpack.c.bf16 %v581_v0, %v580_v32  ;;  %4425 = vrcp.f32 %v547_v42 }
 0x3fb   :  { %v4422_v12 = vpop.eup %4421 }
 0x3fc   :  { %v545_v41 = vpop.xlane.xlu0 %544  ;;  %4142 = vmatpush3.bf16.xpose.msra.mxu1 %v4141_v35  ;;  %v1054_v34 = vmul.f32 %v4422_v12, %v5003_v46  ;;  %v34_v12 = vld [vmem:[%s5767_s2 + $0x40] sm:$0xff] }
 0x3fd   :  { %4427 = vrcp.f32 %v545_v41  ;;  %4143 = vmatprep.subr.bf16.mxu1 %v4631_v53  ;;  %v33_v41 = vld [vmem:[%s5767_s2 + $0x38] sm:$0xff] }
 0x400   :  { %v1022_v15 = vpop.xlane.xlu1 %1021 }
 0x401   :  { %4429 = vrcp.f32 %v1022_v15 }
 0x403   :  { %v4424_v52 = vpop.eup %4423 }
 0x404   :  { %v1053_v43 = vmul.f32 %v4424_v52, %v5011_v16  ;;  %v4426_v4 = vpop.eup %4425  ;;  %v551_v48 = vpop.xlane.xlu1 %550 }
 0x405   :  { %v583_v51 = vmul.f32 %v4426_v4, %v5007_v20 }
 0x406   :  { %v4168_v45 = vpack.c.bf16 %v1054_v34, %v1053_v43 }
 0x407   :  { %v4428_v57 = vpop.eup %4427 }
 0x408   :  { %v1020_v50 = vpop.xlane.xlu0 %1019  ;;  %4169 = vmatpush3.bf16.xpose.msra.mxu0 %v4168_v45  ;;  %v582_v10 = vmul.f32 %v4428_v57, %v5015_v21  ;;  %v4589_v57 = vld [vmem:[%s5765_s0 + $0x8] sm:$0xff] }
 0x409   :  { %4431 = vrcp.f32 %v1020_v50  ;;  %4170 = vmatprep.subr.bf16.mxu0 %v4631_v53  ;;  %v4590_v50 = vld [vmem:[%s5765_s0] sm:$0xff] }
 0x40a   :  { %v4144_v22 = vpack.c.bf16 %v583_v51, %v582_v10  ;;  %4433 = vrcp.f32 %v551_v48 }
 0x40b   :  { %v4430_v46 = vpop.eup %4429 }
 0x40c   :  { %v549_v62 = vpop.xlane.xlu0 %548  ;;  %4145 = vmatpush3.bf16.xpose.msra.mxu1 %v4144_v22  ;;  %v1056_v49 = vmul.f32 %v4430_v46, %v5019_v25 }
 0x40d   :  { %4435 = vrcp.f32 %v549_v62  ;;  %4146 = vmatprep.subr.bf16.mxu1 %v4631_v53 }
 0x413   :  { %v4432_v16 = vpop.eup %4431 }
 0x414   :  { %v1055_v56 = vmul.f32 %v4432_v16, %v5027_v8  ;;  %v4434_v26 = vpop.eup %4433  ;;  %v555_v21 = vpop.xlane.xlu1 %554 }
 0x415   :  { %v585_v28 = vmul.f32 %v4434_v26, %v5022_v6  ;;  %4437 = vrcp.f32 %v555_v21 }
 0x416   :  { %v4171_v58 = vpack.c.bf16 %v1056_v49, %v1055_v56 }
 0x417   :  { %v4436_v20 = vpop.eup %4435 }
 0x418   :  { %4172 = vmatpush3.bf16.xpose.msra.mxu0 %v4171_v58  ;;  %v584_v14 = vmul.f32 %v4436_v20, %v5030_v47  ;;  %v1026_v11 = vpop.xlane.xlu1 %1025 }
 0x419   :  { %4173 = vmatprep.subr.bf16.mxu0 %v4631_v53 }
 0x41a   :  { %v4147_v2 = vpack.c.bf16 %v585_v28, %v584_v14 }
 0x41c   :  { %v553_v24 = vpop.xlane.xlu0 %552  ;;  %4148 = vmatpush3.bf16.xpose.msra.mxu1 %v4147_v2 }
 0x41d   :  { %4439 = vrcp.f32 %v553_v24  ;;  %4149 = vmatprep.subr.bf16.mxu1 %v4631_v53 }
 0x41e   :  { %4441 = vrcp.f32 %v1026_v11 }
 0x41f   :  { %v4438_v8 = vpop.eup %4437 }
 0x420   :  { %v1024_v25 = vpop.xlane.xlu0 %1023  ;;  %v587_v47 = vmul.f32 %v4438_v8, %v5035_v39  ;;  %v41_v39 = vld [vmem:[%s5768_s3 + $0x8] sm:$0xff] }
 0x421   :  { %4443 = vrcp.f32 %v1024_v25  ;;  %1136 = vperm.xlu1 %4316, %v41_v39  }
 0x427   :  { %v4440_v27 = vpop.eup %4439 }
 0x428   :  { %v586_v29 = vmul.f32 %v4440_v27, %v5041_v17  ;;  %v4442_v6 = vpop.eup %4441  ;;  %v32_v17 = vld [vmem:[%s5767_s2 + $0x30] sm:$0xff] }
 0x429   :  { %v1058_v61 = vmul.f32 %v4442_v6, %v5038_v3  ;;  %v49_v3 = vld [vmem:[%s5768_s3 + $0x48] sm:$0xff] }
 0x42a   :  { %v4150_v7 = vpack.c.bf16 %v587_v47, %v586_v29 }
 0x42b   :  { %v4444_v1 = vpop.eup %4443 }
 0x42c   :  { %4151 = vmatpush3.bf16.xpose.msra.mxu1 %v4150_v7  ;;  %v1057_v5 = vmul.f32 %v4444_v1, %v5044_v44  ;;  %v43_v44 = vld [vmem:[%s5768_s3 + $0x18] sm:$0xff] }
 0x42e   :  { %v4174_v33 = vpack.c.bf16 %v1058_v61, %v1057_v5 }
 0x430   :  { %4175 = vmatpush3.bf16.xpose.msra.mxu0 %v4174_v33 }
 0x433   :  { %3814 = vmatmul.mubr.f32.vlgmr.msra.gmra.mrb[22].mxu1 %v4710_v19  ;;  %v40_v19 = vld [vmem:[%s5768_s3] sm:$0xff] }
 0x434   :  { %3881 = vmatprep.mubr.msk.f32.mxu1 %vm56_vm0, %v32_v17  ;;  %1131 = vperm.xlu0 %4315, %v40_v19  }
 0x437   :  { %3875 = vmatmul.mubr.f32.vlgmr.msra.gmra.mrb[16].mxu0 %v4708_v18  ;;  %v42_v18 = vld [vmem:[%s5768_s3 + $0x10] sm:$0xff] }
 0x438   :  { %1249 = vperm.xlu1 %4316, %v42_v18   ;;  %1288 = vperm.xlu0 %4315, %v49_v3  }
 0x43c   :  { %1254 = vperm.xlu1 %4316, %v43_v44   ;;  %1399 = vperm.xlu0 %4315, %v51_v30   ;;  %v35_v44 = vld [vmem:[%s5767_s2 + $0x48] sm:$0xff]  ;;  %v36_v30 = vld [vmem:[%s5767_s2 + $0x50] sm:$0xff] }
 0x440   :  { %1261 = vperm.xlu1 %4316, %v44_v54   ;;  %1517 = vperm.xlu0 %4315, %v53_v23   ;;  %v37_v54 = vld [vmem:[%s5767_s2 + $0x58] sm:$0xff]  ;;  %v38_v23 = vld [vmem:[%s5767_s2 + $0x60] sm:$0xff] }
 0x444   :  { %1266 = vperm.xlu1 %4316, %v45_v37   ;;  %1529 = vperm.xlu0 %4315, %v55_v55  }
 0x448   :  { %1273 = vperm.xlu1 %4316, %v46_v38  }
 0x44c   :  { %1278 = vperm.xlu1 %4316, %v47_v59  }
 0x450   :  { %1283 = vperm.xlu1 %4316, %v48_v63  }
 0x454   :  { %1394 = vperm.xlu1 %4316, %v50_v60  }
 0x458   :  { %1512 = vperm.xlu1 %4316, %v52_v40  }
 0x45c   :  { %1524 = vperm.xlu1 %4316, %v54_v9  }
 0x4a0   :  { %v1137_v15 = vpop.permute.xlu1 %1136 }
 0x4b3   :  { %v1132_v43 = vpop.permute.xlu0 %1131 }
 0x4b7   :  { %v1250_v29 = vpop.permute.xlu1 %1249  ;;  %v1289_v9 = vpop.permute.xlu0 %1288 }
 0x4bb   :  { %v1255_v7 = vpop.permute.xlu1 %1254 }
 0x4bf   :  { %v1262_v1 = vpop.permute.xlu1 %1261 }
 0x4c3   :  { %v1267_v36 = vpop.permute.xlu1 %1266 }
 0x4c7   :  { %v1274_v37 = vpop.permute.xlu1 %1273 }
 0x4cb   :  { %v1279_v55 = vpop.permute.xlu1 %1278 }
 0x506   :  { %v654_v42 = vpop.f32.mrb[22].mxu1 }
 0x507   :  { %v3815_v31 = vpop.f32.mrb[23].mxu1 }
 0x50a   :  { %v1125_v32 = vpop.f32.mrb[16].mxu0 }
 0x50b   :  { %v4176_v0 = vpack.c.bf16 %v1125_v32, %v654_v42  ;;  %v3876_v35 = vpop.f32.mrb[17].mxu0  ;;  %v1284_v32 = vpop.permute.xlu1 %1283 }
 0x50d   :  { %4177 = vmatprep.subr.bf16.mxu1 %v4176_v0 }
 0x50e   :  { %4179 = vmatpush3.bf16.msra.mxu1 %v4176_v0 }
 0x511   :  { %3882 = vmatmul.mubr.msk.f32.vlgmr.msra.gmra.mrb[24].mxu1 %vm56_vm0, %v33_v41 }
 0x512   :  { %3888 = vmatprep.mubr.msk.f32.mxu1 %vm56_vm0, %v34_v12 }
 0x5e4   :  { %v3883_v52 = vpop.f32.mrb[24].mxu1 }
 0x5e5   :  { %v1217_v34 = vadd.f32 %v3883_v52, %v1137_v15  ;;  %v1211_v4 = vpop.f32.mrb[25].mxu1 }
 0x5e6   :  { %v1212_v45 = vadd.f32 %v1211_v4, %v1132_v43  ;;  %v3447_v4 = vld [vmem:[%s5767_s2 + $0x70] sm:$0xff] }
 0x5e7   :  { %v1221_v48 = vadd.f32 %v4589_v57, %v1217_v34  ;;  %v39_v34 = vld [vmem:[%s5767_s2 + $0x68] sm:$0xff]  ;;  %3909 = vmatprep.mubr.msk.f32.mxu0 %vm56_vm0, %v3447_v4 }
 0x5e8   :  { %v1220_v10 = vadd.f32 %v4590_v50, %v1212_v45  ;;  %v1400_v45 = vpop.permute.xlu0 %1399 }
 0x5ea   :  { %v1222_v51 = vadd.f32 %v1221_v48, %v1220_v10 }
 0x5ec   :  { %v1223_v22 = vrot.slane %v1222_v51, 4 }
 0x5ee   :  { %v1224_v62 = vadd.f32 %v1223_v22, %v1222_v51 }
 0x5f0   :  { %v1225_v46 = vrot.slane %v1224_v62, 2 }
 0x5f2   :  { %v1226_v16 = vadd.f32 %v1225_v46, %v1224_v62 }
 0x5f4   :  { %v1227_v56 = vrot.slane %v1226_v16, 1 }
 0x5f6   :  { %v1228_v49 = vadd.f32 %v1227_v56, %v1226_v16 }
 0x5f8   :  { %v1230_v26 = vmul.f32 0.0625, %v1228_v49 }
 0x5fa   :  { %v1231_v21 = vsub.f32 %v1220_v10, %v1230_v26  ;;  %v1232_v58 = vsub.f32 %v1221_v48, %v1230_v26  ;;  %v1395_v48 = vpop.permute.xlu1 %1394 }
 0x5fc   :  { %v1233_v20 = vmul.f32 %v1231_v21, %v1231_v21  ;;  %v1234_v14 = vmul.f32 %v1232_v58, %v1232_v58 }
 0x5fe   :  { %v1235_v28 = vadd.f32 %v1234_v14, %v1233_v20 }
 0x600   :  { %v1236_v2 = vrot.slane %v1235_v28, 4 }
 0x602   :  { %v1237_v11 = vadd.f32 %v1236_v2, %v1235_v28 }
 0x604   :  { %v1238_v24 = vrot.slane %v1237_v11, 2 }
 0x606   :  { %v1239_v25 = vadd.f32 %v1238_v24, %v1237_v11 }
 0x608   :  { %v1240_v8 = vrot.slane %v1239_v25, 1 }
 0x60a   :  { %v1241_v27 = vadd.f32 %v1240_v8, %v1239_v25 }
 0x60c   :  { %v1242_v47 = vmul.f32 0.0625, %v1241_v27 }
 0x60e   :  { %v1243_v6 = vadd.f32 1e-05, %v1242_v47 }
 0x610   :  { %4445 = vrsqrt.f32 %v1243_v6 }
 0x61a   :  { %v4446_v5 = vpop.eup %4445 }
 0x61b   :  { %v1245_v61 = vmul.f32 %v4446_v5, %v1231_v21  ;;  %v1246_v33 = vmul.f32 %v4446_v5, %v1232_v58  ;;  %v1518_v5 = vpop.permute.xlu0 %1517 }
 0x61d   :  { %v1257_v17 = vmul.f32 %v1250_v29, %v1245_v61  ;;  %v1258_v39 = vmul.f32 %v1255_v7, %v1246_v33  ;;  %v1513_v61 = vpop.permute.xlu1 %1512 }
 0x61f   :  { %v1269_v19 = vadd.f32 %v1262_v1, %v1257_v17  ;;  %v1270_v18 = vadd.f32 %v1267_v36, %v1258_v39 }
 0x621   :  { %v4180_v3 = vpack.c.bf16 %v1270_v18, %v1269_v19 }
 0x623   :  { %4181 = vmatprep.subr.bf16.mxu1 %v4180_v3 }
 0x624   :  { %4183 = vmatpush3.bf16.msra.mxu1 %v4180_v3  ;;  %v1525_v3 = vpop.permute.xlu1 %1524 }
 0x627   :  { %3889 = vmatmul.mubr.msk.f32.vlgmr.msra.gmra.mrb[26].mxu1 %vm56_vm0, %v35_v44 }
 0x628   :  { %3891 = vmatprep.mubr.msk.f32.mxu1 %vm56_vm0, %v36_v30 }
 0x62b   :  { %3892 = vmatmul.mubr.msk.f32.gmra.mrb[28].mxu1 %vm56_vm0, %v37_v54 }
 0x62c   :  { %3902 = vmatprep.mubr.msk.f32.mxu1 %vm1402_vm3, %v38_v23  ;;  %v3448_v23 = vld [vmem:[%s5767_s2 + $0x78] sm:$0xff] }
 0x6fa   :  { %v3890_v38 = vpop.f32.mrb[26].mxu1 }
 0x6fb   :  { %v1375_v59 = vadd.f32 %v3890_v38, %v1279_v55  ;;  %v1369_v63 = vpop.f32.mrb[27].mxu1  ;;  %v3450_v55 = vld [vmem:[%s5767_s2 + $0x88] sm:$0xff] }
 0x6fc   :  { %v1370_v60 = vadd.f32 %v1369_v63, %v1274_v37  ;;  %v3449_v37 = vld [vmem:[%s5767_s2 + $0x80] sm:$0xff] }
 0x6fd   :  { %v1389_v40 = vmax.f32 %v1375_v59, 0.0 }
 0x6fe   :  { %v1388_v42 = vmax.f32 %v1370_v60, 0.0  ;;  %v3893_v31 = vpop.f32.mrb[28].mxu1 }
 0x6ff   :  { %v1385_v0 = vadd.f32 %v3893_v31, %v1289_v9  ;;  %v1379_v35 = vpop.f32.mrb[29].mxu1 }
 0x700   :  { %v4184_v41 = vpack.c.bf16 %v1389_v40, %v1388_v42  ;;  %v1380_v12 = vadd.f32 %v1379_v35, %v1284_v32 }
 0x701   :  { %v1391_v15 = vmax.f32 %v1385_v0, 0.0 }
 0x702   :  { %v1390_v52 = vmax.f32 %v1380_v12, 0.0  ;;  %4185 = vmatprep.subr.bf16.mxu1 %v4184_v41 }
 0x703   :  { %4187 = vmatpush3.bf16.msra.mxu1 %v4184_v41 }
 0x704   :  { %v4188_v43 = vpack.c.bf16 %v1391_v15, %v1390_v52 }
 0x706   :  { %4189 = vmatprep.subr.bf16.mxu1 %v4188_v43 }
 0x707   :  { %4191 = vmatpush3.bf16.msra.mxu1 %v4188_v43 }
 0x70a   :  { %3903 = vmatmul.mubr.msk.f32.vlgmr.msra.gmra.mrb[30].mxu1 %vm1402_vm3, %v39_v34 }
 0x7dd   :  { %v3904_v57 = vpop.f32.mrb[30].mxu1 }
 0x7de   :  { %v1481_v50 = vadd.f32 %v3904_v57, %v1400_v45  ;;  %v1475_v10 = vpop.f32.mrb[31].mxu1 }
 0x7df   :  { %v1476_v51 = vadd.f32 %v1475_v10, %v1395_v48 }
 0x7e0   :  { %v1485_v22 = vadd.f32 %v1481_v50, %v1270_v18  ;;  %v1530_v18 = vpop.permute.xlu0 %1529 }
 0x7e1   :  { %v1484_v62 = vadd.f32 %v1476_v51, %v1269_v19 }
 0x7e3   :  { %v1486_v46 = vadd.f32 %v1485_v22, %v1484_v62 }
 0x7e5   :  { %v1487_v16 = vrot.slane %v1486_v46, 4 }
 0x7e7   :  { %v1488_v56 = vadd.f32 %v1487_v16, %v1486_v46 }
 0x7e9   :  { %v1489_v49 = vrot.slane %v1488_v56, 2 }
 0x7eb   :  { %v1490_v26 = vadd.f32 %v1489_v49, %v1488_v56 }
 0x7ed   :  { %v1491_v21 = vrot.slane %v1490_v26, 1 }
 0x7ef   :  { %v1492_v58 = vadd.f32 %v1491_v21, %v1490_v26 }
 0x7f1   :  { %v1493_v20 = vmul.f32 0.0625, %v1492_v58 }
 0x7f3   :  { %v1494_v14 = vsub.f32 %v1484_v62, %v1493_v20  ;;  %v1495_v28 = vsub.f32 %v1485_v22, %v1493_v20 }
 0x7f5   :  { %v1496_v2 = vmul.f32 %v1494_v14, %v1494_v14  ;;  %v1497_v11 = vmul.f32 %v1495_v28, %v1495_v28 }
 0x7f7   :  { %v1498_v24 = vadd.f32 %v1497_v11, %v1496_v2 }
 0x7f9   :  { %v1499_v25 = vrot.slane %v1498_v24, 4 }
 0x7fb   :  { %v1500_v8 = vadd.f32 %v1499_v25, %v1498_v24 }
 0x7fd   :  { %v1501_v27 = vrot.slane %v1500_v8, 2 }
 0x7ff   :  { %v1502_v29 = vadd.f32 %v1501_v27, %v1500_v8  ;;  %v4591_v8 = vld [vmem:[%s5766_s1 + $0x8] sm:$0xff] }
 0x801   :  { %v1503_v47 = vrot.slane %v1502_v29, 1 }
 0x803   :  { %v1504_v6 = vadd.f32 %v1503_v47, %v1502_v29  ;;  %v4592_v29 = vld [vmem:[%s5766_s1] sm:$0xff] }
 0x805   :  { %v1505_v7 = vmul.f32 0.0625, %v1504_v6 }
 0x807   :  { %v1506_v1 = vadd.f32 1e-05, %v1505_v7 }
 0x809   :  { %4447 = vrsqrt.f32 %v1506_v1 }
 0x813   :  { %v4448_v33 = vpop.eup %4447 }
 0x814   :  { %v1508_v17 = vmul.f32 %v4448_v33, %v1494_v14  ;;  %v1509_v39 = vmul.f32 %v4448_v33, %v1495_v28 }
 0x816   :  { %v1520_v36 = vmul.f32 %v1513_v61, %v1508_v17  ;;  %v1521_v19 = vmul.f32 %v1518_v5, %v1509_v39  ;;  %v4593_v5 = vld [vmem:[%s5766_s1 + $0x10] sm:$0xff] }
 0x818   :  { %v5189_v44 = vadd.f32 %v1525_v3, %v1520_v36  ;;  %v5191_v30 = vadd.f32 %v1530_v18, %v1521_v19 }
 0x81a   :  { %v4192_v54 = vpack.c.bf16 %v5191_v30, %v5189_v44 }
 0x81c   :  { %4193 = vmatprep.subr.bf16.mxu0 %v4192_v54 }
 0x81d   :  { %4195 = vmatpush3.bf16.msra.mxu0 %v4192_v54 }
 0x81e   :  { %4196 = vmatprep.subr.bf16.mxu0 %v4631_v53 }
 0x820   :  { %3910 = vmatmul.mubr.msk.f32.vlgmr.msra.gmra.mrb[18].mxu0 %vm56_vm0, %v3448_v23 }
 0x821   :  { %3912 = vmatprep.mubr.msk.f32.mxu0 %vm56_vm0, %v3449_v37 }
 0x824   :  { %3913 = vmatmul.mubr.msk.f32.gmra.mrb[20].mxu0 %vm56_vm0, %v3450_v55 }
 0x8f3   :  { %v3911_v38 = vpop.f32.mrb[18].mxu0 }
 0x8f4   :  { %2150 = vxpose.xlu0.b32.start.end [1/1] (short) %v3911_v38, 128  ;;  %v1650_v59 = vpop.f32.mrb[19].mxu0 }
 0x8f5   :  { %1679 = vxpose.xlu1.b32.start.end [1/1] (short) %v1650_v59, 128 }
 0x8f7   :  { %v3914_v63 = vpop.f32.mrb[20].mxu0 }
 0x8f8   :  { %v1660_v60 = vpop.f32.mrb[21].mxu0 }
 0x8f9   :  { %3918 = vmatprep.subr.mxu1 %v1660_v60 }
 0x8fa   :  { %3919 = vmatpush3.msra.mxu1 %v1660_v60 }
 0x8fb   :  { %3979 = vmatprep.subr.mxu1 %v3914_v63 }
 0x974   :  { %v2166_v9 = vpop.trf.xlu0 }
 0x975   :  { %v1695_v40 = vpop.trf.xlu1 }
 0x976   :  { %3920 = vmatprep.mubr.msk.f32.mxu1 %vm202_vm1, %v1695_v40 }
 0x978   :  { %v2167_v31 = vpop.trf.xlu0 }
 0x979   :  { %v1696_v42 = vpop.trf.xlu1 }
 0x97a   :  { %3921 = vmatmul.mubr.msk.f32.vlgmr.msra.gmra.mrb[32].mxu1 %vm202_vm1, %v1696_v42 }
 0x97b   :  { %3980 = vmatpush3.msra.mxu1 %v3914_v63 }
 0x97c   :  { %4220 = vmatprep.subr.bf16.mxu1 %v4631_v53  ;;  %v2168_v35 = vpop.trf.xlu0 }
 0x97d   :  { %v1697_v32 = vpop.trf.xlu1 }
 0x97e   :  { %3923 = vmatprep.mubr.msk.f32.mxu1 %vm202_vm1, %v1697_v32 }
 0x980   :  { %v2169_v12 = vpop.trf.xlu0 }
 0x981   :  { %v1698_v0 = vpop.trf.xlu1 }
 0x982   :  { %3924 = vmatmul.mubr.msk.f32.gmra.mrb[34].mxu1 %vm202_vm1, %v1698_v0 }
 0x984   :  { %v2170_v43 = vpop.trf.xlu0 }
 0x985   :  { %v1699_v41 = vpop.trf.xlu1 }
 0x986   :  { %3926 = vmatprep.mubr.msk.f32.mxu1 %vm202_vm1, %v1699_v41 }
 0x988   :  { %v2171_v4 = vpop.trf.xlu0 }
 0x989   :  { %v1700_v15 = vpop.trf.xlu1 }
 0x98a   :  { %3927 = vmatmul.mubr.msk.f32.gmra.mrb[36].mxu1 %vm202_vm1, %v1700_v15 }
 0x98c   :  { %v2172_v48 = vpop.trf.xlu0 }
 0x98d   :  { %v1701_v52 = vpop.trf.xlu1 }
 0x98e   :  { %3929 = vmatprep.mubr.msk.f32.mxu1 %vm202_vm1, %v1701_v52 }
 0x990   :  { %v2173_v10 = vpop.trf.xlu0 }
 0x991   :  { %v1702_v34 = vpop.trf.xlu1 }
 0x992   :  { %3930 = vmatmul.mubr.msk.f32.gmra.mrb[38].mxu1 %vm202_vm1, %v1702_v34 }
 0x994   :  { %v2174_v62 = vpop.trf.xlu0 }
 0x995   :  { %v1703_v45 = vpop.trf.xlu1 }
 0x996   :  { %3932 = vmatprep.mubr.msk.f32.mxu1 %vm202_vm1, %v1703_v45 }
 0x998   :  { %v2175_v16 = vpop.trf.xlu0 }
 0x999   :  { %v1704_v57 = vpop.trf.xlu1 }
 0x99a   :  { %3933 = vmatmul.mubr.msk.f32.gmra.mrb[40].mxu1 %vm202_vm1, %v1704_v57  ;;  %v4595_v57 = vld [vmem:[%s5766_s1 + $0x20] sm:$0xff] }
 0x99c   :  { %v2176_v26 = vpop.trf.xlu0 }
 0x99d   :  { %v1705_v50 = vpop.trf.xlu1 }
 0x99e   :  { %3935 = vmatprep.mubr.msk.f32.mxu1 %vm202_vm1, %v1705_v50 }
 0x9a0   :  { %v2177_v21 = vpop.trf.xlu0 }
 0x9a1   :  { %v1706_v51 = vpop.trf.xlu1 }
 0x9a2   :  { %3936 = vmatmul.mubr.msk.f32.gmra.mrb[42].mxu1 %vm202_vm1, %v1706_v51 }
 0x9a4   :  { %v2178_v58 = vpop.trf.xlu0 }
 0x9a5   :  { %v1707_v22 = vpop.trf.xlu1 }
 0x9a6   :  { %3938 = vmatprep.mubr.msk.f32.mxu1 %vm202_vm1, %v1707_v22 }
 0x9a8   :  { %v2179_v20 = vpop.trf.xlu0 }
 0x9a9   :  { %v1708_v46 = vpop.trf.xlu1 }
 0x9aa   :  { %3939 = vmatmul.mubr.msk.f32.gmra.mrb[44].mxu1 %vm202_vm1, %v1708_v46 }
 0x9ac   :  { %v2180_v14 = vpop.trf.xlu0 }
 0x9ad   :  { %v1709_v56 = vpop.trf.xlu1 }
 0x9ae   :  { %3941 = vmatprep.mubr.msk.f32.mxu1 %vm202_vm1, %v1709_v56 }
 0x9b0   :  { %v2181_v28 = vpop.trf.xlu0 }
 0x9b1   :  { %v1710_v49 = vpop.trf.xlu1 }
 0x9b2   :  { %3942 = vmatmul.mubr.msk.f32.gmra.mrb[46].mxu1 %vm202_vm1, %v1710_v49 }
 0x9b3   :  { %3981 = vmatprep.mubr.msk.f32.mxu1 %vm202_vm1, %v2166_v9 }
 0x9b6   :  { %3982 = vmatmul.mubr.msk.f32.vlgmr.msra.gmra.mrb[48].mxu1 %vm202_vm1, %v2167_v31 }
 0x9b7   :  { %3984 = vmatprep.mubr.msk.f32.mxu1 %vm202_vm1, %v2168_v35 }
 0x9ba   :  { %3985 = vmatmul.mubr.msk.f32.gmra.mrb[50].mxu1 %vm202_vm1, %v2169_v12 }
 0x9bb   :  { %3987 = vmatprep.mubr.msk.f32.mxu1 %vm202_vm1, %v2170_v43 }
 0x9be   :  { %3988 = vmatmul.mubr.msk.f32.gmra.mrb[52].mxu1 %vm202_vm1, %v2171_v4  ;;  %v4594_v4 = vld [vmem:[%s5766_s1 + $0x18] sm:$0xff] }
 0x9bf   :  { %3990 = vmatprep.mubr.msk.f32.mxu1 %vm202_vm1, %v2172_v48 }
 0x9c2   :  { %3991 = vmatmul.mubr.msk.f32.gmra.mrb[54].mxu1 %vm202_vm1, %v2173_v10 }
 0x9c3   :  { %3993 = vmatprep.mubr.msk.f32.mxu1 %vm202_vm1, %v2174_v62 }
 0x9c6   :  { %3994 = vmatmul.mubr.msk.f32.gmra.mrb[56].mxu1 %vm202_vm1, %v2175_v16 }
 0x9c7   :  { %3996 = vmatprep.mubr.msk.f32.mxu1 %vm202_vm1, %v2176_v26 }
 0x9ca   :  { %3997 = vmatmul.mubr.msk.f32.gmra.mrb[58].mxu1 %vm202_vm1, %v2177_v21  ;;  %v4596_v21 = vld [vmem:[%s5766_s1 + $0x28] sm:$0xff] }
 0x9cb   :  { %3999 = vmatprep.mubr.msk.f32.mxu1 %vm202_vm1, %v2178_v58 }
 0x9ce   :  { %4000 = vmatmul.mubr.msk.f32.gmra.mrb[60].mxu1 %vm202_vm1, %v2179_v20  ;;  %v4597_v20 = vld [vmem:[%s5766_s1 + $0x30] sm:$0xff] }
 0x9cf   :  { %4002 = vmatprep.mubr.msk.f32.mxu1 %vm202_vm1, %v2180_v14 }
 0x9d2   :  { %4003 = vmatmul.mubr.msk.f32.gmra.mrb[62].mxu1 %vm202_vm1, %v2181_v28 }
 0x9d3   :  { %4037 = vmatprep.mubr.msk.f32.mxu1 %vm4632_vm2, %v4633_v13 }
 0xa4d   :  { %v3922_v2 = vpop.f32.mrb[32].mxu1 }
 0xa4e   :  { %v1905_v11 = vmul.f32 0.35355338, %v3922_v2  ;;  %v1825_v24 = vpop.f32.mrb[33].mxu1 }
 0xa4f   :  { %v1904_v25 = vmul.f32 0.35355338, %v1825_v24 }
 0xa50   :  { %v5246_v27 = vadd.f32 %v4591_v8, %v1905_v11 }
 0xa51   :  { %v5251_v47 = vadd.f32 %v4592_v29, %v1904_v25 }
 0xa52   :  { %1938 = vmax.xlane.f32.xlu1 %v5246_v27 }
 0xa53   :  { %1936 = vmax.xlane.f32.xlu0 %v5251_v47 }
 0xa55   :  { %v3925_v6 = vpop.f32.mrb[34].mxu1 }
 0xa56   :  { %v1835_v7 = vpop.f32.mrb[35].mxu1  ;;  %v1907_v0 = vmul.f32 0.35355338, %v3925_v6 }
 0xa57   :  { %v1906_v1 = vmul.f32 0.35355338, %v1835_v7 }
 0xa58   :  { %v5287_v45 = vadd.f32 %v4594_v4, %v1907_v0 }
 0xa59   :  { %v5258_v61 = vadd.f32 %v4593_v5, %v1906_v1 }
 0xa5b   :  { %1940 = vmax.xlane.f32.xlu1 %v5258_v61 }
 0xa5d   :  { %v3928_v33 = vpop.f32.mrb[36].mxu1 }
 0xa5e   :  { %v1845_v17 = vpop.f32.mrb[37].mxu1  ;;  %v1909_v62 = vmul.f32 0.35355338, %v3928_v33 }
 0xa5f   :  { %v1908_v41 = vmul.f32 0.35355338, %v1845_v17  ;;  %v4599_v17 = vld [vmem:[%s5766_s1 + $0x40] sm:$0xff] }
 0xa60   :  { %v5305_v58 = vadd.f32 %v4596_v21, %v1909_v62 }
 0xa61   :  { %v5292_v48 = vadd.f32 %v4595_v57, %v1908_v41  ;;  %v4601_v41 = vld [vmem:[%s5766_s1 + $0x50] sm:$0xff] }
 0xa65   :  { %v3931_v39 = vpop.f32.mrb[38].mxu1 }
 0xa66   :  { %v1855_v36 = vpop.f32.mrb[39].mxu1  ;;  %v1911_v25 = vmul.f32 0.35355338, %v3931_v39 }
 0xa67   :  { %v1910_v46 = vmul.f32 0.35355338, %v1855_v36 }
 0xa69   :  { %v5310_v14 = vadd.f32 %v4597_v20, %v1910_v46 }
 0xa6d   :  { %v5261_v19 = vpop.f32.mrb[40].mxu1 }
 0xa6e   :  { %v1865_v18 = vpop.f32.mrb[41].mxu1 }
 0xa75   :  { %v5263_v3 = vpop.f32.mrb[42].mxu1 }
 0xa76   :  { %v5265_v54 = vpop.f32.mrb[43].mxu1 }
 0xa7d   :  { %v5267_v23 = vpop.f32.mrb[44].mxu1 }
 0xa7e   :  { %v5269_v37 = vpop.f32.mrb[45].mxu1 }
 0xa85   :  { %v5271_v55 = vpop.f32.mrb[46].mxu1 }
 0xa86   :  { %v5273_v38 = vpop.f32.mrb[47].mxu1 }
 0xa89   :  { %v3983_v59 = vpop.f32.mrb[48].mxu1 }
 0xa8a   :  { %v2376_v63 = vmul.f32 0.35355338, %v3983_v59  ;;  %v2296_v60 = vpop.f32.mrb[49].mxu1 }
 0xa8b   :  { %v2375_v9 = vmul.f32 0.35355338, %v2296_v60  ;;  %v1913_v60 = vmul.f32 0.35355338, %v5261_v19 }
 0xa8c   :  { %v5275_v40 = vadd.f32 %v4591_v8, %v2376_v63  ;;  %v1912_v8 = vmul.f32 0.35355338, %v1865_v18 }
 0xa8d   :  { %v3986_v42 = vpop.f32.mrb[50].mxu1  ;;  %v5278_v35 = vadd.f32 %v4592_v29, %v2375_v9  ;;  %v1914_v9 = vmul.f32 0.35355338, %v5265_v54 }
 0xa8e   :  { %2409 = vmax.xlane.f32.xlu0 %v5275_v40  ;;  %v2306_v31 = vpop.f32.mrb[51].mxu1  ;;  %v2378_v52 = vmul.f32 0.35355338, %v3986_v42  ;;  %v5328_v39 = vadd.f32 %v4599_v17, %v1912_v8 }
 0xa8f   :  { %v2377_v32 = vmul.f32 0.35355338, %v2306_v31 }
 0xa90   :  { %v5294_v10 = vadd.f32 %v4594_v4, %v2378_v52  ;;  %v1915_v52 = vmul.f32 0.35355338, %v5263_v3  ;;  %v3452_v3 = vld [vmem:[%s5767_s2 + $0x98] sm:$0xff] }
 0xa91   :  { %v5280_v12 = vadd.f32 %v4593_v5, %v2377_v32  ;;  %v3989_v15 = vpop.f32.mrb[52].mxu1  ;;  %v4598_v5 = vld [vmem:[%s5766_s1 + $0x38] sm:$0xff]  ;;  %v4600_v32 = vld [vmem:[%s5766_s1 + $0x48] sm:$0xff] }
 0xa92   :  { %2407 = vmax.xlane.f32.xlu0 %v5278_v35  ;;  %v2316_v43 = vpop.f32.mrb[53].mxu1  ;;  %v2380_v56 = vmul.f32 0.35355338, %v3989_v15  ;;  %v5323_v33 = vadd.f32 %v4598_v5, %v1911_v25  ;;  %v5343_v0 = vadd.f32 %v4600_v32, %v1913_v60  ;;  %v5348_v15 = vadd.f32 %v4601_v41, %v1914_v9 }
 0xa93   :  { %2411 = vmax.xlane.f32.xlu1 %v5280_v12  ;;  %v2379_v34 = vmul.f32 0.35355338, %v2316_v43  ;;  %v1916_v43 = vmul.f32 0.35355338, %v5269_v37  ;;  %v4603_v37 = vld [vmem:[%s5766_s1 + $0x60] sm:$0xff] }
 0xa94   :  { %v5312_v2 = vadd.f32 %v4596_v21, %v2380_v56  ;;  %v1917_v56 = vmul.f32 0.35355338, %v5267_v23  ;;  %v1919_v25 = vmul.f32 0.35355338, %v5271_v55 }
 0xa95   :  { %v3992_v50 = vpop.f32.mrb[54].mxu1  ;;  %v5297_v22 = vadd.f32 %v4595_v57, %v2379_v34  ;;  %v3451_v57 = vld [vmem:[%s5767_s2 + $0x90] sm:$0xff]  ;;  %v5375_v62 = vadd.f32 %v4603_v37, %v1916_v43 }
 0xa96   :  { %1942 = vmax.xlane.f32.xlu0 %v5287_v45  ;;  %v2326_v51 = vpop.f32.mrb[55].mxu1  ;;  %v2382_v6 = vmul.f32 0.35355338, %v3992_v50  ;;  %v4602_v50 = vld [vmem:[%s5766_s1 + $0x58] sm:$0xff]  ;;  %3915 = vmatprep.mubr.msk.f32.mxu0 %vm56_vm0, %v3451_v57 }
 0xa97   :  { %1944 = vmax.xlane.f32.xlu1 %v5292_v48  ;;  %v2381_v26 = vmul.f32 0.35355338, %v2326_v51  ;;  %v5366_v51 = vadd.f32 %v4602_v50, %v1915_v52  ;;  %3916 = vmatmul.mubr.msk.f32.gmra.mrb[22].mxu0 %vm56_vm0, %v3452_v3 }
 0xa98   :  { %v5330_v18 = vadd.f32 %v4598_v5, %v2382_v6  ;;  %3976 = vmatprep.mubr.msk.f32.mxu0 %vm4632_vm2, %v4633_v13  ;;  %v4605_v13 = vld [vmem:[%s5766_s1 + $0x70] sm:$0xff] }
 0xa99   :  { %v3995_v16 = vpop.f32.mrb[56].mxu1  ;;  %v5315_v24 = vadd.f32 %v4597_v20, %v2381_v26  ;;  %v4604_v20 = vld [vmem:[%s5766_s1 + $0x68] sm:$0xff] }
 0xa9a   :  { %2413 = vmax.xlane.f32.xlu0 %v5294_v10  ;;  %v2336_v49 = vpop.f32.mrb[57].mxu1  ;;  %v2384_v42 = vmul.f32 0.35355338, %v3995_v16 }
 0xa9b   :  { %2415 = vmax.xlane.f32.xlu1 %v5297_v22  ;;  %v2383_v1 = vmul.f32 0.35355338, %v2336_v49  ;;  %v1918_v49 = vmul.f32 0.35355338, %v5273_v38 }
 0xa9c   :  { %v5350_v19 = vadd.f32 %v4600_v32, %v2384_v42 }
 0xa9d   :  { %v3998_v28 = vpop.f32.mrb[58].mxu1  ;;  %v5333_v63 = vadd.f32 %v4599_v17, %v2383_v1 }
 0xa9e   :  { %1946 = vmax.xlane.f32.xlu0 %v5305_v58  ;;  %v2346_v11 = vpop.f32.mrb[59].mxu1  ;;  %v2386_v34 = vmul.f32 0.35355338, %v3998_v28  ;;  %v5393_v28 = vadd.f32 %v4604_v20, %v1917_v56 }
 0xa9f   :  { %1948 = vmax.xlane.f32.xlu1 %v5310_v14  ;;  %v2385_v31 = vmul.f32 0.35355338, %v2346_v11  ;;  %v5398_v11 = vadd.f32 %v4605_v13, %v1918_v49 }
 0xaa0   :  { %v5378_v46 = vadd.f32 %v4602_v50, %v2386_v34 }
 0xaa1   :  { %v4001_v29 = vpop.f32.mrb[60].mxu1  ;;  %v5353_v54 = vadd.f32 %v4601_v41, %v2385_v31 }
 0xaa2   :  { %2417 = vmax.xlane.f32.xlu0 %v5312_v2  ;;  %v2356_v7 = vpop.f32.mrb[61].mxu1  ;;  %v2388_v26 = vmul.f32 0.35355338, %v4001_v29  ;;  %v4606_v29 = vld [vmem:[%s5766_s1 + $0x78] sm:$0xff] }
 0xaa3   :  { %2419 = vmax.xlane.f32.xlu1 %v5315_v24  ;;  %v2387_v4 = vmul.f32 0.35355338, %v2356_v7  ;;  %v5412_v6 = vadd.f32 %v4606_v29, %v1919_v25 }
 0xaa4   :  { %v5400_v23 = vadd.f32 %v4604_v20, %v2388_v26 }
 0xaa5   :  { %v4004_v36 = vpop.f32.mrb[62].mxu1  ;;  %v5383_v16 = vadd.f32 %v4603_v37, %v2387_v4 }
 0xaa6   :  { %1950 = vmax.xlane.f32.xlu0 %v5323_v33  ;;  %v2366_v59 = vpop.f32.mrb[63].mxu1  ;;  %v2390_v8 = vmul.f32 0.35355338, %v4004_v36 }
 0xaa7   :  { %1952 = vmax.xlane.f32.xlu1 %v5328_v39  ;;  %v2389_v21 = vmul.f32 0.35355338, %v2366_v59 }
 0xaa8   :  { %v5414_v7 = vadd.f32 %v4606_v29, %v2390_v8 }
 0xaa9   :  { %v5403_v38 = vadd.f32 %v4605_v13, %v2389_v21 }
 0xaaa   :  { %2421 = vmax.xlane.f32.xlu0 %v5330_v18 }
 0xaab   :  { %2423 = vmax.xlane.f32.xlu1 %v5333_v63 }
 0xaae   :  { %1954 = vmax.xlane.f32.xlu0 %v5343_v0 }
 0xaaf   :  { %1956 = vmax.xlane.f32.xlu1 %v5348_v15 }
 0xab2   :  { %2425 = vmax.xlane.f32.xlu0 %v5350_v19 }
 0xab3   :  { %2427 = vmax.xlane.f32.xlu1 %v5353_v54 }
 0xab6   :  { %1958 = vmax.xlane.f32.xlu0 %v5366_v51 }
 0xab7   :  { %1960 = vmax.xlane.f32.xlu1 %v5375_v62 }
 0xaba   :  { %2429 = vmax.xlane.f32.xlu0 %v5378_v46 }
 0xabb   :  { %2431 = vmax.xlane.f32.xlu1 %v5383_v16 }
 0xabe   :  { %1962 = vmax.xlane.f32.xlu0 %v5393_v28 }
 0xabf   :  { %1964 = vmax.xlane.f32.xlu1 %v5398_v11 }
 0xac2   :  { %2433 = vmax.xlane.f32.xlu0 %v5400_v23 }
 0xac3   :  { %2435 = vmax.xlane.f32.xlu1 %v5403_v38 }
 0xac6   :  { %1966 = vmax.xlane.f32.xlu0 %v5412_v6 }
 0xaca   :  { %2437 = vmax.xlane.f32.xlu0 %v5414_v7 }
 0xadf   :  { %v1939_v1 = vpop.xlane.xlu1 %1938 }
 0xae0   :  { %v1969_v55 = vsub.f32 %v5246_v27, %v1939_v1  ;;  %v1937_v5 = vpop.xlane.xlu0 %1936 }
 0xae1   :  { %v1968_v17 = vsub.f32 %v5251_v47, %v1937_v5 }
 0xae2   :  { %v1986_v36 = vmul.f32 1.442695, %v1969_v55 }
 0xae3   :  { %v1984_v59 = vmul.f32 1.442695, %v1968_v17 }
 0xae4   :  { %4449 = vpow2.f32 %v1986_v36 }
 0xae5   :  { %4451 = vpow2.f32 %v1984_v59 }
 0xae8   :  { %v1941_v31 = vpop.xlane.xlu1 %1940 }
 0xae9   :  { %v1970_v41 = vsub.f32 %v5258_v61, %v1941_v31 }
 0xaeb   :  { %v1988_v4 = vmul.f32 1.442695, %v1970_v41 }
 0xaee   :  { %v5420_v60 = vpop.eup %4449 }
 0xaef   :  { %v5422_v9 = vpop.eup %4451  ;;  %2018 = vadd.xlane.f32.xlu0 %v5420_v60 }
 0xaf0   :  { %2016 = vadd.xlane.f32.xlu1 %v5422_v9 }
 0xb1b   :  { %v2410_v42 = vpop.xlane.xlu0 %2409 }
 0xb1c   :  { %v2440_v32 = vsub.f32 %v5275_v40, %v2410_v42 }
 0xb1e   :  { %v2457_v27 = vmul.f32 1.442695, %v2440_v32 }
 0xb1f   :  { %v2408_v47 = vpop.xlane.xlu0 %2407 }
 0xb20   :  { %4453 = vpow2.f32 %v2457_v27  ;;  %v2439_v52 = vsub.f32 %v5278_v35, %v2408_v47  ;;  %v2412_v43 = vpop.xlane.xlu1 %2411 }
 0xb21   :  { %v2441_v57 = vsub.f32 %v5280_v12, %v2412_v43 }
 0xb22   :  { %v2455_v34 = vmul.f32 1.442695, %v2439_v52 }
 0xb23   :  { %v1943_v50 = vpop.xlane.xlu0 %1942  ;;  %v2459_v40 = vmul.f32 1.442695, %v2441_v57 }
 0xb24   :  { %4455 = vpow2.f32 %v2455_v34  ;;  %v1971_v3 = vsub.f32 %v5287_v45, %v1943_v50  ;;  %v1945_v37 = vpop.xlane.xlu1 %1944 }
 0xb25   :  { %4457 = vpow2.f32 %v1988_v4  ;;  %v1972_v49 = vsub.f32 %v5292_v48, %v1945_v37 }
 0xb26   :  { %v1990_v56 = vmul.f32 1.442695, %v1971_v3 }
 0xb27   :  { %v2414_v61 = vpop.xlane.xlu0 %2413  ;;  %v1992_v12 = vmul.f32 1.442695, %v1972_v49 }
 0xb28   :  { %4459 = vpow2.f32 %v1990_v56  ;;  %v2442_v26 = vsub.f32 %v5294_v10, %v2414_v61  ;;  %v2416_v35 = vpop.xlane.xlu1 %2415 }
 0xb29   :  { %4461 = vpow2.f32 %v2459_v40  ;;  %v2443_v13 = vsub.f32 %v5297_v22, %v2416_v35 }
 0xb2a   :  { %v5433_v21 = vpop.eup %4453  ;;  %v2461_v20 = vmul.f32 1.442695, %v2442_v26 }
 0xb2b   :  { %v1947_v25 = vpop.xlane.xlu0 %1946  ;;  %2489 = vadd.xlane.f32.xlu0 %v5433_v21  ;;  %v2463_v10 = vmul.f32 1.442695, %v2443_v13 }
 0xb2c   :  { %4463 = vpow2.f32 %v2461_v20  ;;  %v1973_v45 = vsub.f32 %v5305_v58, %v1947_v25  ;;  %v1949_v8 = vpop.xlane.xlu1 %1948 }
 0xb2d   :  { %4465 = vpow2.f32 %v1992_v12  ;;  %v1974_v1 = vsub.f32 %v5310_v14, %v1949_v8 }
 0xb2e   :  { %v5438_v48 = vpop.eup %4455  ;;  %v1994_v29 = vmul.f32 1.442695, %v1973_v45 }
 0xb2f   :  { %v2418_v55 = vpop.xlane.xlu0 %2417  ;;  %2487 = vadd.xlane.f32.xlu1 %v5438_v48  ;;  %v5443_v17 = vpop.eup %4457  ;;  %v1996_v59 = vmul.f32 1.442695, %v1974_v1 }
 0xb30   :  { %4467 = vpow2.f32 %v1994_v29  ;;  %v2444_v22 = vsub.f32 %v5312_v2, %v2418_v55  ;;  %v2420_v5 = vpop.xlane.xlu1 %2419 }
 0xb31   :  { %4469 = vpow2.f32 %v2463_v10  ;;  %v2445_v42 = vsub.f32 %v5315_v24, %v2420_v5 }
 0xb32   :  { %v5445_v36 = vpop.eup %4459  ;;  %v2465_v58 = vmul.f32 1.442695, %v2444_v22 }
 0xb33   :  { %v1951_v31 = vpop.xlane.xlu0 %1950  ;;  %2022 = vadd.xlane.f32.xlu0 %v5445_v36  ;;  %2020 = vadd.xlane.f32.xlu1 %v5443_v17  ;;  %v5451_v2 = vpop.eup %4461  ;;  %v2467_v47 = vmul.f32 1.442695, %v2445_v42 }
 0xb34   :  { %4471 = vpow2.f32 %v2465_v58  ;;  %v1975_v14 = vsub.f32 %v5323_v33, %v1951_v31  ;;  %v1953_v32 = vpop.xlane.xlu1 %1952 }
 0xb35   :  { %4473 = vpow2.f32 %v1996_v59  ;;  %v1976_v52 = vsub.f32 %v5328_v39, %v1953_v32 }
 0xb36   :  { %v5453_v27 = vpop.eup %4463  ;;  %v1998_v41 = vmul.f32 1.442695, %v1975_v14 }
 0xb37   :  { %v2422_v43 = vpop.xlane.xlu0 %2421  ;;  %2493 = vadd.xlane.f32.xlu0 %v5453_v27  ;;  %2491 = vadd.xlane.f32.xlu1 %v5451_v2  ;;  %v5459_v33 = vpop.eup %4465  ;;  %v2000_v50 = vmul.f32 1.442695, %v1976_v52 }
 0xb38   :  { %4475 = vpow2.f32 %v1998_v41  ;;  %v2446_v24 = vsub.f32 %v5330_v18, %v2422_v43  ;;  %v2424_v34 = vpop.xlane.xlu1 %2423 }
 0xb39   :  { %4477 = vpow2.f32 %v2467_v47  ;;  %v2447_v3 = vsub.f32 %v5333_v63, %v2424_v34 }
 0xb3a   :  { %v5461_v4 = vpop.eup %4467  ;;  %v2469_v57 = vmul.f32 1.442695, %v2446_v24 }
 0xb3b   :  { %v1955_v37 = vpop.xlane.xlu0 %1954  ;;  %2026 = vadd.xlane.f32.xlu0 %v5461_v4  ;;  %2024 = vadd.xlane.f32.xlu1 %v5459_v33  ;;  %v5467_v18 = vpop.eup %4469  ;;  %v2471_v61 = vmul.f32 1.442695, %v2447_v3 }
 0xb3c   :  { %4479 = vpow2.f32 %v2469_v57  ;;  %v1977_v39 = vsub.f32 %v5343_v0, %v1955_v37  ;;  %v1957_v56 = vpop.xlane.xlu1 %1956 }
 0xb3d   :  { %4481 = vpow2.f32 %v2000_v50  ;;  %v1978_v26 = vsub.f32 %v5348_v15, %v1957_v56 }
 0xb3e   :  { %v5469_v40 = vpop.eup %4471  ;;  %v2002_v49 = vmul.f32 1.442695, %v1977_v39 }
 0xb3f   :  { %v2426_v35 = vpop.xlane.xlu0 %2425  ;;  %2497 = vadd.xlane.f32.xlu0 %v5469_v40  ;;  %2495 = vadd.xlane.f32.xlu1 %v5467_v18  ;;  %v5475_v0 = vpop.eup %4473  ;;  %v2004_v25 = vmul.f32 1.442695, %v1978_v26 }
 0xb40   :  { %4483 = vpow2.f32 %v2002_v49  ;;  %v2448_v63 = vsub.f32 %v5350_v19, %v2426_v35  ;;  %v2428_v20 = vpop.xlane.xlu1 %2427 }
 0xb41   :  { %4485 = vpow2.f32 %v2471_v61  ;;  %v2449_v45 = vsub.f32 %v5353_v54, %v2428_v20 }
 0xb42   :  { %v5477_v12 = vpop.eup %4475  ;;  %v2473_v13 = vmul.f32 1.442695, %v2448_v63 }
 0xb43   :  { %v1959_v8 = vpop.xlane.xlu0 %1958  ;;  %2030 = vadd.xlane.f32.xlu0 %v5477_v12  ;;  %2028 = vadd.xlane.f32.xlu1 %v5475_v0  ;;  %v5483_v19 = vpop.eup %4477  ;;  %v2475_v55 = vmul.f32 1.442695, %v2449_v45 }
 0xb44   :  { %4487 = vpow2.f32 %v2473_v13  ;;  %v1979_v15 = vsub.f32 %v5366_v51, %v1959_v8  ;;  %v1961_v29 = vpop.xlane.xlu1 %1960 }
 0xb45   :  { %4489 = vpow2.f32 %v2004_v25  ;;  %v1980_v22 = vsub.f32 %v5375_v62, %v1961_v29  ;;  %v3461_v29 = vld [vmem:[%s5768_s3 + $0x80] sm:$0xff] }
 0xb46   :  { %v5485_v10 = vpop.eup %4479  ;;  %v2006_v1 = vmul.f32 1.442695, %v1979_v15 }
 0xb47   :  { %v2430_v5 = vpop.xlane.xlu0 %2429  ;;  %2501 = vadd.xlane.f32.xlu0 %v5485_v10  ;;  %2499 = vadd.xlane.f32.xlu1 %v5483_v19  ;;  %v5491_v51 = vpop.eup %4481  ;;  %v2008_v31 = vmul.f32 1.442695, %v1980_v22 }
 0xb48   :  { %4491 = vpow2.f32 %v2006_v1  ;;  %v2450_v54 = vsub.f32 %v5378_v46, %v2430_v5  ;;  %v2432_v58 = vpop.xlane.xlu1 %2431  ;;  %v3463_v1 = vld [vmem:[%s5768_s3 + $0x90] sm:$0xff] }
 0xb49   :  { %4493 = vpow2.f32 %v2475_v55  ;;  %v2451_v14 = vsub.f32 %v5383_v16, %v2432_v58  ;;  %v3462_v55 = vld [vmem:[%s5768_s3 + $0x88] sm:$0xff] }
 0xb4a   :  { %v5493_v59 = vpop.eup %4483  ;;  %v2477_v42 = vmul.f32 1.442695, %v2450_v54  ;;  %v3464_v54 = vld [vmem:[%s5768_s3 + $0x98] sm:$0xff]  ;;  %v3466_v58 = vld [vmem:[%s5768_s3 + $0xa8] sm:$0xff] }
 0xb4b   :  { %v1963_v32 = vpop.xlane.xlu0 %1962  ;;  %2034 = vadd.xlane.f32.xlu0 %v5493_v59  ;;  %2032 = vadd.xlane.f32.xlu1 %v5491_v51  ;;  %v5499_v46 = vpop.eup %4485  ;;  %v2479_v43 = vmul.f32 1.442695, %v2451_v14  ;;  %v3467_v14 = vld [vmem:[%s5768_s3 + $0xb0] sm:$0xff] }
 0xb4c   :  { %4495 = vpow2.f32 %v2477_v42  ;;  %v1981_v62 = vsub.f32 %v5393_v28, %v1963_v32  ;;  %v1965_v41 = vpop.xlane.xlu1 %1964  ;;  %v3465_v42 = vld [vmem:[%s5768_s3 + $0xa0] sm:$0xff]  ;;  %v3470_v32 = vld [vmem:[%s5768_s3 + $0xc8] sm:$0xff] }
 0xb4d   :  { %4497 = vpow2.f32 %v2008_v31  ;;  %v1982_v24 = vsub.f32 %v5398_v11, %v1965_v41  ;;  %v3468_v31 = vld [vmem:[%s5768_s3 + $0xb8] sm:$0xff] }
 0xb4e   :  { %v5501_v47 = vpop.eup %4487  ;;  %v2010_v52 = vmul.f32 1.442695, %v1981_v62 }
 0xb4f   :  { %v2434_v34 = vpop.xlane.xlu0 %2433  ;;  %2505 = vadd.xlane.f32.xlu0 %v5501_v47  ;;  %2503 = vadd.xlane.f32.xlu1 %v5499_v46  ;;  %v5507_v28 = vpop.eup %4489  ;;  %v2012_v37 = vmul.f32 1.442695, %v1982_v24  ;;  %v3469_v24 = vld [vmem:[%s5768_s3 + $0xc0] sm:$0xff] }
 0xb50   :  { %4499 = vpow2.f32 %v2010_v52  ;;  %v2452_v16 = vsub.f32 %v5400_v23, %v2434_v34  ;;  %v2436_v57 = vpop.xlane.xlu1 %2435 }
 0xb51   :  { %4501 = vpow2.f32 %v2479_v43  ;;  %v2453_v39 = vsub.f32 %v5403_v38, %v2436_v57  ;;  %v3472_v57 = vld [vmem:[%s5768_s3 + $0xd8] sm:$0xff] }
 0xb52   :  { %v5509_v50 = vpop.eup %4491  ;;  %v2481_v3 = vmul.f32 1.442695, %v2452_v16 }
 0xb53   :  { %v1967_v56 = vpop.xlane.xlu0 %1966  ;;  %2038 = vadd.xlane.f32.xlu0 %v5509_v50  ;;  %2036 = vadd.xlane.f32.xlu1 %v5507_v28  ;;  %v5515_v49 = vpop.eup %4493  ;;  %v2483_v26 = vmul.f32 1.442695, %v2453_v39  ;;  %v3476_v39 = vld [vmem:[%s5768_s3 + $0xf8] sm:$0xff] }
 0xb54   :  { %4503 = vpow2.f32 %v2481_v3  ;;  %v1983_v11 = vsub.f32 %v5412_v6, %v1967_v56  ;;  %v3475_v56 = vld [vmem:[%s5768_s3 + $0xf0] sm:$0xff] }
 0xb55   :  { %4505 = vpow2.f32 %v2012_v37  ;;  %v3474_v37 = vld [vmem:[%s5768_s3 + $0xe8] sm:$0xff] }
 0xb56   :  { %v5517_v23 = vpop.eup %4495  ;;  %v2014_v61 = vmul.f32 1.442695, %v1983_v11 }
 0xb57   :  { %2509 = vadd.xlane.f32.xlu0 %v5517_v23  ;;  %v2438_v35 = vpop.xlane.xlu0 %2437  ;;  %2507 = vadd.xlane.f32.xlu1 %v5515_v49  ;;  %v5522_v63 = vpop.eup %4497 }
 0xb58   :  { %4507 = vpow2.f32 %v2014_v61  ;;  %v2454_v38 = vsub.f32 %v5414_v7, %v2438_v35 }
 0xb59   :  { %4509 = vpow2.f32 %v2483_v26 }
 0xb5a   :  { %v5524_v20 = vpop.eup %4499  ;;  %v2485_v6 = vmul.f32 1.442695, %v2454_v38 }
 0xb5b   :  { %2042 = vadd.xlane.f32.xlu0 %v5524_v20  ;;  %2040 = vadd.xlane.f32.xlu1 %v5522_v63  ;;  %v5528_v13 = vpop.eup %4501 }
 0xb5c   :  { %4511 = vpow2.f32 %v2485_v6 }
 0xb5e   :  { %v5530_v25 = vpop.eup %4503 }
 0xb5f   :  { %2513 = vadd.xlane.f32.xlu0 %v5530_v25  ;;  %2511 = vadd.xlane.f32.xlu1 %v5528_v13  ;;  %v5534_v7 = vpop.eup %4505 }
 0xb62   :  { %v5536_v45 = vpop.eup %4507 }
 0xb63   :  { %2046 = vadd.xlane.f32.xlu0 %v5536_v45  ;;  %2044 = vadd.xlane.f32.xlu1 %v5534_v7  ;;  %v5540_v8 = vpop.eup %4509 }
 0xb66   :  { %v5542_v15 = vpop.eup %4511 }
 0xb67   :  { %2517 = vadd.xlane.f32.xlu0 %v5542_v15  ;;  %2515 = vadd.xlane.f32.xlu1 %v5540_v8 }
 0xb6a   :  { %v5574_v43 = vpop.f32.mrb[22].mxu0 }
 0xb6b   :  { %v5580_v16 = vpop.f32.mrb[23].mxu0 }
 0xb78   :  { %2623 = vperm.xlu1 %4316, %v3461_v29  }
 0xb7c   :  { %v2019_v22 = vpop.xlane.xlu0 %2018  ;;  %2740 = vperm.xlu1 %4316, %v3463_v1  }
 0xb7d   :  { %4513 = vrcp.f32 %v2019_v22  ;;  %2628 = vperm.xlu0 %4315, %v3462_v55   ;;  %v2017_v5 = vpop.xlane.xlu1 %2016 }
 0xb7e   :  { %4515 = vrcp.f32 %v2017_v5 }
 0xb80   :  { %2745 = vperm.xlu1 %4316, %v3464_v54  }
 0xb81   :  { %2757 = vperm.xlu0 %4315, %v3466_v58  }
 0xb84   :  { %2752 = vperm.xlu1 %4316, %v3465_v42  }
 0xb85   :  { %2769 = vperm.xlu0 %4315, %v3468_v31  }
 0xb87   :  { %v4514_v62 = vpop.eup %4513 }
 0xb88   :  { %v4516_v41 = vpop.eup %4515  ;;  %2764 = vperm.xlu1 %4316, %v3467_v14   ;;  %v2065_v52 = vmul.f32 %v4514_v62, %v5420_v60  ;;  %v3471_v60 = vld [vmem:[%s5768_s3 + $0xd0] sm:$0xff] }
 0xb89   :  { %2779 = vperm.xlu0 %4315, %v3470_v32   ;;  %v2064_v34 = vmul.f32 %v4516_v41, %v5422_v9  ;;  %v3473_v9 = vld [vmem:[%s5768_s3 + $0xe0] sm:$0xff] }
 0xb8b   :  { %v4197_v3 = vpack.c.bf16 %v2065_v52, %v2064_v34 }
 0xb8c   :  { %2774 = vperm.xlu1 %4316, %v3469_v24  }
 0xb8d   :  { %2890 = vperm.xlu0 %4315, %v3472_v57   ;;  %4198 = vmatpush3.bf16.xpose.msra.mxu0 %v4197_v3 }
 0xb8e   :  { %4199 = vmatprep.subr.bf16.mxu0 %v4631_v53 }
 0xb90   :  { %2885 = vperm.xlu1 %4316, %v3471_v60  }
 0xb91   :  { %3007 = vperm.xlu0 %4315, %v3474_v37  }
 0xb94   :  { %3002 = vperm.xlu1 %4316, %v3473_v9  }
 0xb95   :  { %3019 = vperm.xlu0 %4315, %v3476_v39  }
 0xb98   :  { %3014 = vperm.xlu1 %4316, %v3475_v56  }
 0xbb8   :  { %v2490_v11 = vpop.xlane.xlu0 %2489 }
 0xbb9   :  { %4517 = vrcp.f32 %v2490_v11 }
 0xbbc   :  { %v2488_v61 = vpop.xlane.xlu1 %2487 }
 0xbbd   :  { %4519 = vrcp.f32 %v2488_v61 }
 0xbc0   :  { %v2023_v26 = vpop.xlane.xlu0 %2022  ;;  %v2021_v35 = vpop.xlane.xlu1 %2020 }
 0xbc1   :  { %4521 = vrcp.f32 %v2023_v26 }
 0xbc2   :  { %4523 = vrcp.f32 %v2021_v35 }
 0xbc3   :  { %v4518_v29 = vpop.eup %4517 }
 0xbc4   :  { %v2494_v38 = vpop.xlane.xlu0 %2493  ;;  %v2492_v6 = vpop.xlane.xlu1 %2491  ;;  %v2536_v54 = vmul.f32 %v4518_v29, %v5433_v21 }
 0xbc5   :  { %4525 = vrcp.f32 %v2494_v38 }
 0xbc6   :  { %4527 = vrcp.f32 %v2492_v6 }
 0xbc7   :  { %v4520_v1 = vpop.eup %4519 }
 0xbc8   :  { %v2027_v55 = vpop.xlane.xlu0 %2026  ;;  %v2025_v22 = vpop.xlane.xlu1 %2024  ;;  %v2535_v5 = vmul.f32 %v4520_v1, %v5438_v48 }
 0xbc9   :  { %4529 = vrcp.f32 %v2027_v55 }
 0xbca   :  { %4531 = vrcp.f32 %v2025_v22  ;;  %v4221_v58 = vpack.c.bf16 %v2536_v54, %v2535_v5 }
 0xbcb   :  { %v4522_v42 = vpop.eup %4521 }
 0xbcc   :  { %v4524_v31 = vpop.eup %4523  ;;  %v2498_v14 = vpop.xlane.xlu0 %2497  ;;  %4222 = vmatpush3.bf16.xpose.msra.mxu1 %v4221_v58  ;;  %v2067_v62 = vmul.f32 %v4522_v42, %v5445_v36 }
 0xbcd   :  { %v2496_v32 = vpop.xlane.xlu1 %2495  ;;  %4533 = vrcp.f32 %v2498_v14  ;;  %v2066_v41 = vmul.f32 %v4524_v31, %v5443_v17  ;;  %4223 = vmatprep.subr.bf16.mxu1 %v4631_v53 }
 0xbce   :  { %4535 = vrcp.f32 %v2496_v32 }
 0xbcf   :  { %v4526_v52 = vpop.eup %4525  ;;  %v4200_v48 = vpack.c.bf16 %v2067_v62, %v2066_v41 }
 0xbd0   :  { %v4528_v24 = vpop.eup %4527  ;;  %v2031_v21 = vpop.xlane.xlu0 %2030  ;;  %v2538_v57 = vmul.f32 %v4526_v52, %v5453_v27 }
 0xbd1   :  { %v2029_v34 = vpop.xlane.xlu1 %2028  ;;  %4537 = vrcp.f32 %v2031_v21  ;;  %4201 = vmatpush3.bf16.xpose.msra.mxu0 %v4200_v48  ;;  %v2537_v3 = vmul.f32 %v4528_v24, %v5451_v2 }
 0xbd2   :  { %4539 = vrcp.f32 %v2029_v34  ;;  %4202 = vmatprep.subr.bf16.mxu0 %v4631_v53 }
 0xbd3   :  { %v4530_v36 = vpop.eup %4529  ;;  %v4224_v60 = vpack.c.bf16 %v2538_v57, %v2537_v3 }
 0xbd4   :  { %v4532_v17 = vpop.eup %4531  ;;  %v2502_v37 = vpop.xlane.xlu0 %2501  ;;  %v2069_v39 = vmul.f32 %v4530_v36, %v5461_v4 }
 0xbd5   :  { %v2500_v9 = vpop.xlane.xlu1 %2499  ;;  %4541 = vrcp.f32 %v2502_v37  ;;  %4225 = vmatpush3.bf16.xpose.msra.mxu1 %v4224_v60  ;;  %v2068_v56 = vmul.f32 %v4532_v17, %v5459_v33 }
 0xbd6   :  { %4543 = vrcp.f32 %v2500_v9  ;;  %4226 = vmatprep.subr.bf16.mxu1 %v4631_v53 }
 0xbd7   :  { %v4534_v27 = vpop.eup %4533  ;;  %v4203_v11 = vpack.c.bf16 %v2069_v39, %v2068_v56 }
 0xbd8   :  { %v4536_v2 = vpop.eup %4535  ;;  %v2035_v61 = vpop.xlane.xlu0 %2034  ;;  %v2540_v35 = vmul.f32 %v4534_v27, %v5469_v40 }
 0xbd9   :  { %v2033_v26 = vpop.xlane.xlu1 %2032  ;;  %4545 = vrcp.f32 %v2035_v61  ;;  %4204 = vmatpush3.bf16.xpose.msra.mxu0 %v4203_v11  ;;  %v2539_v38 = vmul.f32 %v4536_v2, %v5467_v18 }
 0xbda   :  { %4547 = vrcp.f32 %v2033_v26  ;;  %4205 = vmatprep.subr.bf16.mxu0 %v4631_v53 }
 0xbdb   :  { %v4538_v4 = vpop.eup %4537  ;;  %v4227_v6 = vpack.c.bf16 %v2540_v35, %v2539_v38 }
 0xbdc   :  { %v4540_v33 = vpop.eup %4539  ;;  %v2506_v29 = vpop.xlane.xlu0 %2505  ;;  %v2071_v55 = vmul.f32 %v4538_v4, %v5477_v12 }
 0xbdd   :  { %v2504_v1 = vpop.xlane.xlu1 %2503  ;;  %4549 = vrcp.f32 %v2506_v29  ;;  %4228 = vmatpush3.bf16.xpose.msra.mxu1 %v4227_v6  ;;  %v2070_v22 = vmul.f32 %v4540_v33, %v5475_v0 }
 0xbde   :  { %4551 = vrcp.f32 %v2504_v1  ;;  %4229 = vmatprep.subr.bf16.mxu1 %v4631_v53 }
 0xbdf   :  { %v4542_v40 = vpop.eup %4541  ;;  %v4206_v5 = vpack.c.bf16 %v2071_v55, %v2070_v22 }
 0xbe0   :  { %v4544_v18 = vpop.eup %4543  ;;  %v2039_v54 = vpop.xlane.xlu0 %2038  ;;  %v2542_v42 = vmul.f32 %v4542_v40, %v5485_v10 }
 0xbe1   :  { %v2037_v58 = vpop.xlane.xlu1 %2036  ;;  %4553 = vrcp.f32 %v2039_v54  ;;  %4207 = vmatpush3.bf16.xpose.msra.mxu0 %v4206_v5  ;;  %v2541_v31 = vmul.f32 %v4544_v18, %v5483_v19 }
 0xbe2   :  { %4555 = vrcp.f32 %v2037_v58  ;;  %4208 = vmatprep.subr.bf16.mxu0 %v4631_v53 }
 0xbe3   :  { %v4546_v12 = vpop.eup %4545  ;;  %v4230_v14 = vpack.c.bf16 %v2542_v42, %v2541_v31 }
 0xbe4   :  { %v4548_v0 = vpop.eup %4547  ;;  %v2510_v32 = vpop.xlane.xlu0 %2509  ;;  %v2073_v41 = vmul.f32 %v4546_v12, %v5493_v59 }
 0xbe5   :  { %v2508_v62 = vpop.xlane.xlu1 %2507  ;;  %4557 = vrcp.f32 %v2510_v32  ;;  %4231 = vmatpush3.bf16.xpose.msra.mxu1 %v4230_v14  ;;  %v2072_v52 = vmul.f32 %v4548_v0, %v5491_v51 }
 0xbe6   :  { %4559 = vrcp.f32 %v2508_v62  ;;  %4232 = vmatprep.subr.bf16.mxu1 %v4631_v53 }
 0xbe7   :  { %v4550_v10 = vpop.eup %4549  ;;  %v4209_v48 = vpack.c.bf16 %v2073_v41, %v2072_v52 }
 0xbe8   :  { %v4552_v19 = vpop.eup %4551  ;;  %v2043_v24 = vpop.xlane.xlu0 %2042  ;;  %v2544_v34 = vmul.f32 %v4550_v10, %v5501_v47 }
 0xbe9   :  { %v2041_v21 = vpop.xlane.xlu1 %2040  ;;  %4561 = vrcp.f32 %v2043_v24  ;;  %4210 = vmatpush3.bf16.xpose.msra.mxu0 %v4209_v48  ;;  %v2543_v57 = vmul.f32 %v4552_v19, %v5499_v46 }
 0xbea   :  { %4563 = vrcp.f32 %v2041_v21  ;;  %4211 = vmatprep.subr.bf16.mxu0 %v4631_v53 }
 0xbeb   :  { %v4554_v59 = vpop.eup %4553  ;;  %v4233_v3 = vpack.c.bf16 %v2544_v34, %v2543_v57 }
 0xbec   :  { %v4556_v51 = vpop.eup %4555  ;;  %v2514_v36 = vpop.xlane.xlu0 %2513  ;;  %v2075_v17 = vmul.f32 %v4554_v59, %v5509_v50 }
 0xbed   :  { %v2512_v60 = vpop.xlane.xlu1 %2511  ;;  %4565 = vrcp.f32 %v2514_v36  ;;  %4234 = vmatpush3.bf16.xpose.msra.mxu1 %v4233_v3  ;;  %v2074_v37 = vmul.f32 %v4556_v51, %v5507_v28 }
 0xbee   :  { %4567 = vrcp.f32 %v2512_v60  ;;  %4235 = vmatprep.subr.bf16.mxu1 %v4631_v53 }
 0xbef   :  { %v4558_v47 = vpop.eup %4557  ;;  %v4212_v9 = vpack.c.bf16 %v2075_v17, %v2074_v37 }
 0xbf0   :  { %v4560_v46 = vpop.eup %4559  ;;  %v2047_v39 = vpop.xlane.xlu0 %2046  ;;  %v2546_v27 = vmul.f32 %v4558_v47, %v5517_v23 }
 0xbf1   :  { %v2045_v56 = vpop.xlane.xlu1 %2044  ;;  %4569 = vrcp.f32 %v2047_v39  ;;  %4213 = vmatpush3.bf16.xpose.msra.mxu0 %v4212_v9  ;;  %v2545_v11 = vmul.f32 %v4560_v46, %v5515_v49 }
 0xbf2   :  { %4571 = vrcp.f32 %v2045_v56  ;;  %4214 = vmatprep.subr.bf16.mxu0 %v4631_v53 }
 0xbf3   :  { %v4562_v50 = vpop.eup %4561  ;;  %v4236_v2 = vpack.c.bf16 %v2546_v27, %v2545_v11 }
 0xbf4   :  { %v4564_v28 = vpop.eup %4563  ;;  %v2518_v61 = vpop.xlane.xlu0 %2517  ;;  %v2077_v35 = vmul.f32 %v4562_v50, %v5524_v20 }
 0xbf5   :  { %v2516_v26 = vpop.xlane.xlu1 %2515  ;;  %4573 = vrcp.f32 %v2518_v61  ;;  %4237 = vmatpush3.bf16.xpose.msra.mxu1 %v4236_v2  ;;  %v2076_v38 = vmul.f32 %v4564_v28, %v5522_v63 }
 0xbf6   :  { %4575 = vrcp.f32 %v2516_v26  ;;  %4238 = vmatprep.subr.bf16.mxu1 %v4631_v53 }
 0xbf7   :  { %v4566_v23 = vpop.eup %4565  ;;  %v4215_v4 = vpack.c.bf16 %v2077_v35, %v2076_v38 }
 0xbf8   :  { %v4568_v49 = vpop.eup %4567  ;;  %v2548_v6 = vmul.f32 %v4566_v23, %v5530_v25 }
 0xbf9   :  { %4216 = vmatpush3.bf16.xpose.msra.mxu0 %v4215_v4  ;;  %v2547_v33 = vmul.f32 %v4568_v49, %v5528_v13  ;;  %v2624_v31 = vpop.permute.xlu1 %2623  ;;  %v3456_v4 = vld [vmem:[%s5767_s2 + $0xb8] sm:$0xff]  ;;  %v3457_v49 = vld [vmem:[%s5767_s2 + $0xc0] sm:$0xff] }
 0xbfa   :  { %4217 = vmatprep.subr.bf16.mxu0 %v4631_v53 }
 0xbfb   :  { %v4570_v29 = vpop.eup %4569  ;;  %v4239_v1 = vpack.c.bf16 %v2548_v6, %v2547_v33  ;;  %v3458_v6 = vld [vmem:[%s5767_s2 + $0xc8] sm:$0xff]  ;;  %v3459_v33 = vld [vmem:[%s5767_s2 + $0xd0] sm:$0xff] }
 0xbfc   :  { %v4572_v20 = vpop.eup %4571  ;;  %v2079_v55 = vmul.f32 %v4570_v29, %v5536_v45 }
 0xbfd   :  { %4240 = vmatpush3.bf16.xpose.msra.mxu1 %v4239_v1  ;;  %v2078_v63 = vmul.f32 %v4572_v20, %v5534_v7  ;;  %v3453_v7 = vld [vmem:[%s5767_s2 + $0xa0] sm:$0xff]  ;;  %v2741_v39 = vpop.permute.xlu1 %2740 }
 0xbfe   :  { %4241 = vmatprep.subr.bf16.mxu1 %v4631_v53 }
 0xbff   :  { %v4574_v22 = vpop.eup %4573  ;;  %v4218_v40 = vpack.c.bf16 %v2079_v55, %v2078_v63 }
 0xc00   :  { %v4576_v5 = vpop.eup %4575  ;;  %v2550_v25 = vmul.f32 %v4574_v22, %v5542_v15 }
 0xc01   :  { %4219 = vmatpush3.bf16.xpose.msra.mxu0 %v4218_v40  ;;  %v2549_v13 = vmul.f32 %v4576_v5, %v5540_v8  ;;  %v3454_v8 = vld [vmem:[%s5767_s2 + $0xa8] sm:$0xff]  ;;  %v2746_v56 = vpop.permute.xlu1 %2745 }
 0xc03   :  { %v4242_v18 = vpack.c.bf16 %v2550_v25, %v2549_v13 }
 0xc05   :  { %4243 = vmatpush3.bf16.xpose.msra.mxu1 %v4242_v18  ;;  %v2753_v26 = vpop.permute.xlu1 %2752 }
 0xc08   :  { %3977 = vmatmul.mubr.f32.vlgmr.msra.gmra.mrb[24].mxu0 %v5580_v16  ;;  %v2629_v16 = vpop.permute.xlu0 %2628 }
 0xc09   :  { %4044 = vmatprep.mubr.msk.f32.mxu0 %vm56_vm0, %v3453_v7  ;;  %v2765_v1 = vpop.permute.xlu1 %2764 }
 0xc0c   :  { %4038 = vmatmul.mubr.f32.vlgmr.msra.gmra.mrb[64].mxu1 %v5574_v43  ;;  %v3455_v43 = vld [vmem:[%s5767_s2 + $0xb0] sm:$0xff]  ;;  %v2758_v61 = vpop.permute.xlu0 %2757 }
 0xc0d   :  { %v2775_v18 = vpop.permute.xlu1 %2774 }
 0xc10   :  { %v2770_v29 = vpop.permute.xlu0 %2769 }
 0xc14   :  { %v2780_v5 = vpop.permute.xlu0 %2779 }
 0xcdb   :  { %v2146_v53 = vpop.f32.mrb[24].mxu0 }
 0xcdc   :  { %v3978_v45 = vpop.f32.mrb[25].mxu0 }
 0xcdf   :  { %v2617_v54 = vpop.f32.mrb[64].mxu1 }
 0xce0   :  { %v4244_v58 = vpack.c.bf16 %v2617_v54, %v2146_v53  ;;  %v4039_v15 = vpop.f32.mrb[65].mxu1 }
 0xce2   :  { %4245 = vmatprep.subr.bf16.mxu0 %v4244_v58 }
 0xce3   :  { %4247 = vmatpush3.bf16.msra.mxu0 %v4244_v58 }
 0xce6   :  { %4045 = vmatmul.mubr.msk.f32.vlgmr.msra.gmra.mrb[26].mxu0 %vm56_vm0, %v3454_v8 }
 0xce7   :  { %4051 = vmatprep.mubr.msk.f32.mxu0 %vm56_vm0, %v3455_v43  ;;  %v3460_v43 = vld [vmem:[%s5767_s2 + $0xd8] sm:$0xff] }
 0xdb9   :  { %v4046_v42 = vpop.f32.mrb[26].mxu0 }
 0xdba   :  { %v2709_v12 = vadd.f32 %v4046_v42, %v2629_v16  ;;  %v2703_v14 = vpop.f32.mrb[27].mxu0  ;;  %v3024_v16 = vld [vmem:[%s5769_s4] sm:$0xff]  ;;  %v2891_v42 = vpop.permute.xlu0 %2890 }
 0xdbb   :  { %v2704_v0 = vadd.f32 %v2703_v14, %v2624_v31 }
 0xdbc   :  { %v2713_v32 = vadd.f32 %v2709_v12, %v5191_v30  ;;  %v2886_v12 = vpop.permute.xlu1 %2885 }
 0xdbd   :  { %v2712_v62 = vadd.f32 %v2704_v0, %v5189_v44 }
 0xdbf   :  { %v2714_v41 = vadd.f32 %v2713_v32, %v2712_v62 }
 0xdc1   :  { %v2715_v52 = vrot.slane %v2714_v41, 4 }
 0xdc3   :  { %v2716_v10 = vadd.f32 %v2715_v52, %v2714_v41 }
 0xdc5   :  { %v2717_v48 = vrot.slane %v2716_v10, 2 }
 0xdc7   :  { %v2718_v19 = vadd.f32 %v2717_v48, %v2716_v10 }
 0xdc9   :  { %v2719_v24 = vrot.slane %v2718_v19, 1 }
 0xdcb   :  { %v2720_v21 = vadd.f32 %v2719_v24, %v2718_v19 }
 0xdcd   :  { %v2721_v34 = vmul.f32 0.0625, %v2720_v21 }
 0xdcf   :  { %v2722_v57 = vsub.f32 %v2712_v62, %v2721_v34  ;;  %v2723_v59 = vsub.f32 %v2713_v32, %v2721_v34 }
 0xdd1   :  { %v2724_v3 = vmul.f32 %v2722_v57, %v2722_v57  ;;  %v2725_v51 = vmul.f32 %v2723_v59, %v2723_v59 }
 0xdd3   :  { %v2726_v36 = vadd.f32 %v2725_v51, %v2724_v3 }
 0xdd5   :  { %v2727_v60 = vrot.slane %v2726_v36, 4 }
 0xdd7   :  { %v2728_v17 = vadd.f32 %v2727_v60, %v2726_v36 }
 0xdd9   :  { %v2729_v37 = vrot.slane %v2728_v17, 2 }
 0xddb   :  { %v2730_v47 = vadd.f32 %v2729_v37, %v2728_v17 }
 0xddd   :  { %v2731_v30 = vrot.slane %v2730_v47, 1 }
 0xddf   :  { %v2732_v9 = vadd.f32 %v2731_v30, %v2730_v47 }
 0xde1   :  { %v2733_v44 = vmul.f32 0.0625, %v2732_v9 }
 0xde3   :  { %v2734_v46 = vadd.f32 1e-05, %v2733_v44 }
 0xde5   :  { %4577 = vrsqrt.f32 %v2734_v46 }
 0xdef   :  { %v4578_v27 = vpop.eup %4577 }
 0xdf0   :  { %v2736_v11 = vmul.f32 %v4578_v27, %v2722_v57  ;;  %v2737_v50 = vmul.f32 %v4578_v27, %v2723_v59  ;;  %v3003_v27 = vpop.permute.xlu1 %3002 }
 0xdf2   :  { %v2748_v2 = vmul.f32 %v2741_v39, %v2736_v11  ;;  %v2749_v28 = vmul.f32 %v2746_v56, %v2737_v50  ;;  %v3008_v56 = vpop.permute.xlu0 %3007 }
 0xdf4   :  { %v2760_v35 = vadd.f32 %v2753_v26, %v2748_v2  ;;  %v2761_v38 = vadd.f32 %v2758_v61, %v2749_v28 }
 0xdf6   :  { %v4248_v23 = vpack.c.bf16 %v2761_v38, %v2760_v35  ;;  %v3020_v26 = vpop.permute.xlu0 %3019 }
 0xdf8   :  { %4249 = vmatprep.subr.bf16.mxu0 %v4248_v23 }
 0xdf9   :  { %4251 = vmatpush3.bf16.msra.mxu0 %v4248_v23 }
 0xdfc   :  { %4052 = vmatmul.mubr.msk.f32.vlgmr.msra.gmra.mrb[28].mxu0 %vm56_vm0, %v3456_v4 }
 0xdfd   :  { %4054 = vmatprep.mubr.msk.f32.mxu0 %vm56_vm0, %v3457_v49  ;;  %v3025_v49 = vld [vmem:[%s5769_s4 + $0x8] sm:$0xff] }
 0xe00   :  { %4055 = vmatmul.mubr.msk.f32.gmra.mrb[30].mxu0 %vm56_vm0, %v3458_v6  ;;  %v3027_v6 = vld [vmem:[%s5766_s1 + $0x88] sm:$0xff] }
 0xe01   :  { %4065 = vmatprep.mubr.msk.f32.mxu0 %vm1402_vm3, %v3459_v33  ;;  %v3026_v33 = vld [vmem:[%s5766_s1 + $0x80] sm:$0xff] }
 0xecf   :  { %v4053_v20 = vpop.f32.mrb[28].mxu0 }
 0xed0   :  { %v2866_v55 = vadd.f32 %v4053_v20, %v2770_v29  ;;  %v2860_v63 = vpop.f32.mrb[29].mxu0 }
 0xed1   :  { %v2861_v22 = vadd.f32 %v2860_v63, %v2765_v1 }
 0xed2   :  { %v2880_v40 = vmax.f32 %v2866_v55, 0.0 }
 0xed3   :  { %v2879_v25 = vmax.f32 %v2861_v22, 0.0  ;;  %v4056_v13 = vpop.f32.mrb[30].mxu0 }
 0xed4   :  { %v2876_v7 = vadd.f32 %v4056_v13, %v2780_v5  ;;  %v2870_v53 = vpop.f32.mrb[31].mxu0 }
 0xed5   :  { %v4252_v45 = vpack.c.bf16 %v2880_v40, %v2879_v25  ;;  %v2871_v54 = vadd.f32 %v2870_v53, %v2775_v18  ;;  %v3202_v53 = vld [vmem:[%s5770_s5] sm:$0xff] }
 0xed6   :  { %v2882_v58 = vmax.f32 %v2876_v7, 0.0 }
 0xed7   :  { %v2881_v15 = vmax.f32 %v2871_v54, 0.0  ;;  %4253 = vmatprep.subr.bf16.mxu0 %v4252_v45 }
 0xed8   :  { %4255 = vmatpush3.bf16.msra.mxu0 %v4252_v45  ;;  %v3203_v45 = vld [vmem:[%s5770_s5 + $0x8] sm:$0xff] }
 0xed9   :  { %v4256_v8 = vpack.c.bf16 %v2882_v58, %v2881_v15  ;;  %v4268_v54 = vpack.c.bf16 %v3203_v45, %v3202_v53 }
 0xedb   :  { %4257 = vmatprep.subr.bf16.mxu0 %v4256_v8 }
 0xedc   :  { %4259 = vmatpush3.bf16.msra.mxu0 %v4256_v8 }
 0xedf   :  { %4066 = vmatmul.mubr.msk.f32.vlgmr.msra.gmra.mrb[32].mxu0 %vm1402_vm3, %v3460_v43 }
 0xee0   :  { %4072 = vmatprep.mubr.msk.f32.mxu0 %vm56_vm0, %v3024_v16 }
 0xfb2   :  { %v4067_v31 = vpop.f32.mrb[32].mxu0 }
 0xfb3   :  { %v2971_v14 = vadd.f32 %v4067_v31, %v2891_v42  ;;  %v2965_v0 = vpop.f32.mrb[33].mxu0  ;;  %v3205_v31 = vld [vmem:[%s5770_s5 + $0x18] sm:$0xff] }
 0xfb4   :  { %v2966_v32 = vadd.f32 %v2965_v0, %v2886_v12  ;;  %v3206_v12 = vld [vmem:[%s5770_s5 + $0x20] sm:$0xff]  ;;  %v3207_v0 = vld [vmem:[%s5770_s5 + $0x28] sm:$0xff] }
 0xfb5   :  { %v2975_v62 = vadd.f32 %v2971_v14, %v2761_v38  ;;  %v4272_v14 = vpack.c.bf16 %v3206_v12, %v3205_v31 }
 0xfb6   :  { %v2974_v41 = vadd.f32 %v2966_v32, %v2760_v35  ;;  %v3015_v35 = vpop.permute.xlu1 %3014  ;;  %v3208_v32 = vld [vmem:[%s5770_s5 + $0x30] sm:$0xff] }
 0xfb8   :  { %v2976_v52 = vadd.f32 %v2975_v62, %v2974_v41 }
 0xfba   :  { %v2977_v10 = vrot.slane %v2976_v52, 4 }
 0xfbc   :  { %v2978_v48 = vadd.f32 %v2977_v10, %v2976_v52  ;;  %v4276_v52 = vpack.c.bf16 %v3208_v32, %v3207_v0  ;;  %v3209_v10 = vld [vmem:[%s5770_s5 + $0x38] sm:$0xff] }
 0xfbe   :  { %v2979_v19 = vrot.slane %v2978_v48, 2 }
 0xfc0   :  { %v2980_v24 = vadd.f32 %v2979_v19, %v2978_v48  ;;  %v3210_v48 = vld [vmem:[%s5770_s5 + $0x40] sm:$0xff] }
 0xfc1   :  { %v4280_v19 = vpack.c.bf16 %v3210_v48, %v3209_v10 }
 0xfc2   :  { %v2981_v21 = vrot.slane %v2980_v24, 1 }
 0xfc4   :  { %v2982_v34 = vadd.f32 %v2981_v21, %v2980_v24  ;;  %v3211_v24 = vld [vmem:[%s5770_s5 + $0x48] sm:$0xff]  ;;  %v3212_v21 = vld [vmem:[%s5770_s5 + $0x50] sm:$0xff] }
 0xfc6   :  { %v2983_v57 = vmul.f32 0.0625, %v2982_v34  ;;  %v4284_v34 = vpack.c.bf16 %v3212_v21, %v3211_v24 }
 0xfc8   :  { %v2984_v59 = vsub.f32 %v2974_v41, %v2983_v57  ;;  %v2985_v3 = vsub.f32 %v2975_v62, %v2983_v57  ;;  %v3213_v57 = vld [vmem:[%s5770_s5 + $0x58] sm:$0xff] }
 0xfca   :  { %v2986_v51 = vmul.f32 %v2984_v59, %v2984_v59  ;;  %v2987_v36 = vmul.f32 %v2985_v3, %v2985_v3 }
 0xfcc   :  { %v2988_v60 = vadd.f32 %v2987_v36, %v2986_v51  ;;  %v3215_v51 = vld [vmem:[%s5770_s5 + $0x68] sm:$0xff]  ;;  %v3216_v36 = vld [vmem:[%s5770_s5 + $0x70] sm:$0xff] }
 0xfce   :  { %v2989_v17 = vrot.slane %v2988_v60, 4 }
 0xfd0   :  { %v2990_v37 = vadd.f32 %v2989_v17, %v2988_v60  ;;  %v4292_v60 = vpack.c.bf16 %v3216_v36, %v3215_v51  ;;  %v3217_v17 = vld [vmem:[%s5770_s5 + $0x78] sm:$0xff] }
 0xfd2   :  { %v2991_v47 = vrot.slane %v2990_v37, 2 }
 0xfd4   :  { %v2992_v30 = vadd.f32 %v2991_v47, %v2990_v37  ;;  %v3218_v37 = vld [vmem:[%s5770_s5 + $0x80] sm:$0xff] }
 0xfd5   :  { %v4296_v47 = vpack.c.bf16 %v3218_v37, %v3217_v17 }
 0xfd6   :  { %v2993_v9 = vrot.slane %v2992_v30, 1 }
 0xfd8   :  { %v2994_v44 = vadd.f32 %v2993_v9, %v2992_v30  ;;  %v3219_v30 = vld [vmem:[%s5770_s5 + $0x88] sm:$0xff]  ;;  %v3220_v9 = vld [vmem:[%s5770_s5 + $0x90] sm:$0xff] }
 0xfda   :  { %v2995_v46 = vmul.f32 0.0625, %v2994_v44  ;;  %v4300_v44 = vpack.c.bf16 %v3220_v9, %v3219_v30 }
 0xfdc   :  { %v2996_v39 = vadd.f32 1e-05, %v2995_v46  ;;  %v3525_v46 = vld [vmem:[%s5770_s5 + $0x10] ss:$0 sm:$0xff] }
 0xfde   :  { %4579 = vrsqrt.f32 %v2996_v39 }
 0xfe8   :  { %v4580_v11 = vpop.eup %4579 }
 0xfe9   :  { %v2998_v50 = vmul.f32 %v4580_v11, %v2984_v59  ;;  %v2999_v2 = vmul.f32 %v4580_v11, %v2985_v3  ;;  %v3214_v59 = vld [vmem:[%s5770_s5 + $0x60] sm:$0xff] }
 0xfea   :  { %v4288_v3 = vpack.c.bf16 %v3214_v59, %v3213_v57 }
 0xfeb   :  { %v3010_v28 = vmul.f32 %v3003_v27, %v2998_v50  ;;  %v3011_v61 = vmul.f32 %v3008_v56, %v2999_v2 }
 0xfed   :  { %v3022_v38 = vadd.f32 %v3015_v35, %v3010_v28  ;;  %v3023_v23 = vadd.f32 %v3020_v26, %v3011_v61 }
 0xfef   :  { %v4260_v4 = vpack.c.bf16 %v3023_v23, %v3022_v38 }
 0xff1   :  { %4261 = vmatprep.subr.bf16.mxu0 %v4260_v4 }
 0xff2   :  { %4263 = vmatpush3.bf16.msra.mxu0 %v4260_v4 }
 0xff3   :  { %4265 = vmatprep.subr.bf16.mxu0 %v4260_v4 }
 0xff5   :  { %4073 = vmatmul.mubr.msk.f32.vlgmr.msra.gmra.mrb[34].mxu0 %vm56_vm0, %v3025_v49 }
 0xffb   :  { %4267 = vmatpush3.bf16.xpose.msra.mxu0 %v4260_v4 }
 0xffc   :  { %4269 = vmatprep.subr.bf16.mxu0 %v4268_v54 }
0x10c8   :  { %v4074_v29 = vpop.f32.mrb[34].mxu0 }
0x10c9   :  { %v3106_v1 = vadd.f32 %v4074_v29, %v3027_v6  ;;  %v3100_v20 = vpop.f32.mrb[35].mxu0 }
0x10ca   :  { %v3101_v55 = vadd.f32 %v3100_v20, %v3026_v33 }
0x10cb   :  { %3111 = vmax.xlane.f32.xlu0 %v3106_v1 }
0x10cc   :  { %3109 = vmax.xlane.f32.xlu1 %v3101_v55 }
0x1158   :  { %v3112_v63 = vpop.xlane.xlu0 %3111 }
0x1159   :  { %v3110_v22 = vpop.xlane.xlu1 %3109  ;;  %v3114_v40 = vsub.f32 %v3106_v1, %v3112_v63 }
0x115a   :  { %v3113_v5 = vsub.f32 %v3101_v55, %v3110_v22 }
0x115b   :  { %v3117_v13 = vmul.f32 1.442695, %v3114_v40 }
0x115c   :  { %v3115_v25 = vmul.f32 1.442695, %v3113_v5 }
0x115e   :  { %4581 = vpow2.f32 %v3115_v25 }
0x115f   :  { %4583 = vpow2.f32 %v3117_v13 }
0x1168   :  { %v4582_v18 = vpop.eup %4581 }
0x1169   :  { %3119 = vadd.xlane.f32.xlu0 %v4582_v18  ;;  %v4584_v7 = vpop.eup %4583 }
0x116d   :  { %3121 = vadd.xlane.f32.xlu0 %v4584_v7 }
0x11f6   :  { %v3120_v58 = vpop.xlane.xlu0 %3119 }
0x11f7   :  { %4585 = vrcp.f32 %v3120_v58 }
0x11fa   :  { %v3122_v15 = vpop.xlane.xlu0 %3121 }
0x11fb   :  { %4587 = vrcp.f32 %v3122_v15 }
0x1201   :  { %v4586_v8 = vpop.eup %4585 }
0x1202   :  { %v3124_v43 = vmul.f32 %v4586_v8, %v4582_v18 }
0x1204   :  { %4079 = vmatprep.mubr.f32.mxu0 %v3124_v43 }
0x1205   :  { %v4588_v16 = vpop.eup %4587 }
0x1206   :  { %v3126_v42 = vmul.f32 %v4588_v16, %v4584_v7 }
0x1208   :  { %4080 = vmatmul.mubr.f32.vlgmr.msra.gmra.mrb[36].mxu0 %v3126_v42 }
0x1209   :  { %4271 = vmatpush3.bf16.msra.mxu0 %v4268_v54 }
0x120a   :  { %4273 = vmatprep.subr.bf16.mxu0 %v4272_v14 }
0x12db   :  { %v4081_v62 = vpop.f32.mrb[36].mxu0 }
0x12dc   :  { %v3193_v41 = vpop.f32.mrb[37].mxu0 }
0x12dd   :  { %4086 = vmatprep.mubr.msk.f32.mxu0 %vm56_vm0, %v3193_v41 }
0x12de   :  { %4087 = vmatmul.mubr.msk.f32.vlgmr.msra.gmra.mrb[38].mxu0 %vm56_vm0, %v4081_v62 }
0x12df   :  { %4275 = vmatpush3.bf16.msra.mxu0 %v4272_v14  ;;  %4121 = vmatprep.mubr.f32.mxu0 %v3124_v43 }
0x12e0   :  { %4277 = vmatprep.subr.bf16.mxu0 %v4276_v52 }
0x12e3   :  { %4279 = vmatpush3.bf16.msra.mxu0 %v4276_v52 }
0x12e4   :  { %4281 = vmatprep.subr.bf16.mxu0 %v4280_v19 }
0x12e7   :  { %4283 = vmatpush3.bf16.msra.mxu0 %v4280_v19 }
0x12e8   :  { %4285 = vmatprep.subr.bf16.mxu0 %v4284_v34 }
0x12eb   :  { %4287 = vmatpush3.bf16.msra.mxu0 %v4284_v34 }
0x12ec   :  { %4289 = vmatprep.subr.bf16.mxu0 %v4288_v3 }
0x12ef   :  { %4291 = vmatpush3.bf16.msra.mxu0 %v4288_v3 }
0x12f0   :  { %4293 = vmatprep.subr.bf16.mxu0 %v4292_v60 }
0x12f3   :  { %4295 = vmatpush3.bf16.msra.mxu0 %v4292_v60 }
0x12f4   :  { %4297 = vmatprep.subr.bf16.mxu0 %v4296_v47 }
0x12f7   :  { %4299 = vmatpush3.bf16.msra.mxu0 %v4296_v47 }
0x12f8   :  { %4301 = vmatprep.subr.bf16.mxu0 %v4300_v44 }
0x12fb   :  { %4303 = vmatpush3.bf16.msra.mxu0 %v4300_v44 }
0x12fe   :  { %4122 = vmatmul.mubr.f32.vlgmr.msra.gmra.mrb[38].mxu0 %v3126_v42 }
0x13d1   :  { %v4123_v39 = vpop.f32.mrb[38].mxu0 }
0x13d2   :  { %v4304_v56 = vadd.f32 %v4123_v39, %v3525_v46  ;;  %v3372_v27 = vpop.f32.mrb[39].mxu0 }
0x13d3   :  { %v4305_v11 = vadd.f32 %v3525_v46, %v3372_v27 }
0x13d4   :  { %3384 = vst [vmem:[#allocation2 + $0x8] sm:$0xff] %v4304_v56 }
0x13d5   :  { %3383 = vst [vmem:[#allocation2] sm:$0xff] %v4305_v11 }
0x13d6   :  { %4618 = shalt.err (!%p4615_p4)
}
0x13d7   :  { %s4619_s5 = scalar_lea.hbm %s5771_s6, 256 }
0x13d8   :  { %p4620_p5 = scmp.ne.s32.totalorder %s5771_s6, %s4619_s5  ;;  %p4623_p6 = scmp.lt.u32.totalorder %s4619_s5, %s5771_s6 }
0x13da   :  { %p4625_p7 = pnand %p4623_p6, %p4620_p5 }
0x13dc   :  { %4628 = shalt.err (!%p4625_p7)
}
0x13dd   :  { %s4636_s13 = smov 128   ;;  %s4637_s14 = smov 8  }
0x13de   :  { %3396 = dma.vmem_to_hbm [thread:$0]  %s3391_s29, 256, %s5771_s6, [#allocation3], %s4636_s13, %s4636_s13, %s4637_s14  }
0x13df   :  { %4629 = dma.done.wait [#allocation3], 256  }
0x13e0   :  { %4630 = vsyncadd [#allocation3], 4294967040 }
0x13e1   :  { %3400 = vsyncpa [#allocation3], 1 }

</bundles_post_ra>
